<compile_context>
chip_gen: v6e
topology: v6e:2x2x1
jax: 0.10.0
libtpu: 0.0.40
codegen_flags: <defaults>
</compile_context>

<pallas_src>
import math
from functools import partial

import jax
import jax.numpy as jnp
from jax.experimental import pallas as pl
from jax.experimental.pallas import tpu as pltpu


# -----------------------------------------------------------------------------
# Fused decoder-block kernel (one grid step == one batch element)
# -----------------------------------------------------------------------------
def decoder_block_kernel(
    x_ref, enc_ref, src_mask_ref, tgt_mask_ref,
    ln0_a_ref, ln0_b_ref, sa_wq_ref, sa_wk_ref, sa_wv_ref, sa_wo_ref,
    ln1_a_ref, ln1_b_ref, ca_wq_ref, ca_wk_ref, ca_wv_ref, ca_wo_ref,
    ln2_a_ref, ln2_b_ref, w1_ref, b1_ref, w2_ref, b2_ref,
    o_ref, *, num_heads, eps):

    x = x_ref[0]                  # (S, D)   f32
    enc = enc_ref[0]              # (Se, D)  f32
    src_mask = src_mask_ref[0]    # (S, Se)  f32 (1 = keep, 0 = mask)
    tgt_mask = tgt_mask_ref[0]    # (S, S)   f32

    def layernorm(v, a_ref, b_ref):
        # Matches the PyTorch module: torch.std is unbiased (N-1), eps on std.
        d = v.shape[-1]
        mean = jnp.mean(v, axis=-1, keepdims=True)
        var = jnp.sum((v - mean) ** 2, axis=-1, keepdims=True) * (1.0 / (d - 1))
        std = jnp.sqrt(var)
        return a_ref[...] * (v - mean) / (std + eps) + b_ref[...]

    def mha(q_in, kv_in, mask, wq_ref, wk_ref, wv_ref, wo_ref):
        # Weights are stored (in, out) so projections are plain x @ W (no .T).
        q = jnp.dot(q_in, wq_ref[...], preferred_element_type=jnp.float32)
        k = jnp.dot(kv_in, wk_ref[...], preferred_element_type=jnp.float32)
        v = jnp.dot(kv_in, wv_ref[...], preferred_element_type=jnp.float32)
        d_model = q.shape[-1]
        dk = d_model // num_heads
        inv_sqrt_dk = 1.0 / math.sqrt(dk)

        head_outs = []
        for h in range(num_heads):           # static unroll over heads
            sl = slice(h * dk, (h + 1) * dk)
            qh, kh, vh = q[:, sl], k[:, sl], v[:, sl]
            # scores = qh @ kh^T / sqrt(dk)
            s = jax.lax.dot_general(
                qh, kh, (((1,), (1,)), ((), ())),
                preferred_element_type=jnp.float32) * inv_sqrt_dk
            s = jnp.where(mask == 0.0, -1e9, s)
            m = jnp.max(s, axis=-1, keepdims=True)
            e = jnp.exp(s - m)
            p = e / jnp.sum(e, axis=-1, keepdims=True)
            head_outs.append(
                jnp.dot(p, vh, preferred_element_type=jnp.float32))  # (S, dk)
        att = jnp.concatenate(head_outs, axis=-1)                     # (S, D)
        return jnp.dot(att, wo_ref[...], preferred_element_type=jnp.float32)

    # --- stage 1: self-attention residual (q = k = v = norm(x), tgt_mask) ---
    xn = layernorm(x, ln0_a_ref, ln0_b_ref)
    x = x + mha(xn, xn, tgt_mask, sa_wq_ref, sa_wk_ref, sa_wv_ref, sa_wo_ref)

    # --- stage 2: cross-attention residual (q = norm(x), k = v = enc_out) ---
    xn = layernorm(x, ln1_a_ref, ln1_b_ref)
    x = x + mha(xn, enc, src_mask, ca_wq_ref, ca_wk_ref, ca_wv_ref, ca_wo_ref)

    # --- stage 3: feed-forward residual ---
    xn = layernorm(x, ln2_a_ref, ln2_b_ref)
    h = jnp.dot(xn, w1_ref[...], preferred_element_type=jnp.float32) + b1_ref[...]
    h = jnp.maximum(h, 0.0)
    x = x + (jnp.dot(h, w2_ref[...], preferred_element_type=jnp.float32)
             + b2_ref[...])

    o_ref[0] = x


# -----------------------------------------------------------------------------
# Wrapper
# -----------------------------------------------------------------------------
def decoder_block(x, encoder_output, src_mask, tgt_mask, params,
                  *, num_heads, eps=1e-6):
    B, S, D = x.shape
    Se = encoder_output.shape[1]

    def batch_spec(seq, width):
        # one lane/sublane-dense (seq, width) slab per grid step
        return pl.BlockSpec((1, seq, width), lambda b: (b, 0, 0))

    def resident(arr):
        # full-array block + constant index_map -> loaded once, VMEM-resident
        shape = arr.shape
        return pl.BlockSpec(shape, lambda b: (0,) * len(shape))

    in_specs = [
        batch_spec(S, D),            # x
        batch_spec(Se, D),           # encoder_output
        batch_spec(S, Se),           # src_mask
        batch_spec(S, S),            # tgt_mask
        resident(params["ln0_alpha"]), resident(params["ln0_bias"]),
        resident(params["self_wq"]), resident(params["self_wk"]),
        resident(params["self_wv"]), resident(params["self_wo"]),
        resident(params["ln1_alpha"]), resident(params["ln1_bias"]),
        resident(params["cross_wq"]), resident(params["cross_wk"]),
        resident(params["cross_wv"]), resident(params["cross_wo"]),
        resident(params["ln2_alpha"]), resident(params["ln2_bias"]),
        resident(params["w1"]), resident(params["b1"]),
        resident(params["w2"]), resident(params["b2"]),
    ]

    kernel = partial(decoder_block_kernel, num_heads=num_heads, eps=eps)
    return pl.pallas_call(
        kernel,
        out_shape=jax.ShapeDtypeStruct((B, S, D), x.dtype),
        grid=(B,),
        in_specs=in_specs,
        out_specs=pl.BlockSpec((1, S, D), lambda b: (b, 0, 0)),
        compiler_params=pltpu.CompilerParams(
            dimension_semantics=("parallel",),      # shard batch across TCs
            vmem_limit_bytes=64 * 1024 * 1024,
        ),
    )(x, encoder_output, src_mask, tgt_mask,
      params["ln0_alpha"], params["ln0_bias"],
      params["self_wq"], params["self_wk"], params["self_wv"], params["self_wo"],
      params["ln1_alpha"], params["ln1_bias"],
      params["cross_wq"], params["cross_wk"], params["cross_wv"], params["cross_wo"],
      params["ln2_alpha"], params["ln2_bias"],
      params["w1"], params["b1"], params["w2"], params["b2"])


# -----------------------------------------------------------------------------
# Pure-JAX reference (mirrors the PyTorch module exactly, eval mode)
# -----------------------------------------------------------------------------
def reference_decoder_block(x, enc, src_mask, tgt_mask, p, num_heads, eps=1e-6):
    def ln(v, alpha, bias):
        mean = jnp.mean(v, axis=-1, keepdims=True)
        std = jnp.std(v, axis=-1, keepdims=True, ddof=1)   # torch.std: unbiased
        return alpha * (v - mean) / (std + eps) + bias

    def mha(q_in, kv_in, mask, wq, wk, wv, wo):
        B, Sq, D = q_in.shape
        Skv = kv_in.shape[1]
        dk = D // num_heads
        Q = (q_in @ wq).reshape(B, Sq, num_heads, dk).transpose(0, 2, 1, 3)
        K = (kv_in @ wk).reshape(B, Skv, num_heads, dk).transpose(0, 2, 1, 3)
        V = (kv_in @ wv).reshape(B, Skv, num_heads, dk).transpose(0, 2, 1, 3)
        s = jnp.einsum("bhqd,bhkd->bhqk", Q, K) / math.sqrt(dk)
        s = jnp.where(mask[:, None, :, :] == 0.0, -1e9, s)
        a = jax.nn.softmax(s, axis=-1)
        o = jnp.einsum("bhqk,bhkd->bhqd", a, V)
        o = o.transpose(0, 2, 1, 3).reshape(B, Sq, D)
        return o @ wo

    xn = ln(x, p["ln0_alpha"], p["ln0_bias"])
    x = x + mha(xn, xn, tgt_mask, p["self_wq"], p["self_wk"], p["self_wv"], p["self_wo"])
    xn = ln(x, p["ln1_alpha"], p["ln1_bias"])
    x = x + mha(xn, enc, src_mask, p["cross_wq"], p["cross_wk"], p["cross_wv"], p["cross_wo"])
    xn = ln(x, p["ln2_alpha"], p["ln2_bias"])
    h = jnp.maximum(xn @ p["w1"] + p["b1"], 0.0)
    x = x + (h @ p["w2"] + p["b2"])
    return x


# -----------------------------------------------------------------------------
# Demo / correctness check
# -----------------------------------------------------------------------------
if __name__ == "__main__":
    d_model, num_heads, d_ff = 128, 4, 256
    batch, tgt_len, src_len = 2, 16, 16
    eps = 1e-6

    key = jax.random.PRNGKey(0)
    keys = jax.random.split(key, 20)

    def lin(k, fan_in, fan_out):
        # (in, out) layout: projection is x @ W  (same linear family as nn.Linear)
        return (1.0 / math.sqrt(fan_in)) * jax.random.normal(
            k, (fan_in, fan_out), jnp.float32)

    params = {
        "ln0_alpha": 1.0 + 0.1 * jax.random.normal(keys[0], (1, d_model), jnp.float32),
        "ln0_bias": 0.1 * jax.random.normal(keys[1], (1, d_model), jnp.float32),
        "self_wq": lin(keys[2], d_model, d_model),
        "self_wk": lin(keys[3], d_model, d_model),
        "self_wv": lin(keys[4], d_model, d_model),
        "self_wo": lin(keys[5], d_model, d_model),
        "ln1_alpha": 1.0 + 0.1 * jax.random.normal(keys[6], (1, d_model), jnp.float32),
        "ln1_bias": 0.1 * jax.random.normal(keys[7], (1, d_model), jnp.float32),
        "cross_wq": lin(keys[8], d_model, d_model),
        "cross_wk": lin(keys[9], d_model, d_model),
        "cross_wv": lin(keys[10], d_model, d_model),
        "cross_wo": lin(keys[11], d_model, d_model),
        "ln2_alpha": 1.0 + 0.1 * jax.random.normal(keys[12], (1, d_model), jnp.float32),
        "ln2_bias": 0.1 * jax.random.normal(keys[13], (1, d_model), jnp.float32),
        "w1": lin(keys[14], d_model, d_ff),
        "b1": 0.1 * jax.random.normal(keys[15], (1, d_ff), jnp.float32),
        "w2": lin(keys[16], d_ff, d_model),
        "b2": 0.1 * jax.random.normal(keys[17], (1, d_model), jnp.float32),
    }

    x = jax.random.normal(keys[18], (batch, tgt_len, d_model), jnp.float32)
    enc = jax.random.normal(keys[19], (batch, src_len, d_model), jnp.float32)

    # causal target mask (B, Sq, Sq)
    causal = jnp.tril(jnp.ones((tgt_len, tgt_len), jnp.float32))
    tgt_mask = jnp.broadcast_to(causal, (batch, tgt_len, tgt_len))
    # source padding mask: batch 1 cannot attend to the last 4 encoder positions
    src_valid = jnp.ones((batch, src_len), jnp.float32).at[1, -4:].set(0.0)
    src_mask = jnp.broadcast_to(src_valid[:, None, :], (batch, tgt_len, src_len))

    out = decoder_block(x, enc, src_mask, tgt_mask, params,
                        num_heads=num_heads, eps=eps)
    out = jax.block_until_ready(out)

    with jax.default_matmul_precision("highest"):
        ref = reference_decoder_block(x, enc, src_mask, tgt_mask, params,
                                      num_heads, eps)
    ref = jax.block_until_ready(ref)

    assert out.shape == (batch, tgt_len, d_model)
    max_err = float(jnp.max(jnp.abs(out - ref)))
    assert jnp.allclose(out, ref, atol=2e-3, rtol=2e-3), f"mismatch: {max_err}"
    print("KERNEL_OK")
</pallas_src>

<mosaic_0001>
module attributes {stable_mosaic.version = 11 : i64} {
  func.func @decoder_block_kernel(%arg0: i32, %arg1: memref<1x16x128xf32, #tpu.memory_space<vmem>>, %arg2: memref<1x16x128xf32, #tpu.memory_space<vmem>>, %arg3: memref<1x16x16xf32, #tpu.memory_space<vmem>>, %arg4: memref<1x16x16xf32, #tpu.memory_space<vmem>>, %arg5: memref<1x128xf32, #tpu.memory_space<vmem>>, %arg6: memref<1x128xf32, #tpu.memory_space<vmem>>, %arg7: memref<128x128xf32, #tpu.memory_space<vmem>>, %arg8: memref<128x128xf32, #tpu.memory_space<vmem>>, %arg9: memref<128x128xf32, #tpu.memory_space<vmem>>, %arg10: memref<128x128xf32, #tpu.memory_space<vmem>>, %arg11: memref<1x128xf32, #tpu.memory_space<vmem>>, %arg12: memref<1x128xf32, #tpu.memory_space<vmem>>, %arg13: memref<128x128xf32, #tpu.memory_space<vmem>>, %arg14: memref<128x128xf32, #tpu.memory_space<vmem>>, %arg15: memref<128x128xf32, #tpu.memory_space<vmem>>, %arg16: memref<128x128xf32, #tpu.memory_space<vmem>>, %arg17: memref<1x128xf32, #tpu.memory_space<vmem>>, %arg18: memref<1x128xf32, #tpu.memory_space<vmem>>, %arg19: memref<128x256xf32, #tpu.memory_space<vmem>>, %arg20: memref<1x256xf32, #tpu.memory_space<vmem>>, %arg21: memref<256x128xf32, #tpu.memory_space<vmem>>, %arg22: memref<1x128xf32, #tpu.memory_space<vmem>>, %arg23: memref<1x16x128xf32, #tpu.memory_space<vmem>>) attributes {dimension_semantics = [#tpu.dimension_semantics<parallel>], iteration_bounds = array<i64: 2>, scalar_prefetch = 0 : i64, scratch_operands = 0 : i64, tpu.core_type = #tpu.core_type<tc>, window_params = [{transform_indices = @transform_0, window_bounds = array<i64: 1, 16, 128>}, {transform_indices = @transform_1, window_bounds = array<i64: 1, 16, 128>}, {transform_indices = @transform_2, window_bounds = array<i64: 1, 16, 16>}, {transform_indices = @transform_3, window_bounds = array<i64: 1, 16, 16>}, {pipeline_mode = #tpu.pipeline_mode<synchronous>, transform_indices = @transform_4, window_bounds = array<i64: 1, 128>}, {pipeline_mode = #tpu.pipeline_mode<synchronous>, transform_indices = @transform_5, window_bounds = array<i64: 1, 128>}, {pipeline_mode = #tpu.pipeline_mode<synchronous>, transform_indices = @transform_6, window_bounds = array<i64: 128, 128>}, {pipeline_mode = #tpu.pipeline_mode<synchronous>, transform_indices = @transform_7, window_bounds = array<i64: 128, 128>}, {pipeline_mode = #tpu.pipeline_mode<synchronous>, transform_indices = @transform_8, window_bounds = array<i64: 128, 128>}, {pipeline_mode = #tpu.pipeline_mode<synchronous>, transform_indices = @transform_9, window_bounds = array<i64: 128, 128>}, {pipeline_mode = #tpu.pipeline_mode<synchronous>, transform_indices = @transform_10, window_bounds = array<i64: 1, 128>}, {pipeline_mode = #tpu.pipeline_mode<synchronous>, transform_indices = @transform_11, window_bounds = array<i64: 1, 128>}, {pipeline_mode = #tpu.pipeline_mode<synchronous>, transform_indices = @transform_12, window_bounds = array<i64: 128, 128>}, {pipeline_mode = #tpu.pipeline_mode<synchronous>, transform_indices = @transform_13, window_bounds = array<i64: 128, 128>}, {pipeline_mode = #tpu.pipeline_mode<synchronous>, transform_indices = @transform_14, window_bounds = array<i64: 128, 128>}, {pipeline_mode = #tpu.pipeline_mode<synchronous>, transform_indices = @transform_15, window_bounds = array<i64: 128, 128>}, {pipeline_mode = #tpu.pipeline_mode<synchronous>, transform_indices = @transform_16, window_bounds = array<i64: 1, 128>}, {pipeline_mode = #tpu.pipeline_mode<synchronous>, transform_indices = @transform_17, window_bounds = array<i64: 1, 128>}, {pipeline_mode = #tpu.pipeline_mode<synchronous>, transform_indices = @transform_18, window_bounds = array<i64: 128, 256>}, {pipeline_mode = #tpu.pipeline_mode<synchronous>, transform_indices = @transform_19, window_bounds = array<i64: 1, 256>}, {pipeline_mode = #tpu.pipeline_mode<synchronous>, transform_indices = @transform_20, window_bounds = array<i64: 256, 128>}, {pipeline_mode = #tpu.pipeline_mode<synchronous>, transform_indices = @transform_21, window_bounds = array<i64: 1, 128>}, {transform_indices = @transform_22, window_bounds = array<i64: 1, 16, 128>}]} {
    %c0 = arith.constant 0 : index
    %c0_0 = arith.constant 0 : index
    %c0_1 = arith.constant 0 : index
    %0 = vector.load %arg1[%c0, %c0_0, %c0_1] : memref<1x16x128xf32, #tpu.memory_space<vmem>>, vector<1x16x128xf32>
    %1 = vector.shape_cast %0 : vector<1x16x128xf32> to vector<16x128xf32>
    %c0_2 = arith.constant 0 : index
    %c0_3 = arith.constant 0 : index
    %c0_4 = arith.constant 0 : index
    %2 = vector.load %arg2[%c0_2, %c0_3, %c0_4] : memref<1x16x128xf32, #tpu.memory_space<vmem>>, vector<1x16x128xf32>
    %3 = vector.shape_cast %2 : vector<1x16x128xf32> to vector<16x128xf32>
    %c0_5 = arith.constant 0 : index
    %c0_6 = arith.constant 0 : index
    %c0_7 = arith.constant 0 : index
    %4 = vector.load %arg3[%c0_5, %c0_6, %c0_7] : memref<1x16x16xf32, #tpu.memory_space<vmem>>, vector<1x16x16xf32>
    %5 = vector.shape_cast %4 : vector<1x16x16xf32> to vector<16x16xf32>
    %c0_8 = arith.constant 0 : index
    %c0_9 = arith.constant 0 : index
    %c0_10 = arith.constant 0 : index
    %6 = vector.load %arg4[%c0_8, %c0_9, %c0_10] : memref<1x16x16xf32, #tpu.memory_space<vmem>>, vector<1x16x16xf32>
    %7 = vector.shape_cast %6 : vector<1x16x16xf32> to vector<16x16xf32>
    %cst = arith.constant dense<0.000000e+00> : vector<16xf32>
    %8 = vector.multi_reduction <add>, %1, %cst [1] : vector<16x128xf32> to vector<16xf32>
    %9 = vector.shape_cast %8 : vector<16xf32> to vector<16x1xf32>
    %cst_11 = arith.constant 1.280000e+02 : f32
    %10 = vector.broadcast %cst_11 : f32 to vector<16x1xf32>
    %11 = arith.divf %9, %10 : vector<16x1xf32>
    %12 = vector.broadcast %11 : vector<16x1xf32> to vector<16x128xf32>
    %13 = arith.subf %1, %12 : vector<16x128xf32>
    %14 = arith.mulf %13, %13 : vector<16x128xf32>
    %cst_12 = arith.constant dense<0.000000e+00> : vector<16xf32>
    %15 = vector.multi_reduction <add>, %14, %cst_12 [1] : vector<16x128xf32> to vector<16xf32>
    %16 = vector.shape_cast %15 : vector<16xf32> to vector<16x1xf32>
    %cst_13 = arith.constant 0.00787401571 : f32
    %17 = vector.broadcast %cst_13 : f32 to vector<16x1xf32>
    %18 = arith.mulf %16, %17 : vector<16x1xf32>
    %19 = math.sqrt %18 : vector<16x1xf32>
    %c0_14 = arith.constant 0 : index
    %c0_15 = arith.constant 0 : index
    %20 = vector.load %arg5[%c0_14, %c0_15] : memref<1x128xf32, #tpu.memory_space<vmem>>, vector<1x128xf32>
    %21 = vector.broadcast %11 : vector<16x1xf32> to vector<16x128xf32>
    %22 = arith.subf %1, %21 : vector<16x128xf32>
    %23 = vector.broadcast %20 : vector<1x128xf32> to vector<16x128xf32>
    %24 = arith.mulf %23, %22 : vector<16x128xf32>
    %cst_16 = arith.constant 9.99999997E-7 : f32
    %25 = vector.broadcast %cst_16 : f32 to vector<16x1xf32>
    %26 = arith.addf %19, %25 : vector<16x1xf32>
    %27 = vector.broadcast %26 : vector<16x1xf32> to vector<16x128xf32>
    %28 = arith.divf %24, %27 : vector<16x128xf32>
    %c0_17 = arith.constant 0 : index
    %c0_18 = arith.constant 0 : index
    %29 = vector.load %arg6[%c0_17, %c0_18] : memref<1x128xf32, #tpu.memory_space<vmem>>, vector<1x128xf32>
    %30 = vector.broadcast %29 : vector<1x128xf32> to vector<16x128xf32>
    %31 = arith.addf %28, %30 : vector<16x128xf32>
    %c0_19 = arith.constant 0 : index
    %c0_20 = arith.constant 0 : index
    %32 = vector.load %arg7[%c0_19, %c0_20] : memref<128x128xf32, #tpu.memory_space<vmem>>, vector<128x128xf32>
    %cst_21 = arith.constant dense<0.000000e+00> : vector<16x128xf32>
    %33 = tpu.matmul %31, %32, %cst_21 {dimension_numbers = #tpu.dot_dimension_numbers<[1], [0], [0], [1], [0, 0, 1, 1], [], []>} : vector<16x128xf32>, vector<128x128xf32>, vector<16x128xf32> -> vector<16x128xf32>
    %c0_22 = arith.constant 0 : index
    %c0_23 = arith.constant 0 : index
    %34 = vector.load %arg8[%c0_22, %c0_23] : memref<128x128xf32, #tpu.memory_space<vmem>>, vector<128x128xf32>
    %cst_24 = arith.constant dense<0.000000e+00> : vector<16x128xf32>
    %35 = tpu.matmul %31, %34, %cst_24 {dimension_numbers = #tpu.dot_dimension_numbers<[1], [0], [0], [1], [0, 0, 1, 1], [], []>} : vector<16x128xf32>, vector<128x128xf32>, vector<16x128xf32> -> vector<16x128xf32>
    %c0_25 = arith.constant 0 : index
    %c0_26 = arith.constant 0 : index
    %36 = vector.load %arg9[%c0_25, %c0_26] : memref<128x128xf32, #tpu.memory_space<vmem>>, vector<128x128xf32>
    %cst_27 = arith.constant dense<0.000000e+00> : vector<16x128xf32>
    %37 = tpu.matmul %31, %36, %cst_27 {dimension_numbers = #tpu.dot_dimension_numbers<[1], [0], [0], [1], [0, 0, 1, 1], [], []>} : vector<16x128xf32>, vector<128x128xf32>, vector<16x128xf32> -> vector<16x128xf32>
    %38 = vector.extract_strided_slice %33 {offsets = [0, 0], sizes = [16, 32], strides = [1, 1]} : vector<16x128xf32> to vector<16x32xf32>
    %39 = vector.extract_strided_slice %35 {offsets = [0, 0], sizes = [16, 32], strides = [1, 1]} : vector<16x128xf32> to vector<16x32xf32>
    %40 = vector.extract_strided_slice %37 {offsets = [0, 0], sizes = [16, 32], strides = [1, 1]} : vector<16x128xf32> to vector<16x32xf32>
    %cst_28 = arith.constant dense<0.000000e+00> : vector<16x16xf32>
    %41 = tpu.matmul %38, %39, %cst_28 {dimension_numbers = #tpu.dot_dimension_numbers<[1], [1], [0], [0], [0, 0, 1, 0], [], []>} : vector<16x32xf32>, vector<16x32xf32>, vector<16x16xf32> -> vector<16x16xf32>
    %cst_29 = arith.constant 0.176776692 : f32
    %42 = vector.broadcast %cst_29 : f32 to vector<16x16xf32>
    %43 = arith.mulf %41, %42 : vector<16x16xf32>
    %cst_30 = arith.constant 0.000000e+00 : f32
    %44 = vector.broadcast %cst_30 : f32 to vector<16x16xf32>
    %45 = arith.cmpf oeq, %7, %44 : vector<16x16xf32>
    %cst_31 = arith.constant -1.000000e+09 : f32
    %46 = vector.broadcast %cst_31 : f32 to vector<16x16xf32>
    %47 = arith.select %45, %46, %43 : vector<16x16xi1>, vector<16x16xf32>
    %cst_32 = arith.constant dense<0xFF800000> : vector<16xf32>
    %48 = vector.multi_reduction <maximumf>, %47, %cst_32 [1] : vector<16x16xf32> to vector<16xf32>
    %49 = vector.shape_cast %48 : vector<16xf32> to vector<16x1xf32>
    %50 = vector.broadcast %49 : vector<16x1xf32> to vector<16x16xf32>
    %51 = arith.subf %47, %50 : vector<16x16xf32>
    %52 = math.exp %51 : vector<16x16xf32>
    %cst_33 = arith.constant dense<0.000000e+00> : vector<16xf32>
    %53 = vector.multi_reduction <add>, %52, %cst_33 [1] : vector<16x16xf32> to vector<16xf32>
    %54 = vector.shape_cast %53 : vector<16xf32> to vector<16x1xf32>
    %55 = vector.broadcast %54 : vector<16x1xf32> to vector<16x16xf32>
    %56 = arith.divf %52, %55 : vector<16x16xf32>
    %cst_34 = arith.constant dense<0.000000e+00> : vector<16x32xf32>
    %57 = tpu.matmul %56, %40, %cst_34 {dimension_numbers = #tpu.dot_dimension_numbers<[1], [0], [0], [1], [0, 0, 1, 1], [], []>} : vector<16x16xf32>, vector<16x32xf32>, vector<16x32xf32> -> vector<16x32xf32>
    %58 = vector.extract_strided_slice %33 {offsets = [0, 32], sizes = [16, 32], strides = [1, 1]} : vector<16x128xf32> to vector<16x32xf32>
    %59 = vector.extract_strided_slice %35 {offsets = [0, 32], sizes = [16, 32], strides = [1, 1]} : vector<16x128xf32> to vector<16x32xf32>
    %60 = vector.extract_strided_slice %37 {offsets = [0, 32], sizes = [16, 32], strides = [1, 1]} : vector<16x128xf32> to vector<16x32xf32>
    %cst_35 = arith.constant dense<0.000000e+00> : vector<16x16xf32>
    %61 = tpu.matmul %58, %59, %cst_35 {dimension_numbers = #tpu.dot_dimension_numbers<[1], [1], [0], [0], [0, 0, 1, 0], [], []>} : vector<16x32xf32>, vector<16x32xf32>, vector<16x16xf32> -> vector<16x16xf32>
    %cst_36 = arith.constant 0.176776692 : f32
    %62 = vector.broadcast %cst_36 : f32 to vector<16x16xf32>
    %63 = arith.mulf %61, %62 : vector<16x16xf32>
    %cst_37 = arith.constant 0.000000e+00 : f32
    %64 = vector.broadcast %cst_37 : f32 to vector<16x16xf32>
    %65 = arith.cmpf oeq, %7, %64 : vector<16x16xf32>
    %cst_38 = arith.constant -1.000000e+09 : f32
    %66 = vector.broadcast %cst_38 : f32 to vector<16x16xf32>
    %67 = arith.select %65, %66, %63 : vector<16x16xi1>, vector<16x16xf32>
    %cst_39 = arith.constant dense<0xFF800000> : vector<16xf32>
    %68 = vector.multi_reduction <maximumf>, %67, %cst_39 [1] : vector<16x16xf32> to vector<16xf32>
    %69 = vector.shape_cast %68 : vector<16xf32> to vector<16x1xf32>
    %70 = vector.broadcast %69 : vector<16x1xf32> to vector<16x16xf32>
    %71 = arith.subf %67, %70 : vector<16x16xf32>
    %72 = math.exp %71 : vector<16x16xf32>
    %cst_40 = arith.constant dense<0.000000e+00> : vector<16xf32>
    %73 = vector.multi_reduction <add>, %72, %cst_40 [1] : vector<16x16xf32> to vector<16xf32>
    %74 = vector.shape_cast %73 : vector<16xf32> to vector<16x1xf32>
    %75 = vector.broadcast %74 : vector<16x1xf32> to vector<16x16xf32>
    %76 = arith.divf %72, %75 : vector<16x16xf32>
    %cst_41 = arith.constant dense<0.000000e+00> : vector<16x32xf32>
    %77 = tpu.matmul %76, %60, %cst_41 {dimension_numbers = #tpu.dot_dimension_numbers<[1], [0], [0], [1], [0, 0, 1, 1], [], []>} : vector<16x16xf32>, vector<16x32xf32>, vector<16x32xf32> -> vector<16x32xf32>
    %78 = vector.extract_strided_slice %33 {offsets = [0, 64], sizes = [16, 32], strides = [1, 1]} : vector<16x128xf32> to vector<16x32xf32>
    %79 = vector.extract_strided_slice %35 {offsets = [0, 64], sizes = [16, 32], strides = [1, 1]} : vector<16x128xf32> to vector<16x32xf32>
    %80 = vector.extract_strided_slice %37 {offsets = [0, 64], sizes = [16, 32], strides = [1, 1]} : vector<16x128xf32> to vector<16x32xf32>
    %cst_42 = arith.constant dense<0.000000e+00> : vector<16x16xf32>
    %81 = tpu.matmul %78, %79, %cst_42 {dimension_numbers = #tpu.dot_dimension_numbers<[1], [1], [0], [0], [0, 0, 1, 0], [], []>} : vector<16x32xf32>, vector<16x32xf32>, vector<16x16xf32> -> vector<16x16xf32>
    %cst_43 = arith.constant 0.176776692 : f32
    %82 = vector.broadcast %cst_43 : f32 to vector<16x16xf32>
    %83 = arith.mulf %81, %82 : vector<16x16xf32>
    %cst_44 = arith.constant 0.000000e+00 : f32
    %84 = vector.broadcast %cst_44 : f32 to vector<16x16xf32>
    %85 = arith.cmpf oeq, %7, %84 : vector<16x16xf32>
    %cst_45 = arith.constant -1.000000e+09 : f32
    %86 = vector.broadcast %cst_45 : f32 to vector<16x16xf32>
    %87 = arith.select %85, %86, %83 : vector<16x16xi1>, vector<16x16xf32>
    %cst_46 = arith.constant dense<0xFF800000> : vector<16xf32>
    %88 = vector.multi_reduction <maximumf>, %87, %cst_46 [1] : vector<16x16xf32> to vector<16xf32>
    %89 = vector.shape_cast %88 : vector<16xf32> to vector<16x1xf32>
    %90 = vector.broadcast %89 : vector<16x1xf32> to vector<16x16xf32>
    %91 = arith.subf %87, %90 : vector<16x16xf32>
    %92 = math.exp %91 : vector<16x16xf32>
    %cst_47 = arith.constant dense<0.000000e+00> : vector<16xf32>
    %93 = vector.multi_reduction <add>, %92, %cst_47 [1] : vector<16x16xf32> to vector<16xf32>
    %94 = vector.shape_cast %93 : vector<16xf32> to vector<16x1xf32>
    %95 = vector.broadcast %94 : vector<16x1xf32> to vector<16x16xf32>
    %96 = arith.divf %92, %95 : vector<16x16xf32>
    %cst_48 = arith.constant dense<0.000000e+00> : vector<16x32xf32>
    %97 = tpu.matmul %96, %80, %cst_48 {dimension_numbers = #tpu.dot_dimension_numbers<[1], [0], [0], [1], [0, 0, 1, 1], [], []>} : vector<16x16xf32>, vector<16x32xf32>, vector<16x32xf32> -> vector<16x32xf32>
    %98 = vector.extract_strided_slice %33 {offsets = [0, 96], sizes = [16, 32], strides = [1, 1]} : vector<16x128xf32> to vector<16x32xf32>
    %99 = vector.extract_strided_slice %35 {offsets = [0, 96], sizes = [16, 32], strides = [1, 1]} : vector<16x128xf32> to vector<16x32xf32>
    %100 = vector.extract_strided_slice %37 {offsets = [0, 96], sizes = [16, 32], strides = [1, 1]} : vector<16x128xf32> to vector<16x32xf32>
    %cst_49 = arith.constant dense<0.000000e+00> : vector<16x16xf32>
    %101 = tpu.matmul %98, %99, %cst_49 {dimension_numbers = #tpu.dot_dimension_numbers<[1], [1], [0], [0], [0, 0, 1, 0], [], []>} : vector<16x32xf32>, vector<16x32xf32>, vector<16x16xf32> -> vector<16x16xf32>
    %cst_50 = arith.constant 0.176776692 : f32
    %102 = vector.broadcast %cst_50 : f32 to vector<16x16xf32>
    %103 = arith.mulf %101, %102 : vector<16x16xf32>
    %cst_51 = arith.constant 0.000000e+00 : f32
    %104 = vector.broadcast %cst_51 : f32 to vector<16x16xf32>
    %105 = arith.cmpf oeq, %7, %104 : vector<16x16xf32>
    %cst_52 = arith.constant -1.000000e+09 : f32
    %106 = vector.broadcast %cst_52 : f32 to vector<16x16xf32>
    %107 = arith.select %105, %106, %103 : vector<16x16xi1>, vector<16x16xf32>
    %cst_53 = arith.constant dense<0xFF800000> : vector<16xf32>
    %108 = vector.multi_reduction <maximumf>, %107, %cst_53 [1] : vector<16x16xf32> to vector<16xf32>
    %109 = vector.shape_cast %108 : vector<16xf32> to vector<16x1xf32>
    %110 = vector.broadcast %109 : vector<16x1xf32> to vector<16x16xf32>
    %111 = arith.subf %107, %110 : vector<16x16xf32>
    %112 = math.exp %111 : vector<16x16xf32>
    %cst_54 = arith.constant dense<0.000000e+00> : vector<16xf32>
    %113 = vector.multi_reduction <add>, %112, %cst_54 [1] : vector<16x16xf32> to vector<16xf32>
    %114 = vector.shape_cast %113 : vector<16xf32> to vector<16x1xf32>
    %115 = vector.broadcast %114 : vector<16x1xf32> to vector<16x16xf32>
    %116 = arith.divf %112, %115 : vector<16x16xf32>
    %cst_55 = arith.constant dense<0.000000e+00> : vector<16x32xf32>
    %117 = tpu.matmul %116, %100, %cst_55 {dimension_numbers = #tpu.dot_dimension_numbers<[1], [0], [0], [1], [0, 0, 1, 1], [], []>} : vector<16x16xf32>, vector<16x32xf32>, vector<16x32xf32> -> vector<16x32xf32>
    %118 = tpu.concatenate %57, %77, %97, %117 in 1 : vector<16x32xf32>, vector<16x32xf32>, vector<16x32xf32>, vector<16x32xf32> -> vector<16x128xf32>
    %c0_56 = arith.constant 0 : index
    %c0_57 = arith.constant 0 : index
    %119 = vector.load %arg10[%c0_56, %c0_57] : memref<128x128xf32, #tpu.memory_space<vmem>>, vector<128x128xf32>
    %cst_58 = arith.constant dense<0.000000e+00> : vector<16x128xf32>
    %120 = tpu.matmul %118, %119, %cst_58 {dimension_numbers = #tpu.dot_dimension_numbers<[1], [0], [0], [1], [0, 0, 1, 1], [], []>} : vector<16x128xf32>, vector<128x128xf32>, vector<16x128xf32> -> vector<16x128xf32>
    %121 = arith.addf %1, %120 : vector<16x128xf32>
    %cst_59 = arith.constant dense<0.000000e+00> : vector<16xf32>
    %122 = vector.multi_reduction <add>, %121, %cst_59 [1] : vector<16x128xf32> to vector<16xf32>
    %123 = vector.shape_cast %122 : vector<16xf32> to vector<16x1xf32>
    %cst_60 = arith.constant 1.280000e+02 : f32
    %124 = vector.broadcast %cst_60 : f32 to vector<16x1xf32>
    %125 = arith.divf %123, %124 : vector<16x1xf32>
    %126 = vector.broadcast %125 : vector<16x1xf32> to vector<16x128xf32>
    %127 = arith.subf %121, %126 : vector<16x128xf32>
    %128 = arith.mulf %127, %127 : vector<16x128xf32>
    %cst_61 = arith.constant dense<0.000000e+00> : vector<16xf32>
    %129 = vector.multi_reduction <add>, %128, %cst_61 [1] : vector<16x128xf32> to vector<16xf32>
    %130 = vector.shape_cast %129 : vector<16xf32> to vector<16x1xf32>
    %cst_62 = arith.constant 0.00787401571 : f32
    %131 = vector.broadcast %cst_62 : f32 to vector<16x1xf32>
    %132 = arith.mulf %130, %131 : vector<16x1xf32>
    %133 = math.sqrt %132 : vector<16x1xf32>
    %c0_63 = arith.constant 0 : index
    %c0_64 = arith.constant 0 : index
    %134 = vector.load %arg11[%c0_63, %c0_64] : memref<1x128xf32, #tpu.memory_space<vmem>>, vector<1x128xf32>
    %135 = vector.broadcast %125 : vector<16x1xf32> to vector<16x128xf32>
    %136 = arith.subf %121, %135 : vector<16x128xf32>
    %137 = vector.broadcast %134 : vector<1x128xf32> to vector<16x128xf32>
    %138 = arith.mulf %137, %136 : vector<16x128xf32>
    %cst_65 = arith.constant 9.99999997E-7 : f32
    %139 = vector.broadcast %cst_65 : f32 to vector<16x1xf32>
    %140 = arith.addf %133, %139 : vector<16x1xf32>
    %141 = vector.broadcast %140 : vector<16x1xf32> to vector<16x128xf32>
    %142 = arith.divf %138, %141 : vector<16x128xf32>
    %c0_66 = arith.constant 0 : index
    %c0_67 = arith.constant 0 : index
    %143 = vector.load %arg12[%c0_66, %c0_67] : memref<1x128xf32, #tpu.memory_space<vmem>>, vector<1x128xf32>
    %144 = vector.broadcast %143 : vector<1x128xf32> to vector<16x128xf32>
    %145 = arith.addf %142, %144 : vector<16x128xf32>
    %c0_68 = arith.constant 0 : index
    %c0_69 = arith.constant 0 : index
    %146 = vector.load %arg13[%c0_68, %c0_69] : memref<128x128xf32, #tpu.memory_space<vmem>>, vector<128x128xf32>
    %cst_70 = arith.constant dense<0.000000e+00> : vector<16x128xf32>
    %147 = tpu.matmul %145, %146, %cst_70 {dimension_numbers = #tpu.dot_dimension_numbers<[1], [0], [0], [1], [0, 0, 1, 1], [], []>} : vector<16x128xf32>, vector<128x128xf32>, vector<16x128xf32> -> vector<16x128xf32>
    %c0_71 = arith.constant 0 : index
    %c0_72 = arith.constant 0 : index
    %148 = vector.load %arg14[%c0_71, %c0_72] : memref<128x128xf32, #tpu.memory_space<vmem>>, vector<128x128xf32>
    %cst_73 = arith.constant dense<0.000000e+00> : vector<16x128xf32>
    %149 = tpu.matmul %3, %148, %cst_73 {dimension_numbers = #tpu.dot_dimension_numbers<[1], [0], [0], [1], [0, 0, 1, 1], [], []>} : vector<16x128xf32>, vector<128x128xf32>, vector<16x128xf32> -> vector<16x128xf32>
    %c0_74 = arith.constant 0 : index
    %c0_75 = arith.constant 0 : index
    %150 = vector.load %arg15[%c0_74, %c0_75] : memref<128x128xf32, #tpu.memory_space<vmem>>, vector<128x128xf32>
    %cst_76 = arith.constant dense<0.000000e+00> : vector<16x128xf32>
    %151 = tpu.matmul %3, %150, %cst_76 {dimension_numbers = #tpu.dot_dimension_numbers<[1], [0], [0], [1], [0, 0, 1, 1], [], []>} : vector<16x128xf32>, vector<128x128xf32>, vector<16x128xf32> -> vector<16x128xf32>
    %152 = vector.extract_strided_slice %147 {offsets = [0, 0], sizes = [16, 32], strides = [1, 1]} : vector<16x128xf32> to vector<16x32xf32>
    %153 = vector.extract_strided_slice %149 {offsets = [0, 0], sizes = [16, 32], strides = [1, 1]} : vector<16x128xf32> to vector<16x32xf32>
    %154 = vector.extract_strided_slice %151 {offsets = [0, 0], sizes = [16, 32], strides = [1, 1]} : vector<16x128xf32> to vector<16x32xf32>
    %cst_77 = arith.constant dense<0.000000e+00> : vector<16x16xf32>
    %155 = tpu.matmul %152, %153, %cst_77 {dimension_numbers = #tpu.dot_dimension_numbers<[1], [1], [0], [0], [0, 0, 1, 0], [], []>} : vector<16x32xf32>, vector<16x32xf32>, vector<16x16xf32> -> vector<16x16xf32>
    %cst_78 = arith.constant 0.176776692 : f32
    %156 = vector.broadcast %cst_78 : f32 to vector<16x16xf32>
    %157 = arith.mulf %155, %156 : vector<16x16xf32>
    %cst_79 = arith.constant 0.000000e+00 : f32
    %158 = vector.broadcast %cst_79 : f32 to vector<16x16xf32>
    %159 = arith.cmpf oeq, %5, %158 : vector<16x16xf32>
    %cst_80 = arith.constant -1.000000e+09 : f32
    %160 = vector.broadcast %cst_80 : f32 to vector<16x16xf32>
    %161 = arith.select %159, %160, %157 : vector<16x16xi1>, vector<16x16xf32>
    %cst_81 = arith.constant dense<0xFF800000> : vector<16xf32>
    %162 = vector.multi_reduction <maximumf>, %161, %cst_81 [1] : vector<16x16xf32> to vector<16xf32>
    %163 = vector.shape_cast %162 : vector<16xf32> to vector<16x1xf32>
    %164 = vector.broadcast %163 : vector<16x1xf32> to vector<16x16xf32>
    %165 = arith.subf %161, %164 : vector<16x16xf32>
    %166 = math.exp %165 : vector<16x16xf32>
    %cst_82 = arith.constant dense<0.000000e+00> : vector<16xf32>
    %167 = vector.multi_reduction <add>, %166, %cst_82 [1] : vector<16x16xf32> to vector<16xf32>
    %168 = vector.shape_cast %167 : vector<16xf32> to vector<16x1xf32>
    %169 = vector.broadcast %168 : vector<16x1xf32> to vector<16x16xf32>
    %170 = arith.divf %166, %169 : vector<16x16xf32>
    %cst_83 = arith.constant dense<0.000000e+00> : vector<16x32xf32>
    %171 = tpu.matmul %170, %154, %cst_83 {dimension_numbers = #tpu.dot_dimension_numbers<[1], [0], [0], [1], [0, 0, 1, 1], [], []>} : vector<16x16xf32>, vector<16x32xf32>, vector<16x32xf32> -> vector<16x32xf32>
    %172 = vector.extract_strided_slice %147 {offsets = [0, 32], sizes = [16, 32], strides = [1, 1]} : vector<16x128xf32> to vector<16x32xf32>
    %173 = vector.extract_strided_slice %149 {offsets = [0, 32], sizes = [16, 32], strides = [1, 1]} : vector<16x128xf32> to vector<16x32xf32>
    %174 = vector.extract_strided_slice %151 {offsets = [0, 32], sizes = [16, 32], strides = [1, 1]} : vector<16x128xf32> to vector<16x32xf32>
    %cst_84 = arith.constant dense<0.000000e+00> : vector<16x16xf32>
    %175 = tpu.matmul %172, %173, %cst_84 {dimension_numbers = #tpu.dot_dimension_numbers<[1], [1], [0], [0], [0, 0, 1, 0], [], []>} : vector<16x32xf32>, vector<16x32xf32>, vector<16x16xf32> -> vector<16x16xf32>
    %cst_85 = arith.constant 0.176776692 : f32
    %176 = vector.broadcast %cst_85 : f32 to vector<16x16xf32>
    %177 = arith.mulf %175, %176 : vector<16x16xf32>
    %cst_86 = arith.constant 0.000000e+00 : f32
    %178 = vector.broadcast %cst_86 : f32 to vector<16x16xf32>
    %179 = arith.cmpf oeq, %5, %178 : vector<16x16xf32>
    %cst_87 = arith.constant -1.000000e+09 : f32
    %180 = vector.broadcast %cst_87 : f32 to vector<16x16xf32>
    %181 = arith.select %179, %180, %177 : vector<16x16xi1>, vector<16x16xf32>
    %cst_88 = arith.constant dense<0xFF800000> : vector<16xf32>
    %182 = vector.multi_reduction <maximumf>, %181, %cst_88 [1] : vector<16x16xf32> to vector<16xf32>
    %183 = vector.shape_cast %182 : vector<16xf32> to vector<16x1xf32>
    %184 = vector.broadcast %183 : vector<16x1xf32> to vector<16x16xf32>
    %185 = arith.subf %181, %184 : vector<16x16xf32>
    %186 = math.exp %185 : vector<16x16xf32>
    %cst_89 = arith.constant dense<0.000000e+00> : vector<16xf32>
    %187 = vector.multi_reduction <add>, %186, %cst_89 [1] : vector<16x16xf32> to vector<16xf32>
    %188 = vector.shape_cast %187 : vector<16xf32> to vector<16x1xf32>
    %189 = vector.broadcast %188 : vector<16x1xf32> to vector<16x16xf32>
    %190 = arith.divf %186, %189 : vector<16x16xf32>
    %cst_90 = arith.constant dense<0.000000e+00> : vector<16x32xf32>
    %191 = tpu.matmul %190, %174, %cst_90 {dimension_numbers = #tpu.dot_dimension_numbers<[1], [0], [0], [1], [0, 0, 1, 1], [], []>} : vector<16x16xf32>, vector<16x32xf32>, vector<16x32xf32> -> vector<16x32xf32>
    %192 = vector.extract_strided_slice %147 {offsets = [0, 64], sizes = [16, 32], strides = [1, 1]} : vector<16x128xf32> to vector<16x32xf32>
    %193 = vector.extract_strided_slice %149 {offsets = [0, 64], sizes = [16, 32], strides = [1, 1]} : vector<16x128xf32> to vector<16x32xf32>
    %194 = vector.extract_strided_slice %151 {offsets = [0, 64], sizes = [16, 32], strides = [1, 1]} : vector<16x128xf32> to vector<16x32xf32>
    %cst_91 = arith.constant dense<0.000000e+00> : vector<16x16xf32>
    %195 = tpu.matmul %192, %193, %cst_91 {dimension_numbers = #tpu.dot_dimension_numbers<[1], [1], [0], [0], [0, 0, 1, 0], [], []>} : vector<16x32xf32>, vector<16x32xf32>, vector<16x16xf32> -> vector<16x16xf32>
    %cst_92 = arith.constant 0.176776692 : f32
    %196 = vector.broadcast %cst_92 : f32 to vector<16x16xf32>
    %197 = arith.mulf %195, %196 : vector<16x16xf32>
    %cst_93 = arith.constant 0.000000e+00 : f32
    %198 = vector.broadcast %cst_93 : f32 to vector<16x16xf32>
    %199 = arith.cmpf oeq, %5, %198 : vector<16x16xf32>
    %cst_94 = arith.constant -1.000000e+09 : f32
    %200 = vector.broadcast %cst_94 : f32 to vector<16x16xf32>
    %201 = arith.select %199, %200, %197 : vector<16x16xi1>, vector<16x16xf32>
    %cst_95 = arith.constant dense<0xFF800000> : vector<16xf32>
    %202 = vector.multi_reduction <maximumf>, %201, %cst_95 [1] : vector<16x16xf32> to vector<16xf32>
    %203 = vector.shape_cast %202 : vector<16xf32> to vector<16x1xf32>
    %204 = vector.broadcast %203 : vector<16x1xf32> to vector<16x16xf32>
    %205 = arith.subf %201, %204 : vector<16x16xf32>
    %206 = math.exp %205 : vector<16x16xf32>
    %cst_96 = arith.constant dense<0.000000e+00> : vector<16xf32>
    %207 = vector.multi_reduction <add>, %206, %cst_96 [1] : vector<16x16xf32> to vector<16xf32>
    %208 = vector.shape_cast %207 : vector<16xf32> to vector<16x1xf32>
    %209 = vector.broadcast %208 : vector<16x1xf32> to vector<16x16xf32>
    %210 = arith.divf %206, %209 : vector<16x16xf32>
    %cst_97 = arith.constant dense<0.000000e+00> : vector<16x32xf32>
    %211 = tpu.matmul %210, %194, %cst_97 {dimension_numbers = #tpu.dot_dimension_numbers<[1], [0], [0], [1], [0, 0, 1, 1], [], []>} : vector<16x16xf32>, vector<16x32xf32>, vector<16x32xf32> -> vector<16x32xf32>
    %212 = vector.extract_strided_slice %147 {offsets = [0, 96], sizes = [16, 32], strides = [1, 1]} : vector<16x128xf32> to vector<16x32xf32>
    %213 = vector.extract_strided_slice %149 {offsets = [0, 96], sizes = [16, 32], strides = [1, 1]} : vector<16x128xf32> to vector<16x32xf32>
    %214 = vector.extract_strided_slice %151 {offsets = [0, 96], sizes = [16, 32], strides = [1, 1]} : vector<16x128xf32> to vector<16x32xf32>
    %cst_98 = arith.constant dense<0.000000e+00> : vector<16x16xf32>
    %215 = tpu.matmul %212, %213, %cst_98 {dimension_numbers = #tpu.dot_dimension_numbers<[1], [1], [0], [0], [0, 0, 1, 0], [], []>} : vector<16x32xf32>, vector<16x32xf32>, vector<16x16xf32> -> vector<16x16xf32>
    %cst_99 = arith.constant 0.176776692 : f32
    %216 = vector.broadcast %cst_99 : f32 to vector<16x16xf32>
    %217 = arith.mulf %215, %216 : vector<16x16xf32>
    %cst_100 = arith.constant 0.000000e+00 : f32
    %218 = vector.broadcast %cst_100 : f32 to vector<16x16xf32>
    %219 = arith.cmpf oeq, %5, %218 : vector<16x16xf32>
    %cst_101 = arith.constant -1.000000e+09 : f32
    %220 = vector.broadcast %cst_101 : f32 to vector<16x16xf32>
    %221 = arith.select %219, %220, %217 : vector<16x16xi1>, vector<16x16xf32>
    %cst_102 = arith.constant dense<0xFF800000> : vector<16xf32>
    %222 = vector.multi_reduction <maximumf>, %221, %cst_102 [1] : vector<16x16xf32> to vector<16xf32>
    %223 = vector.shape_cast %222 : vector<16xf32> to vector<16x1xf32>
    %224 = vector.broadcast %223 : vector<16x1xf32> to vector<16x16xf32>
    %225 = arith.subf %221, %224 : vector<16x16xf32>
    %226 = math.exp %225 : vector<16x16xf32>
    %cst_103 = arith.constant dense<0.000000e+00> : vector<16xf32>
    %227 = vector.multi_reduction <add>, %226, %cst_103 [1] : vector<16x16xf32> to vector<16xf32>
    %228 = vector.shape_cast %227 : vector<16xf32> to vector<16x1xf32>
    %229 = vector.broadcast %228 : vector<16x1xf32> to vector<16x16xf32>
    %230 = arith.divf %226, %229 : vector<16x16xf32>
    %cst_104 = arith.constant dense<0.000000e+00> : vector<16x32xf32>
    %231 = tpu.matmul %230, %214, %cst_104 {dimension_numbers = #tpu.dot_dimension_numbers<[1], [0], [0], [1], [0, 0, 1, 1], [], []>} : vector<16x16xf32>, vector<16x32xf32>, vector<16x32xf32> -> vector<16x32xf32>
    %232 = tpu.concatenate %171, %191, %211, %231 in 1 : vector<16x32xf32>, vector<16x32xf32>, vector<16x32xf32>, vector<16x32xf32> -> vector<16x128xf32>
    %c0_105 = arith.constant 0 : index
    %c0_106 = arith.constant 0 : index
    %233 = vector.load %arg16[%c0_105, %c0_106] : memref<128x128xf32, #tpu.memory_space<vmem>>, vector<128x128xf32>
    %cst_107 = arith.constant dense<0.000000e+00> : vector<16x128xf32>
    %234 = tpu.matmul %232, %233, %cst_107 {dimension_numbers = #tpu.dot_dimension_numbers<[1], [0], [0], [1], [0, 0, 1, 1], [], []>} : vector<16x128xf32>, vector<128x128xf32>, vector<16x128xf32> -> vector<16x128xf32>
    %235 = arith.addf %121, %234 : vector<16x128xf32>
    %cst_108 = arith.constant dense<0.000000e+00> : vector<16xf32>
    %236 = vector.multi_reduction <add>, %235, %cst_108 [1] : vector<16x128xf32> to vector<16xf32>
    %237 = vector.shape_cast %236 : vector<16xf32> to vector<16x1xf32>
    %cst_109 = arith.constant 1.280000e+02 : f32
    %238 = vector.broadcast %cst_109 : f32 to vector<16x1xf32>
    %239 = arith.divf %237, %238 : vector<16x1xf32>
    %240 = vector.broadcast %239 : vector<16x1xf32> to vector<16x128xf32>
    %241 = arith.subf %235, %240 : vector<16x128xf32>
    %242 = arith.mulf %241, %241 : vector<16x128xf32>
    %cst_110 = arith.constant dense<0.000000e+00> : vector<16xf32>
    %243 = vector.multi_reduction <add>, %242, %cst_110 [1] : vector<16x128xf32> to vector<16xf32>
    %244 = vector.shape_cast %243 : vector<16xf32> to vector<16x1xf32>
    %cst_111 = arith.constant 0.00787401571 : f32
    %245 = vector.broadcast %cst_111 : f32 to vector<16x1xf32>
    %246 = arith.mulf %244, %245 : vector<16x1xf32>
    %247 = math.sqrt %246 : vector<16x1xf32>
    %c0_112 = arith.constant 0 : index
    %c0_113 = arith.constant 0 : index
    %248 = vector.load %arg17[%c0_112, %c0_113] : memref<1x128xf32, #tpu.memory_space<vmem>>, vector<1x128xf32>
    %249 = vector.broadcast %239 : vector<16x1xf32> to vector<16x128xf32>
    %250 = arith.subf %235, %249 : vector<16x128xf32>
    %251 = vector.broadcast %248 : vector<1x128xf32> to vector<16x128xf32>
    %252 = arith.mulf %251, %250 : vector<16x128xf32>
    %cst_114 = arith.constant 9.99999997E-7 : f32
    %253 = vector.broadcast %cst_114 : f32 to vector<16x1xf32>
    %254 = arith.addf %247, %253 : vector<16x1xf32>
    %255 = vector.broadcast %254 : vector<16x1xf32> to vector<16x128xf32>
    %256 = arith.divf %252, %255 : vector<16x128xf32>
    %c0_115 = arith.constant 0 : index
    %c0_116 = arith.constant 0 : index
    %257 = vector.load %arg18[%c0_115, %c0_116] : memref<1x128xf32, #tpu.memory_space<vmem>>, vector<1x128xf32>
    %258 = vector.broadcast %257 : vector<1x128xf32> to vector<16x128xf32>
    %259 = arith.addf %256, %258 : vector<16x128xf32>
    %c0_117 = arith.constant 0 : index
    %c0_118 = arith.constant 0 : index
    %260 = vector.load %arg19[%c0_117, %c0_118] : memref<128x256xf32, #tpu.memory_space<vmem>>, vector<128x256xf32>
    %cst_119 = arith.constant dense<0.000000e+00> : vector<16x256xf32>
    %261 = tpu.matmul %259, %260, %cst_119 {dimension_numbers = #tpu.dot_dimension_numbers<[1], [0], [0], [1], [0, 0, 1, 1], [], []>} : vector<16x128xf32>, vector<128x256xf32>, vector<16x256xf32> -> vector<16x256xf32>
    %c0_120 = arith.constant 0 : index
    %c0_121 = arith.constant 0 : index
    %262 = vector.load %arg20[%c0_120, %c0_121] : memref<1x256xf32, #tpu.memory_space<vmem>>, vector<1x256xf32>
    %263 = vector.broadcast %262 : vector<1x256xf32> to vector<16x256xf32>
    %264 = arith.addf %261, %263 : vector<16x256xf32>
    %cst_122 = arith.constant 0.000000e+00 : f32
    %265 = vector.broadcast %cst_122 : f32 to vector<16x256xf32>
    %266 = arith.maximumf %264, %265 : vector<16x256xf32>
    %c0_123 = arith.constant 0 : index
    %c0_124 = arith.constant 0 : index
    %267 = vector.load %arg21[%c0_123, %c0_124] : memref<256x128xf32, #tpu.memory_space<vmem>>, vector<256x128xf32>
    %cst_125 = arith.constant dense<0.000000e+00> : vector<16x128xf32>
    %268 = tpu.matmul %266, %267, %cst_125 {dimension_numbers = #tpu.dot_dimension_numbers<[1], [0], [0], [1], [0, 0, 1, 1], [], []>} : vector<16x256xf32>, vector<256x128xf32>, vector<16x128xf32> -> vector<16x128xf32>
    %c0_126 = arith.constant 0 : index
    %c0_127 = arith.constant 0 : index
    %269 = vector.load %arg22[%c0_126, %c0_127] : memref<1x128xf32, #tpu.memory_space<vmem>>, vector<1x128xf32>
    %270 = vector.broadcast %269 : vector<1x128xf32> to vector<16x128xf32>
    %271 = arith.addf %268, %270 : vector<16x128xf32>
    %272 = arith.addf %235, %271 : vector<16x128xf32>
    %c0_128 = arith.constant 0 : index
    %c0_129 = arith.constant 0 : index
    %c0_130 = arith.constant 0 : index
    %273 = vector.load %arg23[%c0_128, %c0_129, %c0_130] : memref<1x16x128xf32, #tpu.memory_space<vmem>>, vector<1x16x128xf32>
    %274 = vector.shape_cast %273 : vector<1x16x128xf32> to vector<16x128xf32>
    %275 = vector.shape_cast %272 : vector<16x128xf32> to vector<1x16x128xf32>
    tpu.vector_store %arg23[%c0_128, %c0_129, %c0_130], %275 {strides = array<i32>} : memref<1x16x128xf32, #tpu.memory_space<vmem>>, vector<1x16x128xf32>,
    return
  }
  func.func @transform_0(%arg0: i32) -> (i32, i32, i32) {
    %c0_i32 = arith.constant 0 : i32
    %c0_i32_0 = arith.constant 0 : i32
    %c0_i32_1 = arith.constant 0 : i32
    return %arg0, %c0_i32, %c0_i32_0 : i32, i32, i32
  }
  func.func @transform_1(%arg0: i32) -> (i32, i32, i32) {
    %c0_i32 = arith.constant 0 : i32
    %c0_i32_0 = arith.constant 0 : i32
    %c0_i32_1 = arith.constant 0 : i32
    return %arg0, %c0_i32, %c0_i32_0 : i32, i32, i32
  }
  func.func @transform_2(%arg0: i32) -> (i32, i32, i32) {
    %c0_i32 = arith.constant 0 : i32
    %c0_i32_0 = arith.constant 0 : i32
    %c0_i32_1 = arith.constant 0 : i32
    return %arg0, %c0_i32, %c0_i32_0 : i32, i32, i32
  }
  func.func @transform_3(%arg0: i32) -> (i32, i32, i32) {
    %c0_i32 = arith.constant 0 : i32
    %c0_i32_0 = arith.constant 0 : i32
    %c0_i32_1 = arith.constant 0 : i32
    return %arg0, %c0_i32, %c0_i32_0 : i32, i32, i32
  }
  func.func @transform_4(%arg0: i32) -> (i32, i32) {
    %c0_i32 = arith.constant 0 : i32
    %c0_i32_0 = arith.constant 0 : i32
    %c0_i32_1 = arith.constant 0 : i32
    return %c0_i32, %c0_i32_0 : i32, i32
  }
  func.func @transform_5(%arg0: i32) -> (i32, i32) {
    %c0_i32 = arith.constant 0 : i32
    %c0_i32_0 = arith.constant 0 : i32
    %c0_i32_1 = arith.constant 0 : i32
    return %c0_i32, %c0_i32_0 : i32, i32
  }
  func.func @transform_6(%arg0: i32) -> (i32, i32) {
    %c0_i32 = arith.constant 0 : i32
    %c0_i32_0 = arith.constant 0 : i32
    %c0_i32_1 = arith.constant 0 : i32
    return %c0_i32, %c0_i32_0 : i32, i32
  }
  func.func @transform_7(%arg0: i32) -> (i32, i32) {
    %c0_i32 = arith.constant 0 : i32
    %c0_i32_0 = arith.constant 0 : i32
    %c0_i32_1 = arith.constant 0 : i32
    return %c0_i32, %c0_i32_0 : i32, i32
  }
  func.func @transform_8(%arg0: i32) -> (i32, i32) {
    %c0_i32 = arith.constant 0 : i32
    %c0_i32_0 = arith.constant 0 : i32
    %c0_i32_1 = arith.constant 0 : i32
    return %c0_i32, %c0_i32_0 : i32, i32
  }
  func.func @transform_9(%arg0: i32) -> (i32, i32) {
    %c0_i32 = arith.constant 0 : i32
    %c0_i32_0 = arith.constant 0 : i32
    %c0_i32_1 = arith.constant 0 : i32
    return %c0_i32, %c0_i32_0 : i32, i32
  }
  func.func @transform_10(%arg0: i32) -> (i32, i32) {
    %c0_i32 = arith.constant 0 : i32
    %c0_i32_0 = arith.constant 0 : i32
    %c0_i32_1 = arith.constant 0 : i32
    return %c0_i32, %c0_i32_0 : i32, i32
  }
  func.func @transform_11(%arg0: i32) -> (i32, i32) {
    %c0_i32 = arith.constant 0 : i32
    %c0_i32_0 = arith.constant 0 : i32
    %c0_i32_1 = arith.constant 0 : i32
    return %c0_i32, %c0_i32_0 : i32, i32
  }
  func.func @transform_12(%arg0: i32) -> (i32, i32) {
    %c0_i32 = arith.constant 0 : i32
    %c0_i32_0 = arith.constant 0 : i32
    %c0_i32_1 = arith.constant 0 : i32
    return %c0_i32, %c0_i32_0 : i32, i32
  }
  func.func @transform_13(%arg0: i32) -> (i32, i32) {
    %c0_i32 = arith.constant 0 : i32
    %c0_i32_0 = arith.constant 0 : i32
    %c0_i32_1 = arith.constant 0 : i32
    return %c0_i32, %c0_i32_0 : i32, i32
  }
  func.func @transform_14(%arg0: i32) -> (i32, i32) {
    %c0_i32 = arith.constant 0 : i32
    %c0_i32_0 = arith.constant 0 : i32
    %c0_i32_1 = arith.constant 0 : i32
    return %c0_i32, %c0_i32_0 : i32, i32
  }
  func.func @transform_15(%arg0: i32) -> (i32, i32) {
    %c0_i32 = arith.constant 0 : i32
    %c0_i32_0 = arith.constant 0 : i32
    %c0_i32_1 = arith.constant 0 : i32
    return %c0_i32, %c0_i32_0 : i32, i32
  }
  func.func @transform_16(%arg0: i32) -> (i32, i32) {
    %c0_i32 = arith.constant 0 : i32
    %c0_i32_0 = arith.constant 0 : i32
    %c0_i32_1 = arith.constant 0 : i32
    return %c0_i32, %c0_i32_0 : i32, i32
  }
  func.func @transform_17(%arg0: i32) -> (i32, i32) {
    %c0_i32 = arith.constant 0 : i32
    %c0_i32_0 = arith.constant 0 : i32
    %c0_i32_1 = arith.constant 0 : i32
    return %c0_i32, %c0_i32_0 : i32, i32
  }
  func.func @transform_18(%arg0: i32) -> (i32, i32) {
    %c0_i32 = arith.constant 0 : i32
    %c0_i32_0 = arith.constant 0 : i32
    %c0_i32_1 = arith.constant 0 : i32
    return %c0_i32, %c0_i32_0 : i32, i32
  }
  func.func @transform_19(%arg0: i32) -> (i32, i32) {
    %c0_i32 = arith.constant 0 : i32
    %c0_i32_0 = arith.constant 0 : i32
    %c0_i32_1 = arith.constant 0 : i32
    return %c0_i32, %c0_i32_0 : i32, i32
  }
  func.func @transform_20(%arg0: i32) -> (i32, i32) {
    %c0_i32 = arith.constant 0 : i32
    %c0_i32_0 = arith.constant 0 : i32
    %c0_i32_1 = arith.constant 0 : i32
    return %c0_i32, %c0_i32_0 : i32, i32
  }
  func.func @transform_21(%arg0: i32) -> (i32, i32) {
    %c0_i32 = arith.constant 0 : i32
    %c0_i32_0 = arith.constant 0 : i32
    %c0_i32_1 = arith.constant 0 : i32
    return %c0_i32, %c0_i32_0 : i32, i32
  }
  func.func @transform_22(%arg0: i32) -> (i32, i32, i32) {
    %c0_i32 = arith.constant 0 : i32
    %c0_i32_0 = arith.constant 0 : i32
    %c0_i32_1 = arith.constant 0 : i32
    return %arg0, %c0_i32, %c0_i32_0 : i32, i32, i32
  }
}

</mosaic_0001>

<bundles_post_ra>
// kernel: tpu_custom_call.1
= control target key start
LH: loop header
LB: loop body
LE: loop exit
PB: predicated region body
PF: predicated region fallthrough
CT: control target
= control target key end

     0   :  { %s6522_s0 = inlined_call_operand.hbm [shape: f32[2,16,128], index: 0, kind: input, shape index: {}]   ;;  %s6523_s1 = inlined_call_operand.hbm [shape: f32[2,16,128], index: 1, kind: input, shape index: {}]   ;;  %s6524_s2 = inlined_call_operand.hbm [shape: f32[2,16,16], index: 2, kind: input, shape index: {}]   ;;  %s6525_s3 = inlined_call_operand.hbm [shape: f32[2,16,16], index: 3, kind: input, shape index: {}]   ;;  %s6526_s4 = inlined_call_operand.vmem [shape: f32[1,128], index: 4, kind: input, shape index: {}]   ;;  %s6527_s5 = inlined_call_operand.vmem [shape: f32[1,128], index: 5, kind: input, shape index: {}]   ;;  %s6528_s6 = inlined_call_operand.hbm [shape: f32[128,128], index: 6, kind: input, shape index: {}]   ;;  %s6529_s7 = inlined_call_operand.hbm [shape: f32[128,128], index: 7, kind: input, shape index: {}]   ;;  %s6530_s8 = inlined_call_operand.hbm [shape: f32[128,128], index: 8, kind: input, shape index: {}]   ;;  %s6531_s9 = inlined_call_operand.hbm [shape: f32[128,128], index: 9, kind: input, shape index: {}]   ;;  %s6532_s10 = inlined_call_operand.vmem [shape: f32[1,128], index: 10, kind: input, shape index: {}]   ;;  %s6533_s11 = inlined_call_operand.vmem [shape: f32[1,128], index: 11, kind: input, shape index: {}]   ;;  %s6534_s12 = inlined_call_operand.hbm [shape: f32[128,128], index: 12, kind: input, shape index: {}]   ;;  %s6535_s13 = inlined_call_operand.hbm [shape: f32[128,128], index: 13, kind: input, shape index: {}]   ;;  %s6536_s14 = inlined_call_operand.hbm [shape: f32[128,128], index: 14, kind: input, shape index: {}]   ;;  %s6537_s15 = inlined_call_operand.hbm [shape: f32[128,128], index: 15, kind: input, shape index: {}]   ;;  %s6538_s16 = inlined_call_operand.vmem [shape: f32[1,128], index: 16, kind: input, shape index: {}]   ;;  %s6539_s17 = inlined_call_operand.vmem [shape: f32[1,128], index: 17, kind: input, shape index: {}]   ;;  %s6540_s18 = inlined_call_operand.hbm [shape: f32[128,256], index: 18, kind: input, shape index: {}]   ;;  %s6541_s19 = inlined_call_operand.vmem [shape: f32[1,256], index: 19, kind: input, shape index: {}]   ;;  %s6542_s20 = inlined_call_operand.hbm [shape: f32[256,128], index: 20, kind: input, shape index: {}]   ;;  %s6543_s21 = inlined_call_operand.vmem [shape: f32[1,128], index: 21, kind: input, shape index: {}]   ;;  %s6544_s22 = inlined_call_operand.hbm [shape: f32[2,16,128], index: 22, kind: output, shape index: {}]  }
   0x1   :  { %6572 = sst [smem:[#allocation41_spill]] %s6522_s0 }
   0x2   :  { %6573 = sst [smem:[#allocation42_spill]] %s6523_s1 }
   0x3   :  { %6574 = sst [smem:[#allocation43_spill]] %s6524_s2 }
   0x4   :  { %6575 = sst [smem:[#allocation44_spill]] %s6525_s3 }
   0x5   :  { %6576 = sst [smem:[#allocation45_spill]] %s6526_s4 }
   0x6   :  { %6577 = sst [smem:[#allocation46_spill]] %s6527_s5 }
   0x7   :  { %6578 = sst [smem:[#allocation47_spill]] %s6528_s6 }
   0x8   :  { %6579 = sst [smem:[#allocation48_spill]] %s6529_s7 }
   0x9   :  { %6580 = sst [smem:[#allocation49_spill]] %s6530_s8 }
   0xa   :  { %6581 = sst [smem:[#allocation50_spill]] %s6531_s9 }
   0xb   :  { %6582 = sst [smem:[#allocation51_spill]] %s6534_s12 }
   0xc   :  { %6583 = sst [smem:[#allocation52_spill]] %s6535_s13 }
   0xd   :  { %6584 = sst [smem:[#allocation53_spill]] %s6536_s14 }
   0xe   :  { %6585 = sst [smem:[#allocation54_spill]] %s6537_s15 }
   0xf   :  { %6586 = sst [smem:[#allocation55_spill]] %s6538_s16 }
  0x10   :  { %6587 = sst [smem:[#allocation56_spill]] %s6539_s17 }
  0x11   :  { %6588 = sst [smem:[#allocation57_spill]] %s6540_s18 }
  0x12   :  { %6589 = sst [smem:[#allocation58_spill]] %s6541_s19 }
  0x13   :  { %6590 = sst [smem:[#allocation59_spill]] %s6542_s20 }
  0x14   :  { %6591 = sst [smem:[#allocation60_spill]] %s6543_s21 }
  0x15   :  { %6592 = sst [smem:[#allocation61_spill]] %s6544_s22 }
  0x16   :  { %27 = vsyncpa [#allocation3], 0 }
  0x17   :  { %29 = vsyncpa [#allocation3 + $0x1], 0 }
  0x18   :  { %30 = vsyncpa [#allocation6], 0 }
  0x19   :  { %32 = vsyncpa [#allocation6 + $0x1], 0 }
  0x1a   :  { %33 = vsyncpa [#allocation9], 0 }
  0x1b   :  { %35 = vsyncpa [#allocation9 + $0x1], 0 }
  0x1c   :  { %36 = vsyncpa [#allocation12], 0 }
  0x1d   :  { %37 = vsyncpa [#allocation15], 0 }
  0x1e   :  { %38 = vsyncpa [#allocation18], 0 }
  0x1f   :  { %39 = vsyncpa [#allocation21], 0 }
  0x20   :  { %40 = vsyncpa [#allocation24], 0 }
  0x21   :  { %41 = vsyncpa [#allocation4], 0 }
  0x22   :  { %43 = vsyncpa [#allocation4 + $0x1], 0  ;;  %s5686_s3 = smov 0   ;;  %s5688_s28 = smov 0  }
  0x23   :  { %s5690_s29 = smov 0   ;;  %s5692_s30 = smov 0  }
  0x24 LB: > { %6593 = sst [smem:[#allocation36_spill]] %s5532_s3  ;;  %s5546_s4 = smov [#allocation10]   ;;  %s5544_s30 = sphi %s5692_s30, %s6653_s30   ;;  %s5540_s29 = sphi %s5690_s29, %s6657_s29   ;;  %s5536_s28 = sphi %s5688_s28, %s6656_s28   ;;  %s5532_s3 = sphi %s5686_s3, %s6655_s3  }
  0x25   : > { %s580_s0 = sshll.u32 %s5546_s4, 4  ;;  %s5707_s23 = sadd.s32 4294967295, %s5544_s30   ;;  %s581_s0 = int_to_ptr.vmem [resolvable:$true] %s580_s0 }
  0x26   : > { %p4043_p0 = scmp.ge.s32.totalorder %s5544_s30, 1  ;;  %p6562_p1 = scmp.eq.s32.totalorder %s5707_s23, 0 }
  0x27   : > { %p562_p2 = scmp.lt.s32.totalorder %s5544_s30, 3  ;;  %s5547_s5 = smov [#allocation11]  }
  0x28   : > { %s593_s24 = sshll.u32 %s5547_s5, 4  ;;  %s5548_s25 = smov [#allocation14]   ;;  %s5725_s24 = int_to_ptr.vmem [resolvable:$true] %s593_s24 }
  0x29   : > { %p5712_p3 = pnand %p4043_p0, %p562_p2  ;;  %s619_s26 = sshll.u32 %s5548_s25, 4  ;;  %s5727_s26 = int_to_ptr.vmem [resolvable:$true] %s619_s26 }
  0x2a   : > { %s5087_s27 = scalar_lea.vmem %s581_s0, 2048  ;;  %p5095_p11 = scmp.lt.s32.totalorder %s581_s0, %s581_s0 }
  0x2b   : > { %s6594_s1 = scalar_select %p5712_p3, 1, 0 }
  0x2c   : > { %p4836_p5 = pneg %p5712_p3  ;;  %p5088_p8 = scmp.ne.s32.totalorder %s581_s0, %s5087_s27 }
  0x2d   : > { %p5096_p12 = scmp.lt.s32.totalorder %s5087_s27, %s5087_s27 }
  0x2e   : > { %p5721_p6 = pnand %p4836_p5, %p6562_p1 }
  0x2f   : > { %p5097_p13 = por %p5096_p12, %p5095_p11 }
  0x30   : > { %s6595_s6 = scalar_select %p5721_p6, 1, 0 }
  0x31   : > { %p5731_p7 = pneg %p5721_p6 }
  0x33   : > { %s6596_s2 = scalar_select %p5731_p7, 1, 0 }
  0x34   : > { %p5090_p9 = pnand %p5088_p8, %p5731_p7 }
  0x36   : > { %p5091_p10 = pneg %p5090_p9 }
  0x38   : > { %p5098_p0 = pnand %p5097_p13, %p5091_p10 }
  0x3a   : > { %5101 = shalt.err (!%p5098_p0)
}
  0x3b   : > { %s6551_s4 = smov 128   ;;  %s6553_s5 = smov 8  }
  0x3c   : > { %s6597_s21 = sld [smem:[#allocation47_spill]]  ;;  %s5113_s19 = scalar_lea.vmem %s5725_s24, 2048 }
  0x3d   : > { %p5114_p2 = scmp.ne.s32.totalorder %s5725_s24, %s5113_s19  ;;  %p5121_p9 = scmp.lt.s32.totalorder %s5725_s24, %s5725_s24 }
  0x3e   : > { %p5122_p10 = scmp.lt.s32.totalorder %s5113_s19, %s5113_s19 }
  0x3f   : > { %p5116_p5 = pnand %p5114_p2, %p5731_p7 }
  0x40   : > { %p5123_p11 = por %p5122_p10, %p5121_p9 }
  0x41   : > { %p5117_p8 = pneg %p5116_p5 }
  0x42   : > { %4839 = dma.hbm_to_vmem [thread:$0]  (!%p5721_p6), %s6597_s21, 2048, %s581_s0, [#allocation9], %s6551_s4, %s6551_s4, %s6553_s5  }
  0x43   : > { %p5124_p12 = pnand %p5123_p11, %p5117_p8 }
  0x45   : > { %5127 = shalt.err (!%p5124_p12)
}
  0x46   : > { %s6598_s7 = sld [smem:[#allocation48_spill]]  ;;  %s5139_s21 = scalar_lea.vmem %s5727_s26, 2048 }
  0x47   : > { %p5140_p13 = scmp.ne.s32.totalorder %s5727_s26, %s5139_s21  ;;  %p5147_p5 = scmp.lt.s32.totalorder %s5727_s26, %s5727_s26 }
  0x48   : > { %p5148_p8 = scmp.lt.s32.totalorder %s5139_s21, %s5139_s21 }
  0x49   : > { %p5142_p0 = pnand %p5140_p13, %p5731_p7 }
  0x4a   : > { %p5149_p9 = por %p5148_p8, %p5147_p5 }
  0x4b   : > { %p5143_p2 = pneg %p5142_p0 }
  0x4c   : > { %4842 = dma.hbm_to_vmem [thread:$0]  (!%p5721_p6), %s6598_s7, 2048, %s5725_s24, [#allocation12], %s6551_s4, %s6551_s4, %s6553_s5  }
  0x4d   : > { %p5150_p10 = pnand %p5149_p9, %p5143_p2 }
  0x4f   : > { %5153 = shalt.err (!%p5150_p10)
}
  0x50   : > { %s6599_s9 = sld [smem:[#allocation50_spill]]  ;;  %s5551_s24 = smov [#allocation17]  }
  0x51   : > { %s651_s25 = sshll.u32 %s5551_s24, 4  ;;  %s5552_s27 = smov [#allocation20]   ;;  %s652_s25 = int_to_ptr.vmem [resolvable:$true] %s651_s25 }
  0x52   : > { %s677_s22 = sshll.u32 %s5552_s27, 4  ;;  %s5165_s21 = scalar_lea.vmem %s652_s25, 2048  ;;  %s678_s22 = int_to_ptr.vmem [resolvable:$true] %s677_s22 }
  0x53   : > { %p5166_p11 = scmp.ne.s32.totalorder %s652_s25, %s5165_s21  ;;  %p5173_p0 = scmp.lt.s32.totalorder %s652_s25, %s652_s25 }
  0x54   : > { %p5174_p2 = scmp.lt.s32.totalorder %s5165_s21, %s5165_s21 }
  0x55   : > { %p5168_p12 = pnand %p5166_p11, %p5731_p7 }
  0x56   : > { %4848 = dma.hbm_to_vmem [thread:$0]  (!%p5721_p6), %s6599_s9, 2048, %s5727_s26, [#allocation15], %s6551_s4, %s6551_s4, %s6553_s5  }
  0x57   : > { %p5169_p13 = pneg %p5168_p12  ;;  %p5175_p5 = por %p5174_p2, %p5173_p0 }
  0x59   : > { %p5176_p8 = pnand %p5175_p5, %p5169_p13 }
  0x5b   : > { %5179 = shalt.err (!%p5176_p8)
}
  0x5c   : > { %s6600_s13 = sld [smem:[#allocation52_spill]]  ;;  %s5191_s0 = scalar_lea.vmem %s678_s22, 2048 }
  0x5d   : > { %p5192_p9 = scmp.ne.s32.totalorder %s678_s22, %s5191_s0  ;;  %p5199_p12 = scmp.lt.s32.totalorder %s678_s22, %s678_s22 }
  0x5e   : > { %p5200_p0 = scmp.lt.s32.totalorder %s5191_s0, %s5191_s0 }
  0x5f   : > { %p5194_p10 = pnand %p5192_p9, %p5731_p7 }
  0x60   : > { %p5201_p13 = por %p5200_p0, %p5199_p12 }
  0x61   : > { %p5195_p11 = pneg %p5194_p10 }
  0x62   : > { %4854 = dma.hbm_to_vmem [thread:$0]  (!%p5721_p6), %s6600_s13, 2048, %s652_s25, [#allocation18], %s6551_s4, %s6551_s4, %s6553_s5  }
  0x63   : > { %p5202_p2 = pnand %p5201_p13, %p5195_p11 }
  0x65   : > { %5205 = shalt.err (!%p5202_p2)
}
  0x66   : > { %s6601_s15 = sld [smem:[#allocation54_spill]]  ;;  %s4042_s25 = sadd.s32 4294967294, %s5544_s30  }
  0x67   : > { %s5797_s21 = sadd.s32 1, %s5544_s30   ;;  %s56_s26 = sadd.s32 1, %s5540_s29 }
  0x68   : > { %6602 = sst [smem:[#allocation37_spill]] %s5797_s21  ;;  %s53_s19 = ssub.s32 %s5544_s30, %s5797_s21 }
  0x69   : > { %p63_p5 = scmp.ne.s32.totalorder %s5540_s29, %s5536_s28  ;;  %p54_p8 = scmp.eq.s32.totalorder %s53_s19, 0 }
  0x6a   : > { %p64_p9 = scmp.eq.s32.totalorder %s5544_s30, 0  ;;  %p69_p10 = scmp.ne.s32.totalorder %s5536_s28, %s5532_s3 }
  0x6b   : > { %p549_p11 = scmp.eq.s32.totalorder %s5707_s23, 1  ;;  %p555_p2 = scmp.eq.s32.totalorder %s4042_s25, 1 }
  0x6c   : > { %4860 = dma.hbm_to_vmem [thread:$0]  (!%p5721_p6), %s6601_s15, 2048, %s678_s22, [#allocation21], %s6551_s4, %s6551_s4, %s6553_s5  }
  0x6d   : > { %s5809_s0 = scalar_select %p54_p8, %s5540_s29, %s56_s26  }
  0x6e   : > { %p65_p12 = por %p64_p9, %p63_p5  ;;  %p5813_p0 = por %p6562_p1, %p69_p10 }
  0x6f   : > { %6603 = sst [smem:[#allocation38_spill]] %s5809_s0  ;;  %p5817_p13 = por %p549_p11, %p63_p5 }
  0x70   : > { %s6604_s22 = scalar_select %p5813_p0, 1, 0 }
  0x71   : > { %s6605_s24 = scalar_select %p5817_p13, 1, 0 }
  0x72   : > { %p4894_p4 = scmp.lt.s32.totalorder %s5544_s30, 2  ;;  %s6555_s27 = sand.u32 1, %s5540_s29  }
  0x73   : > { %6606 = sst [smem:[#allocation39_spill]] %s6605_s24  ;;  %p5823_p3 = por %p555_p2, %p69_p10 }
  0x74   : > { %s5829_s26 = sshll.u32 %s6555_s27, 4  ;;  %s5832_s4 = sshll.u32 %s5544_s30, 8 }
  0x75   : > { %s6607_s19 = scalar_select %p5823_p3, 1, 0 }
  0x76   : > { %p5834_p8 = pnand %p4894_p4, %p65_p12  ;;  %s6563_s7 = sand.u32 1, %s5544_s30  }
  0x77   : > { %6608 = sst [smem:[#allocation40_spill]] %s6607_s19  ;;  %s754_s27 = scalar_lea.vmem [#allocation5], %s5829_s26 }
  0x78   : > { %s6610_s13 = sld [smem:[#allocation42_spill]]  ;;  %s761_s0 = sshll.u32 %s754_s27, 4  ;;  %s5846_s0 = int_to_ptr.vmem [resolvable:$true] %s761_s0 }
  0x79   : > { %s5850_s21 = scalar_lea.sflag [#allocation6], %s6563_s7  ;;  %p5856_p5 = pneg %p5834_p8 }
  0x7e   : > { %s5843_s15 = scalar_lea.hbm %s6610_s13, %s5832_s4  ;;  %s5211_s27 = scalar_lea.hbm %s6610_s13, 512 }
  0x7f   : > { %s5206_s19 = scalar_lea.hbm %s5843_s15, 256  ;;  %p5212_p11 = scmp.lt.s32.totalorder %s5843_s15, %s6610_s13 }
  0x80   : > { %p5207_p4 = scmp.ne.s32.totalorder %s5843_s15, %s5206_s19  ;;  %p5213_p12 = scmp.lt.s32.totalorder %s5211_s27, %s5206_s19 }
  0x82   : > { %p5209_p9 = pnand %p5856_p5, %p5207_p4  ;;  %p5214_p2 = por %p5213_p12, %p5212_p11 }
  0x84   : > { %p5210_p10 = pneg %p5209_p9 }
  0x86   : > { %p5215_p1 = pnand %p5214_p2, %p5210_p10 }
  0x88   : > { %5218 = shalt.err (!%p5215_p1)
}
  0x89   : > { %s5219_s7 = scalar_lea.vmem %s5846_s0, 256  ;;  %s5553_s16 = smov [#allocation5]  }
  0x8a   : > { %p5220_p3 = scmp.ne.s32.totalorder %s5846_s0, %s5219_s7  ;;  %s5224_s9 = sshll.u32 %s5553_s16, 4  ;;  %s5225_s9 = int_to_ptr.vmem [resolvable:$false] %s5224_s9 }
  0x8b   : > { %s5226_s25 = scalar_lea.vmem %s5225_s9, 512  ;;  %p5227_p13 = scmp.lt.s32.totalorder %s5846_s0, %s5225_s9 }
  0x8c   : > { %p5222_p4 = pnand %p5220_p3, %p5856_p5  ;;  %p5228_p0 = scmp.lt.s32.totalorder %s5226_s25, %s5219_s7 }
  0x8e   : > { %p5223_p9 = pneg %p5222_p4  ;;  %p5229_p6 = por %p5228_p0, %p5227_p13 }
  0x90   : > { %p5230_p7 = pnand %p5229_p6, %p5223_p9 }
  0x92   : > { %5233 = shalt.err (!%p5230_p7)
}
  0x93   : > { %s6612_s17 = smov 8   ;;  %s6613_s24 = smov 128  }
  0x94   : > { %4873 = dma.hbm_to_vmem [thread:$0]  (!%p5834_p8), %s5843_s15, 256, %s5846_s0, %s5850_s21, %s6613_s24, %s6613_s24, %s6612_s17  }
  0x95   : > { %s5554_s19 = smov [#allocation13]   ;;  %s5555_s16 = smov [#allocation16]  }
  0x96   : > { %s606_s27 = sshll.u32 %s5554_s19, 4  ;;  %s638_s13 = sshll.u32 %s5555_s16, 4  ;;  %s607_s27 = int_to_ptr.vmem [resolvable:$true] %s606_s27  ;;  %s639_s13 = int_to_ptr.vmem [resolvable:$true] %s638_s13 }
  0x97   : > { %s5245_s7 = scalar_lea.vmem %s607_s27, 2048  ;;  %p6614_p3 = scmp.ne.s32.totalorder %s6596_s2, 0 }
  0x98   : > { %p5246_p1 = scmp.ne.s32.totalorder %s607_s27, %s5245_s7  ;;  %p5253_p0 = scmp.lt.s32.totalorder %s607_s27, %s607_s27 }
  0x99   : > { %p5254_p13 = scmp.lt.s32.totalorder %s5245_s7, %s5245_s7 }
  0x9a   : > { %p5248_p6 = pnand %p5246_p1, %p6614_p3 }
  0x9b   : > { %p5255_p10 = por %p5254_p13, %p5253_p0 }
  0x9c   : > { %p5249_p7 = pneg %p5248_p6 }
  0x9e   : > { %p5256_p11 = pnand %p5255_p10, %p5249_p7 }
  0xa0   : > { %5259 = shalt.err (!%p5256_p11)
}
  0xa1   : > { %p6615_p12 = scmp.ne.s32.totalorder %s6595_s6, 0  ;;  %s6616_s8 = sld [smem:[#allocation49_spill]] }
  0xa2   : > { %s5271_s9 = scalar_lea.vmem %s639_s13, 2048  ;;  %p5279_p1 = scmp.lt.s32.totalorder %s639_s13, %s639_s13 }
  0xa3   : > { %p5272_p2 = scmp.ne.s32.totalorder %s639_s13, %s5271_s9  ;;  %p5280_p6 = scmp.lt.s32.totalorder %s5271_s9, %s5271_s9 }
  0xa5   : > { %p5274_p4 = pnand %p5272_p2, %p6614_p3  ;;  %p5281_p0 = por %p5280_p6, %p5279_p1 }
  0xa7   : > { %4845 = dma.hbm_to_vmem [thread:$0]  (!%p6615_p12), %s6616_s8, 2048, %s607_s27, [#allocation12], %s6613_s24, %s6613_s24, %s6612_s17  }
  0xa8   : > { %p5275_p9 = pneg %p5274_p4 }
  0xaa   : > { %p5282_p7 = pnand %p5281_p0, %p5275_p9 }
  0xac   : > { %5285 = shalt.err (!%p5282_p7)
}
  0xad   : > { %s6617_s12 = sld [smem:[#allocation51_spill]]  ;;  %s5556_s27 = smov [#allocation19]  }
  0xae   : > { %s664_s16 = sshll.u32 %s5556_s27, 4  ;;  %s5557_s7 = smov [#allocation22]   ;;  %s665_s16 = int_to_ptr.vmem [resolvable:$true] %s664_s16 }
  0xaf   : > { %s696_s15 = sshll.u32 %s5557_s7, 4  ;;  %s5297_s0 = scalar_lea.vmem %s665_s16, 2048  ;;  %s697_s15 = int_to_ptr.vmem [resolvable:$true] %s696_s15 }
  0xb0   : > { %p5298_p13 = scmp.ne.s32.totalorder %s665_s16, %s5297_s0  ;;  %p5305_p2 = scmp.lt.s32.totalorder %s665_s16, %s665_s16 }
  0xb1   : > { %p5306_p4 = scmp.lt.s32.totalorder %s5297_s0, %s5297_s0 }
  0xb2   : > { %p5300_p10 = pnand %p5298_p13, %p6614_p3 }
  0xb3   : > { %4851 = dma.hbm_to_vmem [thread:$0]  (!%p6615_p12), %s6617_s12, 2048, %s639_s13, [#allocation15], %s6613_s24, %s6613_s24, %s6612_s17  }
  0xb4   : > { %p5301_p11 = pneg %p5300_p10  ;;  %p5307_p9 = por %p5306_p4, %p5305_p2 }
  0xb6   : > { %p5308_p1 = pnand %p5307_p9, %p5301_p11 }
  0xb8   : > { %5311 = shalt.err (!%p5308_p1)
}
  0xb9   : > { %s6618_s14 = sld [smem:[#allocation53_spill]]  ;;  %s5323_s25 = scalar_lea.vmem %s697_s15, 4096 }
  0xba   : > { %p5324_p6 = scmp.ne.s32.totalorder %s697_s15, %s5323_s25  ;;  %p5331_p13 = scmp.lt.s32.totalorder %s697_s15, %s697_s15 }
  0xbb   : > { %p5332_p10 = scmp.lt.s32.totalorder %s5323_s25, %s5323_s25 }
  0xbc   : > { %p5326_p0 = pnand %p5324_p6, %p6614_p3 }
  0xbd   : > { %p5333_p2 = por %p5332_p10, %p5331_p13 }
  0xbe   : > { %p5327_p7 = pneg %p5326_p0 }
  0xbf   : > { %4857 = dma.hbm_to_vmem [thread:$0]  (!%p6615_p12), %s6618_s14, 2048, %s665_s16, [#allocation18], %s6613_s24, %s6613_s24, %s6612_s17  }
  0xc0   : > { %p5334_p11 = pnand %p5333_p2, %p5327_p7 }
  0xc2   : > { %5337 = shalt.err (!%p5334_p11)
}
  0xc3   : > { %s5558_s19 = smov 256   ;;  %s5559_s27 = smov 16  }
  0xc4   : > { %s6619_s18 = sld [smem:[#allocation57_spill]]  ;;  %s5560_s16 = smov [#allocation23]  }
  0xc5   : > { %s712_s13 = sshll.u32 %s5560_s16, 4  ;;  %s6620_s12 = sld [smem:[#allocation41_spill]]  ;;  %s713_s13 = int_to_ptr.vmem [resolvable:$true] %s712_s13 }
  0xc6   : > { %s5349_s14 = scalar_lea.vmem %s713_s13, 4096  ;;  %p5357_p6 = scmp.lt.s32.totalorder %s713_s13, %s713_s13 }
  0xc7   : > { %p5350_p4 = scmp.ne.s32.totalorder %s713_s13, %s5349_s14  ;;  %p5358_p0 = scmp.lt.s32.totalorder %s5349_s14, %s5349_s14 }
  0xc9   : > { %p5352_p9 = pnand %p5350_p4, %p6614_p3  ;;  %p5359_p7 = por %p5358_p0, %p5357_p6 }
  0xca   : > { %4863 = dma.hbm_to_vmem [thread:$0]  (!%p6615_p12), %s6619_s18, 4096, %s697_s15, [#allocation21], %s5558_s19, %s5558_s19, %s5559_s27  }
  0xcb   : > { %s5923_s25 = scalar_lea.hbm %s6620_s12, %s5832_s4  ;;  %p5353_p1 = pneg %p5352_p9 }
  0xcd   : > { %p5360_p13 = pnand %p5359_p7, %p5353_p1 }
  0xcf   : > { %5363 = shalt.err (!%p5360_p13)
}
  0xd0   : > { %s6621_s20 = sld [smem:[#allocation59_spill]]  ;;  %s733_s8 = scalar_lea.vmem [#allocation2], %s5829_s26 }
  0xd1   : > { %s740_s14 = sshll.u32 %s733_s8, 4  ;;  %s6622_s27 = sld [smem:[#allocation43_spill]]  ;;  %s5936_s14 = int_to_ptr.vmem [resolvable:$true] %s740_s14 }
  0xd2   : > { %s6623_s0 = sand.u32 1, %s5540_s29   ;;  %s5364_s9 = scalar_lea.hbm %s5923_s25, 256 }
  0xd3   : > { %s730_s16 = scalar_lea.sflag [#allocation3], %s6623_s0  ;;  %p5365_p3 = scmp.ne.s32.totalorder %s5923_s25, %s5364_s9 }
  0xd5   : > { %p5367_p10 = pnand %p5365_p3, %p5856_p5 }
  0xd6   : > { %4866 = dma.hbm_to_vmem [thread:$0]  (!%p6615_p12), %s6621_s20, 4096, %s713_s13, [#allocation24], %s6613_s24, %s6613_s24, %s6612_s17  }
  0xd7   : > { %s5942_s7 = scalar_lea.hbm %s6622_s27, %s5832_s4  ;;  %p5368_p2 = pneg %p5367_p10 }
  0xd8   : > { %s5369_s13 = scalar_lea.hbm %s6620_s12, 512  ;;  %p5370_p12 = scmp.lt.s32.totalorder %s5923_s25, %s6620_s12 }
  0xd9   : > { %p5371_p11 = scmp.lt.s32.totalorder %s5369_s13, %s5364_s9 }
  0xdb   : > { %p5372_p4 = por %p5371_p11, %p5370_p12 }
  0xdd   : > { %p5373_p9 = pnand %p5372_p4, %p5368_p2 }
  0xdf   : > { %5376 = shalt.err (!%p5373_p9)
}
  0xe0   : > { %s5377_s2 = scalar_lea.vmem %s5936_s14, 256  ;;  %s5561_s6 = smov [#allocation2]  }
  0xe1   : > { %p5378_p1 = scmp.ne.s32.totalorder %s5936_s14, %s5377_s2  ;;  %s5382_s0 = sshll.u32 %s5561_s6, 4  ;;  %s5383_s0 = int_to_ptr.vmem [resolvable:$false] %s5382_s0 }
  0xe2   : > { %s5384_s15 = scalar_lea.vmem %s5383_s0, 512  ;;  %p5385_p7 = scmp.lt.s32.totalorder %s5936_s14, %s5383_s0 }
  0xe3   : > { %p5380_p6 = pnand %p5378_p1, %p5856_p5  ;;  %p5386_p13 = scmp.lt.s32.totalorder %s5384_s15, %s5377_s2 }
  0xe5   : > { %p5381_p0 = pneg %p5380_p6  ;;  %p5387_p3 = por %p5386_p13, %p5385_p7 }
  0xe7   : > { %p5388_p10 = pnand %p5387_p3, %p5381_p0 }
  0xe9   : > { %5391 = shalt.err (!%p5388_p10)
}
  0xea   : > { %4870 = dma.hbm_to_vmem [thread:$0]  (!%p5834_p8), %s5923_s25, 256, %s5936_s14, %s730_s16, %s6613_s24, %s6613_s24, %s6612_s17  }
  0xeb   : > { %s775_s18 = scalar_lea.vmem [#allocation7], %s5829_s26  ;;  %s6624_s8 = sld [smem:[#allocation44_spill]] }
  0xec   : > { %s782_s9 = sshll.u32 %s775_s18, 4  ;;  %s5392_s6 = scalar_lea.hbm %s5942_s7, 256  ;;  %s5970_s9 = int_to_ptr.vmem [resolvable:$true] %s782_s9 }
  0xed   : > { %p5393_p2 = scmp.ne.s32.totalorder %s5942_s7, %s5392_s6  ;;  %s5397_s12 = scalar_lea.hbm %s6622_s27, 512 }
  0xee   : > { %p5398_p4 = scmp.lt.s32.totalorder %s5942_s7, %s6622_s27  ;;  %p5399_p9 = scmp.lt.s32.totalorder %s5397_s12, %s5392_s6 }
  0xef   : > { %p5395_p12 = pnand %p5393_p2, %p5856_p5 }
  0xf0   : > { %p5400_p1 = por %p5399_p9, %p5398_p4 }
  0xf1   : > { %s5976_s2 = scalar_lea.hbm %s6624_s8, %s5832_s4  ;;  %p5396_p11 = pneg %p5395_p12 }
  0xf3   : > { %p5401_p6 = pnand %p5400_p1, %p5396_p11 }
  0xf5   : > { %5404 = shalt.err (!%p5401_p6)
}
  0xf6   : > { %s5405_s4 = scalar_lea.vmem %s5970_s9, 256  ;;  %s5562_s14 = smov [#allocation7]  }
  0xf7   : > { %p5406_p0 = scmp.ne.s32.totalorder %s5970_s9, %s5405_s4  ;;  %s5410_s16 = sshll.u32 %s5562_s14, 4  ;;  %s5411_s16 = int_to_ptr.vmem [resolvable:$false] %s5410_s16 }
  0xf8   : > { %s5412_s18 = scalar_lea.vmem %s5411_s16, 512  ;;  %p5413_p3 = scmp.lt.s32.totalorder %s5970_s9, %s5411_s16 }
  0xf9   : > { %p5408_p7 = pnand %p5406_p0, %p5856_p5  ;;  %p5414_p10 = scmp.lt.s32.totalorder %s5412_s18, %s5405_s4 }
  0xfb   : > { %p5409_p13 = pneg %p5408_p7  ;;  %p5415_p2 = por %p5414_p10, %p5413_p3 }
  0xfd   : > { %p5416_p12 = pnand %p5415_p2, %p5409_p13 }
  0xff   : > { %5419 = shalt.err (!%p5416_p12)
}
 0x100   : > { %4876 = dma.hbm_to_vmem [thread:$0]  (!%p5834_p8), %s5942_s7, 256, %s5970_s9, %s5850_s21, %s6613_s24, %s6613_s24, %s6612_s17  }
 0x101   : > { %s796_s12 = scalar_lea.vmem [#allocation8], %s5829_s26  ;;  %s6625_s19 = sand.u32 1, %s5544_s30  }
 0x102   : > { %s803_s20 = sshll.u32 %s796_s12, 4  ;;  %s793_s13 = scalar_lea.sflag [#allocation9], %s6625_s19  ;;  %s6003_s20 = int_to_ptr.vmem [resolvable:$true] %s803_s20 }
 0x103   : > { %s5420_s6 = scalar_lea.hbm %s5976_s2, 256  ;;  %s5425_s25 = scalar_lea.hbm %s6624_s8, 512 }
 0x104   : > { %p5421_p11 = scmp.ne.s32.totalorder %s5976_s2, %s5420_s6  ;;  %p5426_p1 = scmp.lt.s32.totalorder %s5976_s2, %s6624_s8 }
 0x105   : > { %p5427_p6 = scmp.lt.s32.totalorder %s5425_s25, %s5420_s6 }
 0x106   : > { %p5423_p4 = pnand %p5421_p11, %p5856_p5 }
 0x107   : > { %p5428_p0 = por %p5427_p6, %p5426_p1 }
 0x108   : > { %p5424_p9 = pneg %p5423_p4 }
 0x10a   : > { %p5429_p7 = pnand %p5428_p0, %p5424_p9 }
 0x10c   : > { %5432 = shalt.err (!%p5429_p7)
}
 0x10d   : > { %s5433_s21 = scalar_lea.vmem %s6003_s20, 256  ;;  %s5563_s26 = smov [#allocation8]  }
 0x10e   : > { %p5434_p13 = scmp.ne.s32.totalorder %s6003_s20, %s5433_s21  ;;  %s5438_s7 = sshll.u32 %s5563_s26, 4  ;;  %s5439_s7 = int_to_ptr.vmem [resolvable:$false] %s5438_s7 }
 0x10f   : > { %s5440_s9 = scalar_lea.vmem %s5439_s7, 512  ;;  %p5441_p2 = scmp.lt.s32.totalorder %s6003_s20, %s5439_s7 }
 0x110   : > { %p5436_p3 = pnand %p5434_p13, %p5856_p5  ;;  %p5442_p12 = scmp.lt.s32.totalorder %s5440_s9, %s5433_s21 }
 0x112   : > { %p5437_p10 = pneg %p5436_p3  ;;  %p5443_p11 = por %p5442_p12, %p5441_p2 }
 0x114   : > { %p5444_p4 = pnand %p5443_p11, %p5437_p10 }
 0x116   : > { %5447 = shalt.err (!%p5444_p4)
}
 0x117   : > { %4879 = dma.hbm_to_vmem [thread:$0]  (!%p5834_p8), %s5976_s2, 256, %s6003_s20, %s793_s13, %s6613_s24, %s6613_s24, %s6612_s17  }
 0x118   : > { %p6626_p5 = scmp.ne.s32.totalorder %s6594_s1, 0 }
 0x119   : > { %s6033_s3 = sand.u32 (!%p6626_p5), 1, %s5536_s28   ;;  %p6627_p9 = scmp.ne.s32.totalorder (!%p6626_p5), %s6604_s22, 0 }
 0x11a   : > { %815 = sbr.rel (%p6626_p5) target bundleno = 6254 (0x186e), region = 108  ;;  %s6036_s16 = sshll.u32 (!%p6626_p5), %s6033_s3, 4 }
 0x11b   : > { %s818_s18 = scalar_lea.sflag (!%p6626_p5), [#allocation3], %s6033_s3  ;;  %s821_s5 = scalar_lea.vmem (!%p6626_p5), [#allocation2], %s6036_s16 }
 0x11f   : > { %5491 = dma.done.wait (%p6627_p9), %s818_s18, 256  }
 0x120   : > { %5493 = vsyncadd (%p6627_p9), %s818_s18, 4294967040  ;;  %s826_s1 = sand.u32 1, %s5707_s23   ;;  %s830_s24 = scalar_lea.vmem [#allocation5], %s6036_s16 }
 0x121   : > { %s827_s17 = scalar_lea.sflag [#allocation6], %s826_s1 }
 0x122   : > { %5495 = dma.done.wait (%p6627_p9), %s827_s17, 512  }
 0x123   : > { %5497 = vsyncadd (%p6627_p9), %s827_s17, 4294966784  ;;  %s839_s2 = scalar_lea.vmem [#allocation7], %s6036_s16  ;;  %s845_s12 = scalar_lea.sflag [#allocation9], %s826_s1 }
 0x124   : > { %s848_s20 = scalar_lea.vmem [#allocation8], %s6036_s16 }
 0x125   : > { %5499 = dma.done.wait (%p6627_p9), %s845_s12, 256  }
 0x126   : > { %5501 = vsyncadd (%p6627_p9), %s845_s12, 4294967040  ;;  %p6628_p8 = scmp.eq.s32.totalorder %s5707_s23, 0 }
 0x128   : > { %5503 = dma.done.wait (%p6628_p8), [#allocation9], 2048   ;;  %p6629_p1 = pmov %p6628_p8 }
 0x12a   : > { %5505 = vsyncadd (%p6629_p1), [#allocation9], 4294965248  ;;  %p6630_p6 = pmov %p6629_p1 }
 0x12b   : > { %p6631_p0 = pmov %p6629_p1 }
 0x12c   : > { %5507 = dma.done.wait (%p6630_p6), [#allocation12], 4096  }
 0x12d   : > { %5509 = vsyncadd (%p6631_p0), [#allocation12], 4294963200  ;;  %p6632_p7 = pmov %p6631_p0 }
 0x12e   : > { %p6633_p13 = pmov %p6631_p0 }
 0x12f   : > { %5511 = dma.done.wait (%p6632_p7), [#allocation15], 4096  }
 0x130   : > { %5513 = vsyncadd (%p6633_p13), [#allocation15], 4294963200  ;;  %p6634_p3 = pmov %p6631_p0 }
 0x131   : > { %p6635_p10 = pmov %p6631_p0 }
 0x132   : > { %5515 = dma.done.wait (%p6634_p3), [#allocation18], 4096  }
 0x133   : > { %5517 = vsyncadd (%p6635_p10), [#allocation18], 4294963200  ;;  %p6636_p2 = pmov %p6631_p0 }
 0x134   : > { %p6637_p12 = pmov %p6631_p0 }
 0x135   : > { %5519 = dma.done.wait (%p6636_p2), [#allocation21], 6144  }
 0x136   : > { %5521 = vsyncadd (%p6637_p12), [#allocation21], 4294961152  ;;  %p6638_p11 = pmov %p6631_p0 }
 0x137   : > { %p6639_p4 = pmov %p6631_p0 }
 0x138   : > { %5523 = dma.done.wait (%p6638_p11), [#allocation24], 4096  }
 0x139   : > { %5525 = vsyncadd (%p6639_p4), [#allocation24], 4294963200  ;;  %v6080_v0 = vld [vmem:[%s821_s5] sm:$0xff]  ;;  %v6083_v1 = vld [vmem:[%s821_s5 + $0x8] sm:$0xff]  ;;  %s6640_s13 = sld [smem:[#allocation45_spill]]  ;;  %vm1300_vm4 = vcmask 261120  }
 0x13a   : > { %972 = vadd.xlane.f32.xlu0 %v6080_v0  ;;  %v1042_v10 = vld [vmem:[#allocation10 + $0x78] sm:$0xff]  ;;  %v1041_v12 = vld [vmem:[#allocation10 + $0x70] sm:$0xff]  ;;  %v1040_v14 = vld [vmem:[#allocation10 + $0x68] sm:$0xff]  ;;  %s6641_s15 = sld [smem:[#allocation46_spill]]  ;;  %vm1394_vm6 = vcmask 130048   ;;  %s5564_s25 = smov 96  }
 0x13b   : > { %4394 = vmatprep.subr.mxu0 %v1042_v10  ;;  %v1133_v11 = vld [vmem:[#allocation11 + $0x78] sm:$0xff]  ;;  %v1132_v13 = vld [vmem:[#allocation11 + $0x70] sm:$0xff]  ;;  %v1131_v15 = vld [vmem:[#allocation11 + $0x68] sm:$0xff]  ;;  %s5565_s4 = smov 64   ;;  %s5566_s14 = smov 32   ;;  %vm2138_vm8 = vcmask 523264  }
 0x13c   : > { %4395 = vmatpush3.msra.mxu0 %v1042_v10  ;;  %4429 = vmatprep.subr.mxu1 %v1133_v11  ;;  %v1039_v16 = vld [vmem:[#allocation10 + $0x60] sm:$0xff]  ;;  %v1038_v18 = vld [vmem:[#allocation10 + $0x58] sm:$0xff]  ;;  %v1037_v20 = vld [vmem:[#allocation10 + $0x50] sm:$0xff]  ;;  %vm2141_vm9 = vcmask 785408   ;;  %s6642_s1 = sld [smem:[#allocation55_spill]] }
 0x13d   : > { %4396 = vmatprep.subr.mxu0 %v1041_v12  ;;  %4430 = vmatpush3.msra.mxu1 %v1133_v11  ;;  %v1130_v17 = vld [vmem:[#allocation11 + $0x60] sm:$0xff]  ;;  %v1129_v19 = vld [vmem:[#allocation11 + $0x58] sm:$0xff]  ;;  %v1128_v21 = vld [vmem:[#allocation11 + $0x50] sm:$0xff]  ;;  %s6644_s22 = sld [smem:[#allocation58_spill]] }
 0x13e   : > { %974 = vadd.xlane.f32.xlu0 %v6083_v1  ;;  %4397 = vmatpush3.msra.mxu0 %v1041_v12  ;;  %v1036_v22 = vld [vmem:[#allocation10 + $0x48] sm:$0xff]  ;;  %v1035_v24 = vld [vmem:[#allocation10 + $0x40] sm:$0xff]  ;;  %v1034_v26 = vld [vmem:[#allocation10 + $0x38] sm:$0xff]  ;;  %s6645_s6 = sld [smem:[#allocation60_spill]] }
 0x13f   : > { %4431 = vmatprep.subr.mxu1 %v1132_v13  ;;  %4398 = vmatprep.subr.mxu0 %v1040_v14  ;;  %v1127_v23 = vld [vmem:[#allocation11 + $0x48] sm:$0xff]  ;;  %v1126_v25 = vld [vmem:[#allocation11 + $0x40] sm:$0xff]  ;;  %v1125_v27 = vld [vmem:[#allocation11 + $0x38] sm:$0xff]  ;;  %s6646_s0 = sld [smem:[#allocation39_spill]] }
 0x140   : > { %4432 = vmatpush3.msra.mxu1 %v1132_v13  ;;  %4399 = vmatpush3.msra.mxu0 %v1040_v14  ;;  %v1033_v28 = vld [vmem:[#allocation10 + $0x30] sm:$0xff]  ;;  %v1032_v30 = vld [vmem:[#allocation10 + $0x28] sm:$0xff]  ;;  %v1031_v32 = vld [vmem:[#allocation10 + $0x20] sm:$0xff]  ;;  %s6647_s26 = sld [smem:[#allocation61_spill]] }
 0x141   : > { %4433 = vmatprep.subr.mxu1 %v1131_v15  ;;  %4400 = vmatprep.subr.mxu0 %v1039_v16  ;;  %v1124_v29 = vld [vmem:[#allocation11 + $0x30] sm:$0xff]  ;;  %v1123_v31 = vld [vmem:[#allocation11 + $0x28] sm:$0xff]  ;;  %v1122_v33 = vld [vmem:[#allocation11 + $0x20] sm:$0xff] }
 0x142   : > { %4434 = vmatpush3.msra.mxu1 %v1131_v15  ;;  %4401 = vmatpush3.msra.mxu0 %v1039_v16  ;;  %v1030_v34 = vld [vmem:[#allocation10 + $0x18] sm:$0xff]  ;;  %v1029_v36 = vld [vmem:[#allocation10 + $0x10] sm:$0xff]  ;;  %v1028_v38 = vld [vmem:[#allocation10 + $0x8] sm:$0xff] }
 0x143   : > { %4435 = vmatprep.subr.mxu1 %v1130_v17  ;;  %4402 = vmatprep.subr.mxu0 %v1038_v18  ;;  %v1121_v35 = vld [vmem:[#allocation11 + $0x18] sm:$0xff]  ;;  %v1120_v37 = vld [vmem:[#allocation11 + $0x10] sm:$0xff]  ;;  %v1119_v39 = vld [vmem:[#allocation11 + $0x8] sm:$0xff] }
 0x144   : > { %4436 = vmatpush3.msra.mxu1 %v1130_v17  ;;  %4403 = vmatpush3.msra.mxu0 %v1038_v18  ;;  %v1027_v40 = vld [vmem:[#allocation10] sm:$0xff]  ;;  %v1224_v42 = vld [vmem:[#allocation13 + $0x78] sm:$0xff]  ;;  %v1218_v12 = vld [vmem:[#allocation13 + $0x48] sm:$0xff] }
 0x145   : > { %4437 = vmatprep.subr.mxu1 %v1129_v19  ;;  %4404 = vmatprep.subr.mxu0 %v1037_v20  ;;  %v1118_v41 = vld [vmem:[#allocation11] sm:$0xff]  ;;  %v1220_v11 = vld [vmem:[#allocation13 + $0x58] sm:$0xff]  ;;  %v1215_v15 = vld [vmem:[#allocation13 + $0x30] sm:$0xff]  ;;  %p6648_p9 = scmp.ne.s32.totalorder %s6646_s0, 0 }
 0x146   : > { %4438 = vmatpush3.msra.mxu1 %v1129_v19  ;;  %4405 = vmatpush3.msra.mxu0 %v1037_v20  ;;  %v4083_v59 = vld [vmem:[%s6640_s13] ss:$0 sm:$0xff]  ;;  %v1216_v14 = vld [vmem:[#allocation13 + $0x38] sm:$0xff]  ;;  %v1214_v16 = vld [vmem:[#allocation13 + $0x28] sm:$0xff] }
 0x147   : > { %4439 = vmatprep.subr.mxu1 %v1128_v21  ;;  %4406 = vmatprep.subr.mxu0 %v1036_v22  ;;  %v4084_v62 = vld [vmem:[%s6641_s15] ss:$0 sm:$0xff]  ;;  %v1212_v18 = vld [vmem:[#allocation13 + $0x18] sm:$0xff]  ;;  %v1211_v19 = vld [vmem:[#allocation13 + $0x10] sm:$0xff]  ;;  %s963_s15 = scalar_lea.vmem [#allocation25], %s6036_s16  ;;  %s3795_s16 = scalar_lea.sflag [#allocation4], %s6033_s3 }
 0x148   : > { %4440 = vmatpush3.msra.mxu1 %v1128_v21  ;;  %4407 = vmatpush3.msra.mxu0 %v1036_v22  ;;  %v1221_v10 = vld [vmem:[#allocation13 + $0x60] sm:$0xff]  ;;  %v1210_v20 = vld [vmem:[#allocation13 + $0x8] sm:$0xff] }
 0x149   : > { %4441 = vmatprep.subr.mxu1 %v1127_v23  ;;  %4408 = vmatprep.subr.mxu0 %v1035_v24  ;;  %v1217_v13 = vld [vmem:[#allocation13 + $0x40] sm:$0xff] }
 0x14a   : > { %4442 = vmatpush3.msra.mxu1 %v1127_v23  ;;  %4409 = vmatpush3.msra.mxu0 %v1035_v24  ;;  %v1213_v17 = vld [vmem:[#allocation13 + $0x20] sm:$0xff] }
 0x14b   : > { %4443 = vmatprep.subr.mxu1 %v1126_v25  ;;  %4410 = vmatprep.subr.mxu0 %v1034_v26  ;;  %v1209_v21 = vld [vmem:[#allocation13] sm:$0xff] }
 0x14c   : > { %4444 = vmatpush3.msra.mxu1 %v1126_v25  ;;  %4411 = vmatpush3.msra.mxu0 %v1034_v26 }
 0x14d   : > { %4445 = vmatprep.subr.mxu1 %v1125_v27  ;;  %4412 = vmatprep.subr.mxu0 %v1033_v28 }
 0x14e   : > { %4446 = vmatpush3.msra.mxu1 %v1125_v27  ;;  %4413 = vmatpush3.msra.mxu0 %v1033_v28  ;;  %v6134_v28 = vld [vmem:[%s848_s20 + $0x8] sm:$0xff] }
 0x14f   : > { %4447 = vmatprep.subr.mxu1 %v1124_v29  ;;  %4414 = vmatprep.subr.mxu0 %v1032_v30  ;;  %vm1391_vm5 = vcmp.eq.f32.partialorder %v6134_v28, 0.0 }
 0x150   : > { %4448 = vmatpush3.msra.mxu1 %v1124_v29  ;;  %4415 = vmatpush3.msra.mxu0 %v1032_v30  ;;  %v6138_v29 = vld [vmem:[%s848_s20] sm:$0xff] }
 0x151   : > { %4449 = vmatprep.subr.mxu1 %v1123_v31  ;;  %4416 = vmatprep.subr.mxu0 %v1031_v32  ;;  %vm1390_vm7 = vcmp.eq.f32.partialorder %v6138_v29, 0.0 }
 0x152   : > { %4450 = vmatpush3.msra.mxu1 %v1123_v31  ;;  %4417 = vmatpush3.msra.mxu0 %v1031_v32 }
 0x153   : > { %4451 = vmatprep.subr.mxu1 %v1122_v33  ;;  %4418 = vmatprep.subr.mxu0 %v1030_v34 }
 0x154   : > { %4452 = vmatpush3.msra.mxu1 %v1122_v33  ;;  %4419 = vmatpush3.msra.mxu0 %v1030_v34 }
 0x155   : > { %4453 = vmatprep.subr.mxu1 %v1121_v35  ;;  %4420 = vmatprep.subr.mxu0 %v1029_v36 }
 0x156   : > { %4454 = vmatpush3.msra.mxu1 %v1121_v35  ;;  %4421 = vmatpush3.msra.mxu0 %v1029_v36 }
 0x157   : > { %4455 = vmatprep.subr.mxu1 %v1120_v37  ;;  %4422 = vmatprep.subr.mxu0 %v1028_v38 }
 0x158   : > { %4456 = vmatpush3.msra.mxu1 %v1120_v37  ;;  %4423 = vmatpush3.msra.mxu0 %v1028_v38 }
 0x159   : > { %4457 = vmatprep.subr.mxu1 %v1119_v39  ;;  %4424 = vmatprep.subr.mxu0 %v1027_v40 }
 0x15a   : > { %4458 = vmatpush3.msra.mxu1 %v1119_v39  ;;  %4425 = vmatpush3.msra.mxu0 %v1027_v40 }
 0x15b   : > { %4459 = vmatprep.subr.mxu1 %v1118_v41  ;;  %4464 = vmatprep.subr.mxu0 %v1224_v42 }
 0x15c   : > { %4460 = vmatpush3.msra.mxu1 %v1118_v41 }
 0x1c3   : > { %v973_v2 = vpop.xlane.xlu0 %972 }
 0x1c4   : > { %v977_v3 = vmul.f32 0.0078125, %v973_v2 }
 0x1c6   : > { %v6087_v4 = vsub.f32 %v6080_v0, %v977_v3 }
 0x1c7   : > { %v975_v5 = vpop.xlane.xlu0 %974 }
 0x1c8   : > { %v978_v6 = vmul.f32 0.0078125, %v975_v5  ;;  %v981_v7 = vmul.f32 %v6087_v4, %v6087_v4  ;;  %v1010_v60 = vmul.f32 %v4083_v59, %v6087_v4  ;;  %v1222_v4 = vld [vmem:[#allocation13 + $0x68] sm:$0xff] }
 0x1ca   : > { %v6092_v8 = vsub.f32 %v6083_v1, %v978_v6  ;;  %983 = vadd.xlane.f32.xlu1 %v981_v7 }
 0x1cc   : > { %v982_v9 = vmul.f32 %v6092_v8, %v6092_v8  ;;  %v1011_v2 = vmul.f32 %v4083_v59, %v6092_v8  ;;  %v1219_v8 = vld [vmem:[#allocation13 + $0x50] sm:$0xff] }
 0x1ce   : > { %985 = vadd.xlane.f32.xlu1 %v982_v9  ;;  %v1223_v9 = vld [vmem:[#allocation13 + $0x70] sm:$0xff] }
 0x253   : > { %v984_v43 = vpop.xlane.xlu1 %983 }
 0x254   : > { %v987_v44 = vmul.f32 0.007874016, %v984_v43 }
 0x256   : > { %4988 = vrsqrt.f32 %v987_v44  ;;  %vm991_vm0 = vcmp.eq.f32.partialorder %v987_v44, inf  ;;  %v994_v49 = vand.u32 2147483648, %v987_v44  ;;  %vm993_vm1 = vcmp.eq.f32.partialorder %v987_v44, 0.0 }
 0x257   : > { %v986_v45 = vpop.xlane.xlu1 %985 }
 0x258   : > { %v988_v46 = vmul.f32 0.007874016, %v986_v45 }
 0x25a   : > { %4990 = vrsqrt.f32 %v988_v46  ;;  %vm998_vm2 = vcmp.eq.f32.partialorder %v988_v46, inf  ;;  %v1001_v55 = vand.u32 2147483648, %v988_v46  ;;  %vm1000_vm3 = vcmp.eq.f32.partialorder %v988_v46, 0.0 }
 0x263   : > { %v4989_v47 = vpop.eup %4988 }
 0x264   : > { %v990_v48 = vmul.f32 %v4989_v47, %v987_v44 }
 0x266   : > { %v992_v50 = vsel %vm991_vm0, %v987_v44, %v990_v48 }
 0x267   : > { %v4991_v51 = vpop.eup %4990  ;;  %v995_v52 = vsel %vm993_vm1, %v994_v49, %v992_v50 }
 0x268   : > { %v997_v53 = vmul.f32 %v4991_v51, %v988_v46  ;;  %v1012_v54 = vadd.f32 1e-06, %v995_v52 }
 0x26a   : > { %v999_v56 = vsel %vm998_vm2, %v988_v46, %v997_v53  ;;  %4992 = vrcp.f32 %v1012_v54 }
 0x26b   : > { %v1002_v57 = vsel %vm1000_vm3, %v1001_v55, %v999_v56 }
 0x26c   : > { %v1013_v58 = vadd.f32 1e-06, %v1002_v57 }
 0x26e   : > { %4994 = vrcp.f32 %v1013_v58 }
 0x277   : > { %v4993_v61 = vpop.eup %4992 }
 0x278   : > { %v1015_v63 = vmul.f32 %v4993_v61, %v1010_v60 }
 0x27a   : > { %v1025_v3 = vadd.f32 %v4084_v62, %v1015_v63 }
 0x27b   : > { %v4995_v5 = vpop.eup %4994 }
 0x27c   : > { %4426 = vmatprep.mubr.f32.mxu0 %v1025_v3  ;;  %4461 = vmatprep.mubr.f32.mxu1 %v1025_v3  ;;  %v1017_v6 = vmul.f32 %v4995_v5, %v1011_v2 }
 0x27e   : > { %v1026_v7 = vadd.f32 %v4084_v62, %v1017_v6 }
 0x280   : > { %4427 = vmatmul.mubr.f32.vlgmr.msra.gmra.mxu0 %v1026_v7  ;;  %4462 = vmatmul.mubr.f32.vlgmr.msra.gmra.mxu1 %v1026_v7 }
 0x281   : > { %4465 = vmatpush3.msra.mxu0 %v1224_v42  ;;  %4496 = vmatprep.mubr.f32.mxu0 %v1025_v3 }
 0x282   : > { %4466 = vmatprep.subr.mxu0 %v1223_v9 }
 0x283   : > { %4467 = vmatpush3.msra.mxu0 %v1223_v9 }
 0x284   : > { %4468 = vmatprep.subr.mxu0 %v1222_v4 }
 0x285   : > { %4469 = vmatpush3.msra.mxu0 %v1222_v4 }
 0x286   : > { %4470 = vmatprep.subr.mxu0 %v1221_v10 }
 0x287   : > { %4471 = vmatpush3.msra.mxu0 %v1221_v10 }
 0x288   : > { %4472 = vmatprep.subr.mxu0 %v1220_v11 }
 0x289   : > { %4473 = vmatpush3.msra.mxu0 %v1220_v11 }
 0x28a   : > { %4474 = vmatprep.subr.mxu0 %v1219_v8 }
 0x28b   : > { %4475 = vmatpush3.msra.mxu0 %v1219_v8 }
 0x28c   : > { %4476 = vmatprep.subr.mxu0 %v1218_v12 }
 0x28d   : > { %4477 = vmatpush3.msra.mxu0 %v1218_v12 }
 0x28e   : > { %4478 = vmatprep.subr.mxu0 %v1217_v13 }
 0x28f   : > { %4479 = vmatpush3.msra.mxu0 %v1217_v13 }
 0x290   : > { %4480 = vmatprep.subr.mxu0 %v1216_v14 }
 0x291   : > { %4481 = vmatpush3.msra.mxu0 %v1216_v14 }
 0x292   : > { %4482 = vmatprep.subr.mxu0 %v1215_v15 }
 0x293   : > { %4483 = vmatpush3.msra.mxu0 %v1215_v15 }
 0x294   : > { %4484 = vmatprep.subr.mxu0 %v1214_v16 }
 0x295   : > { %4485 = vmatpush3.msra.mxu0 %v1214_v16 }
 0x296   : > { %4486 = vmatprep.subr.mxu0 %v1213_v17 }
 0x297   : > { %4487 = vmatpush3.msra.mxu0 %v1213_v17 }
 0x298   : > { %4488 = vmatprep.subr.mxu0 %v1212_v18 }
 0x299   : > { %4489 = vmatpush3.msra.mxu0 %v1212_v18 }
 0x29a   : > { %4490 = vmatprep.subr.mxu0 %v1211_v19 }
 0x29b   : > { %4491 = vmatpush3.msra.mxu0 %v1211_v19 }
 0x29c   : > { %4492 = vmatprep.subr.mxu0 %v1210_v20 }
 0x29d   : > { %4493 = vmatpush3.msra.mxu0 %v1210_v20 }
 0x29e   : > { %4494 = vmatprep.subr.mxu0 %v1209_v21 }
 0x29f   : > { %4495 = vmatpush3.msra.mxu0 %v1209_v21 }
 0x2a0   : > { %4497 = vmatmul.mubr.f32.vlgmr.msra.gmra.mxu0 %v1026_v7 }
 0x340   : > { %v6104_v22 = vpop.f32.mrf.mxu0  ;;  %v6106_v23 = vpop.f32.mrf.mxu1 }
 0x341   : > { %4499 = vmatprep.subr.msk.mxu1 %vm1300_vm4, %v6106_v23 }
 0x342   : > { %v6110_v24 = vpop.f32.mrf.mxu0  ;;  %v6112_v25 = vpop.f32.mrf.mxu1  ;;  %4500 = vmatpush3.xpose.msk.msra.mxu1 %vm1300_vm4, %v6106_v23 }
 0x343   : > { %4501 = vmatprep.subr.msk.mxu1 %vm1300_vm4, %v6112_v25  ;;  %4503 = vmatprep.mubr.msk.f32.mxu1 %vm1300_vm4, %v6110_v24 }
 0x346   : > { %4502 = vmatpush3.xpose.msk.msra.mxu1 %vm1300_vm4, %v6112_v25 }
 0x349   : > { %4504 = vmatmul.mubr.msk.f32.vlgmr.msra.gmra.mxu1 %vm1300_vm4, %v6104_v22 }
 0x360   : > { %v6124_v26 = vpop.f32.mrf.mxu0 }
 0x361   : > { %4506 = vmatprep.subr.mxu1 %v6124_v26 }
 0x362   : > { %v6127_v27 = vpop.f32.mrf.mxu0  ;;  %4507 = vmatpush3.msra.mxu1 %v6124_v26 }
 0x363   : > { %4508 = vmatprep.subr.mxu1 %v6127_v27 }
 0x364   : > { %4509 = vmatpush3.msra.mxu1 %v6127_v27 }
 0x409   : > { %v4505_v30 = vpop.f32.mrf.mxu1 }
 0x40a   : > { %v1389_v31 = vmul.f32 0.17677669, %v4505_v30 }
 0x40b   : > { %v1379_v32 = vpop.f32.mrf.mxu1 }
 0x40c   : > { %v1388_v33 = vmul.f32 0.17677669, %v1379_v32  ;;  %v1393_v34 = vsel %vm1391_vm5, -1e+09, %v1389_v31 }
 0x40d   : > { %v1398_v35 = vsel %vm1394_vm6, %v1393_v34, -inf }
 0x40e   : > { %1399 = vmax.xlane.f32.xlu1 %v1398_v35  ;;  %v1392_v36 = vsel %vm1390_vm7, -1e+09, %v1388_v33 }
 0x40f   : > { %v1395_v37 = vsel %vm1394_vm6, %v1392_v36, -inf }
 0x410   : > { %1396 = vmax.xlane.f32.xlu0 %v1395_v37 }
 0x497   : > { %v1400_v38 = vpop.xlane.xlu1 %1399 }
 0x498   : > { %v1402_v39 = vsub.f32 %v1393_v34, %v1400_v38 }
 0x499   : > { %v1397_v40 = vpop.xlane.xlu0 %1396 }
 0x49a   : > { %v1405_v41 = vmul.f32 1.442695, %v1402_v39  ;;  %v1401_v42 = vsub.f32 %v1392_v36, %v1397_v40 }
 0x49c   : > { %4996 = vpow2.f32 %v1405_v41  ;;  %v1403_v43 = vmul.f32 1.442695, %v1401_v42 }
 0x49e   : > { %4998 = vpow2.f32 %v1403_v43 }
 0x4a9   : > { %v4997_v44 = vpop.eup %4996 }
 0x4aa   : > { %v1410_v45 = vsel %vm1394_vm6, %v4997_v44, 0.0 }
 0x4ab   : > { %v4999_v46 = vpop.eup %4998  ;;  %1411 = vadd.xlane.f32.xlu1 %v1410_v45 }
 0x4ac   : > { %v1407_v47 = vsel %vm1394_vm6, %v4999_v46, 0.0 }
 0x4ad   : > { %1408 = vadd.xlane.f32.xlu0 %v1407_v47 }
 0x4bc   : > { %1502 = vrot.lane.b32.xlu1 %v6112_v25, %s5564_s25 }
 0x4c0   : > { %1498 = vrot.lane.b32.xlu1 %v6110_v24, %s5564_s25 }
 0x4c3   : > { %1504 = vrot.lane.b32.xlu0 %v6106_v23, %s5564_s25 }
 0x4c4   : > { %1500 = vrot.lane.b32.xlu1 %v6104_v22, %s5564_s25 }
 0x534   : > { %v1412_v48 = vpop.xlane.xlu1 %1411 }
 0x535   : > { %5000 = vrcp.f32 %v1412_v48 }
 0x536   : > { %v1409_v49 = vpop.xlane.xlu0 %1408 }
 0x537   : > { %5002 = vrcp.f32 %v1409_v49 }
 0x538   : > { %v1503_v51 = vpop.permute.xlu1 %1502 }
 0x53a   : > { %v1505_v50 = vpop.permute.xlu0 %1504 }
 0x53b   : > { %4513 = vmatprep.subr.msk.mxu1 %vm1300_vm4, %v1505_v50 }
 0x53c   : > { %v1499_v56 = vpop.permute.xlu1 %1498 }
 0x540   : > { %v1501_v57 = vpop.permute.xlu1 %1500 }
 0x542   : > { %v5001_v52 = vpop.eup %5000 }
 0x543   : > { %v1416_v55 = vmul.f32 %v5001_v52, %v4997_v44 }
 0x544   : > { %v5003_v53 = vpop.eup %5002 }
 0x545   : > { %v1414_v54 = vmul.f32 %v5003_v53, %v4999_v46 }
 0x547   : > { %4510 = vmatprep.mubr.msk.f32.mxu1 %vm1394_vm6, %v1414_v54 }
 0x548   : > { %4511 = vmatmul.mubr.msk.f32.vlgmr.msra.gmra.mxu1 %vm1394_vm6, %v1416_v55 }
 0x549   : > { %4514 = vmatpush3.xpose.msk.msra.mxu1 %vm1300_vm4, %v1505_v50  ;;  %4517 = vmatprep.mubr.msk.f32.mxu1 %vm1300_vm4, %v1499_v56 }
 0x54a   : > { %4515 = vmatprep.subr.msk.mxu1 %vm1300_vm4, %v1503_v51 }
 0x54d   : > { %4516 = vmatpush3.xpose.msk.msra.mxu1 %vm1300_vm4, %v1503_v51 }
 0x550   : > { %4518 = vmatmul.mubr.msk.f32.vlgmr.msra.gmra.mxu1 %vm1300_vm4, %v1501_v57 }
 0x608   : > { %v6166_v58 = vpop.f32.mrf.mxu1 }
 0x60a   : > { %v6168_v59 = vpop.f32.mrf.mxu1 }
 0x610   : > { %v4519_v60 = vpop.f32.mrf.mxu1 }
 0x611   : > { %v1590_v61 = vmul.f32 0.17677669, %v4519_v60 }
 0x612   : > { %v1580_v62 = vpop.f32.mrf.mxu1 }
 0x613   : > { %v1589_v63 = vmul.f32 0.17677669, %v1580_v62  ;;  %v1592_v2 = vsel %vm1391_vm5, -1e+09, %v1590_v61 }
 0x614   : > { %v1596_v3 = vsel %vm1394_vm6, %v1592_v2, -inf }
 0x615   : > { %1597 = vmax.xlane.f32.xlu1 %v1596_v3  ;;  %v1591_v5 = vsel %vm1390_vm7, -1e+09, %v1589_v63 }
 0x616   : > { %v1593_v6 = vsel %vm1394_vm6, %v1591_v5, -inf }
 0x617   : > { %1594 = vmax.xlane.f32.xlu0 %v1593_v6 }
 0x626   : > { %1617 = vrot.lane.b32.xlu1 %v6127_v27, %s5564_s25 }
 0x62a   : > { %1710 = vrot.lane.b32.xlu1 %v6106_v23, %s5565_s4 }
 0x62e   : > { %1708 = vrot.lane.b32.xlu1 %v6112_v25, %s5565_s4 }
 0x632   : > { %1914 = vrot.lane.b32.xlu1 %v6106_v23, %s5566_s14 }
 0x636   : > { %1912 = vrot.lane.b32.xlu1 %v6112_v25, %s5566_s14 }
 0x63a   : > { %1910 = vrot.lane.b32.xlu1 %v6104_v22, %s5566_s14 }
 0x69e   : > { %v1598_v7 = vpop.xlane.xlu1 %1597 }
 0x69f   : > { %v1600_v9 = vsub.f32 %v1592_v2, %v1598_v7 }
 0x6a0   : > { %v1595_v4 = vpop.xlane.xlu0 %1594 }
 0x6a1   : > { %v1603_v10 = vmul.f32 1.442695, %v1600_v9  ;;  %v1599_v11 = vsub.f32 %v1591_v5, %v1595_v4 }
 0x6a2   : > { %v1618_v18 = vpop.permute.xlu1 %1617 }
 0x6a3   : > { %5004 = vpow2.f32 %v1603_v10  ;;  %v1601_v8 = vmul.f32 1.442695, %v1599_v11 }
 0x6a5   : > { %5006 = vpow2.f32 %v1601_v8 }
 0x6a6   : > { %v1711_v20 = vpop.permute.xlu1 %1710 }
 0x6b0   : > { %v5005_v12 = vpop.eup %5004 }
 0x6b1   : > { %v1608_v13 = vsel %vm1394_vm6, %v5005_v12, 0.0 }
 0x6b2   : > { %v5007_v14 = vpop.eup %5006  ;;  %1609 = vadd.xlane.f32.xlu0 %v1608_v13 }
 0x6b3   : > { %v1605_v15 = vsel %vm1394_vm6, %v5007_v14, 0.0 }
 0x6b6   : > { %1606 = vadd.xlane.f32.xlu0 %v1605_v15 }
 0x6cc   : > { %1619 = vrot.lane.b32.xlu0 %v6124_v26, %s5564_s25 }
 0x6d0   : > { %1704 = vrot.lane.b32.xlu0 %v6110_v24, %s5565_s4 }
 0x6d4   : > { %1706 = vrot.lane.b32.xlu0 %v6104_v22, %s5565_s4  ;;  %v1709_v22 = vpop.permute.xlu1 %1708 }
 0x6d8   : > { %1908 = vrot.lane.b32.xlu0 %v6110_v24, %s5566_s14  ;;  %v1915_v32 = vpop.permute.xlu1 %1914 }
 0x6dc   : > { %v1913_v34 = vpop.permute.xlu1 %1912 }
 0x6e0   : > { %v1911_v35 = vpop.permute.xlu1 %1910 }
 0x73b   : > { %v1610_v16 = vpop.xlane.xlu0 %1609 }
 0x73c   : > { %5008 = vrcp.f32 %v1610_v16 }
 0x73f   : > { %v1607_v17 = vpop.xlane.xlu0 %1606 }
 0x740   : > { %5010 = vrcp.f32 %v1607_v17 }
 0x743   : > { %v1620_v19 = vpop.permute.xlu0 %1619 }
 0x744   : > { %4520 = vmatprep.subr.mxu1 %v1620_v19 }
 0x745   : > { %4521 = vmatpush3.msra.mxu1 %v1620_v19 }
 0x746   : > { %4522 = vmatprep.subr.mxu1 %v1618_v18 }
 0x747   : > { %4523 = vmatpush3.msra.mxu1 %v1618_v18  ;;  %v1705_v25 = vpop.permute.xlu0 %1704 }
 0x748   : > { %4527 = vmatprep.subr.msk.mxu1 %vm1300_vm4, %v1711_v20 }
 0x749   : > { %v5009_v21 = vpop.eup %5008 }
 0x74a   : > { %v1614_v31 = vmul.f32 %v5009_v21, %v5005_v12 }
 0x74b   : > { %v1707_v24 = vpop.permute.xlu0 %1706 }
 0x74d   : > { %v5011_v23 = vpop.eup %5010 }
 0x74e   : > { %v1612_v30 = vmul.f32 %v5011_v23, %v5007_v14 }
 0x74f   : > { %v1909_v33 = vpop.permute.xlu0 %1908 }
 0x750   : > { %4524 = vmatprep.mubr.msk.f32.mxu1 %vm1394_vm6, %v1612_v30 }
 0x751   : > { %4525 = vmatmul.mubr.msk.f32.vlgmr.msra.gmra.mxu1 %vm1394_vm6, %v1614_v31 }
 0x752   : > { %4528 = vmatpush3.xpose.msk.msra.mxu1 %vm1300_vm4, %v1711_v20  ;;  %4531 = vmatprep.mubr.msk.f32.mxu1 %vm1300_vm4, %v1705_v25 }
 0x753   : > { %4529 = vmatprep.subr.msk.mxu1 %vm1300_vm4, %v1709_v22 }
 0x756   : > { %4530 = vmatpush3.xpose.msk.msra.mxu1 %vm1300_vm4, %v1709_v22 }
 0x757   : > { %4541 = vmatprep.subr.msk.mxu1 %vm1300_vm4, %v1915_v32 }
 0x759   : > { %4532 = vmatmul.mubr.msk.f32.vlgmr.msra.gmra.mxu1 %vm1300_vm4, %v1707_v24  ;;  %v2159_v24 = vld [vmem:[#allocation14 + $0x78] sm:$0xff] }
 0x75a   : > { %4542 = vmatpush3.xpose.msk.msra.mxu1 %vm1300_vm4, %v1915_v32  ;;  %4545 = vmatprep.mubr.msk.f32.mxu1 %vm1300_vm4, %v1909_v33  ;;  %v2158_v32 = vld [vmem:[#allocation14 + $0x70] sm:$0xff]  ;;  %v2157_v33 = vld [vmem:[#allocation14 + $0x68] sm:$0xff] }
 0x75b   : > { %4543 = vmatprep.subr.msk.mxu1 %vm1300_vm4, %v1913_v34 }
 0x75e   : > { %4544 = vmatpush3.xpose.msk.msra.mxu1 %vm1300_vm4, %v1913_v34  ;;  %v2156_v34 = vld [vmem:[#allocation14 + $0x60] sm:$0xff] }
 0x761   : > { %4546 = vmatmul.mubr.msk.f32.vlgmr.msra.gmra.mxu1 %vm1300_vm4, %v1911_v35  ;;  %v2155_v35 = vld [vmem:[#allocation14 + $0x58] sm:$0xff] }
 0x811   : > { %v4526_v36 = vpop.f32.mrf.mxu1 }
 0x813   : > { %v1695_v37 = vpop.f32.mrf.mxu1 }
 0x814   : > { %v4958_v38 = vpack.i.bf16 %v4526_v36, %v1695_v37  ;;  %v2154_v36 = vld [vmem:[#allocation14 + $0x50] sm:$0xff]  ;;  %v2153_v37 = vld [vmem:[#allocation14 + $0x48] sm:$0xff] }
 0x819   : > { %v4533_v39 = vpop.f32.mrf.mxu1 }
 0x81a   : > { %v1796_v40 = vmul.f32 0.17677669, %v4533_v39  ;;  %v2151_v39 = vld [vmem:[#allocation14 + $0x38] sm:$0xff] }
 0x81b   : > { %v1786_v41 = vpop.f32.mrf.mxu1 }
 0x81c   : > { %v1795_v42 = vmul.f32 0.17677669, %v1786_v41  ;;  %v1798_v43 = vsel %vm1391_vm5, -1e+09, %v1796_v40  ;;  %v2150_v40 = vld [vmem:[#allocation14 + $0x30] sm:$0xff]  ;;  %v2149_v41 = vld [vmem:[#allocation14 + $0x28] sm:$0xff] }
 0x81d   : > { %v1802_v44 = vsel %vm1394_vm6, %v1798_v43, -inf }
 0x81e   : > { %1803 = vmax.xlane.f32.xlu1 %v1802_v44  ;;  %v1797_v45 = vsel %vm1390_vm7, -1e+09, %v1795_v42  ;;  %v2148_v42 = vld [vmem:[#allocation14 + $0x20] sm:$0xff]  ;;  %v2146_v44 = vld [vmem:[#allocation14 + $0x10] sm:$0xff] }
 0x81f   : > { %v1799_v46 = vsel %vm1394_vm6, %v1797_v45, -inf }
 0x820   : > { %1800 = vmax.xlane.f32.xlu0 %v1799_v46  ;;  %v2145_v46 = vld [vmem:[#allocation14 + $0x8] sm:$0xff] }
 0x821   : > { %v4547_v47 = vpop.f32.mrf.mxu1 }
 0x822   : > { %v2000_v49 = vmul.f32 0.17677669, %v4547_v47 }
 0x823   : > { %v1990_v48 = vpop.f32.mrf.mxu1 }
 0x824   : > { %v1999_v50 = vmul.f32 0.17677669, %v1990_v48  ;;  %v2002_v53 = vsel %vm1391_vm5, -1e+09, %v2000_v49  ;;  %v2144_v48 = vld [vmem:[#allocation14] sm:$0xff] }
 0x825   : > { %v2006_v54 = vsel %vm1394_vm6, %v2002_v53, -inf }
 0x826   : > { %v2001_v51 = vsel %vm1390_vm7, -1e+09, %v1999_v50 }
 0x827   : > { %v2003_v52 = vsel %vm1394_vm6, %v2001_v51, -inf }
 0x828   : > { %2004 = vmax.xlane.f32.xlu0 %v2003_v52 }
 0x82c   : > { %2007 = vmax.xlane.f32.xlu0 %v2006_v54 }
 0x8a7   : > { %v1804_v55 = vpop.xlane.xlu1 %1803 }
 0x8a8   : > { %v1806_v56 = vsub.f32 %v1798_v43, %v1804_v55  ;;  %v2147_v43 = vld [vmem:[#allocation14 + $0x18] sm:$0xff] }
 0x8a9   : > { %v1801_v57 = vpop.xlane.xlu0 %1800 }
 0x8aa   : > { %v1809_v60 = vmul.f32 1.442695, %v1806_v56  ;;  %v1805_v61 = vsub.f32 %v1797_v45, %v1801_v57 }
 0x8ac   : > { %5012 = vpow2.f32 %v1809_v60  ;;  %v1807_v62 = vmul.f32 1.442695, %v1805_v61 }
 0x8ae   : > { %5014 = vpow2.f32 %v1807_v62 }
 0x8b1   : > { %v2005_v63 = vpop.xlane.xlu0 %2004 }
 0x8b2   : > { %v2009_v29 = vsub.f32 %v2001_v51, %v2005_v63 }
 0x8b4   : > { %v2011_v2 = vmul.f32 1.442695, %v2009_v29 }
 0x8b5   : > { %v2008_v3 = vpop.xlane.xlu0 %2007 }
 0x8b6   : > { %5016 = vpow2.f32 %v2011_v2  ;;  %v2010_v5 = vsub.f32 %v2002_v53, %v2008_v3 }
 0x8b8   : > { %v2013_v6 = vmul.f32 1.442695, %v2010_v5 }
 0x8b9   : > { %v5013_v28 = vpop.eup %5012 }
 0x8ba   : > { %5018 = vpow2.f32 %v2013_v6  ;;  %v1814_v7 = vsel %vm1394_vm6, %v5013_v28, 0.0 }
 0x8bb   : > { %v5015_v9 = vpop.eup %5014  ;;  %1815 = vadd.xlane.f32.xlu1 %v1814_v7 }
 0x8bc   : > { %v1811_v4 = vsel %vm1394_vm6, %v5015_v9, 0.0 }
 0x8bd   : > { %1812 = vadd.xlane.f32.xlu0 %v1811_v4 }
 0x8c3   : > { %v5017_v10 = vpop.eup %5016 }
 0x8c4   : > { %v2015_v11 = vsel %vm1394_vm6, %v5017_v10, 0.0 }
 0x8c5   : > { %2016 = vadd.xlane.f32.xlu0 %v2015_v11 }
 0x8c7   : > { %v5019_v8 = vpop.eup %5018 }
 0x8c8   : > { %v2018_v12 = vsel %vm1394_vm6, %v5019_v8, 0.0 }
 0x8c9   : > { %2019 = vadd.xlane.f32.xlu1 %v2018_v12 }
 0x8da   : > { %1821 = vrot.lane.b32.xlu1 %v6127_v27, %s5565_s4 }
 0x8db   : > { %1823 = vrot.lane.b32.xlu0 %v6124_v26, %s5565_s4 }
 0x8de   : > { %2027 = vrot.lane.b32.xlu1 %v6124_v26, %s5566_s14 }
 0x8df   : > { %4959 = vrot.lane.b32.xlu0 %v4958_v38, %s5566_s14  ;;  %v2152_v38 = vld [vmem:[#allocation14 + $0x40] sm:$0xff] }
 0x8e2   : > { %2025 = vrot.lane.b32.xlu1 %v6127_v27, %s5566_s14 }
 0x944   : > { %v1816_v13 = vpop.xlane.xlu1 %1815 }
 0x945   : > { %5020 = vrcp.f32 %v1816_v13 }
 0x946   : > { %v1813_v14 = vpop.xlane.xlu0 %1812 }
 0x947   : > { %5022 = vrcp.f32 %v1813_v14  ;;  %v2397_v14 = vld [vmem:[#allocation17 + $0x78] sm:$0xff] }
 0x94e   : > { %v2017_v15 = vpop.xlane.xlu0 %2016 }
 0x94f   : > { %5024 = vrcp.f32 %v2017_v15  ;;  %v2396_v15 = vld [vmem:[#allocation17 + $0x70] sm:$0xff] }
 0x952   : > { %v2020_v16 = vpop.xlane.xlu1 %2019  ;;  %v1824_v17 = vpop.permute.xlu0 %1823 }
 0x953   : > { %v5021_v18 = vpop.eup %5020  ;;  %5026 = vrcp.f32 %v2020_v16  ;;  %4534 = vmatprep.subr.mxu0 %v1824_v17  ;;  %v2395_v16 = vld [vmem:[#allocation17 + $0x68] sm:$0xff] }
 0x954   : > { %v5023_v19 = vpop.eup %5022  ;;  %4535 = vmatpush3.msra.mxu0 %v1824_v17  ;;  %v1820_v21 = vmul.f32 %v5021_v18, %v5013_v28  ;;  %v2394_v17 = vld [vmem:[#allocation17 + $0x60] sm:$0xff]  ;;  %v2393_v18 = vld [vmem:[#allocation17 + $0x58] sm:$0xff] }
 0x955   : > { %v1818_v20 = vmul.f32 %v5023_v19, %v5015_v9  ;;  %v2306_v19 = vld [vmem:[#allocation16 + $0x78] sm:$0xff] }
 0x956   : > { %v1822_v26 = vpop.permute.xlu1 %1821  ;;  %v4960_v53 = vpop.permute.xlu0 %4959  ;;  %4590 = vmatprep.subr.mxu1 %v2306_v19 }
 0x957   : > { %4536 = vmatprep.subr.mxu0 %v1822_v26  ;;  %4538 = vmatprep.mubr.msk.f32.mxu0 %vm1394_vm6, %v1818_v20  ;;  %v4962_v55 = vunpack.i.h.bf16 %v4960_v53  ;;  %v4961_v56 = vunpack.i.l.bf16 %v4960_v53  ;;  %v2392_v20 = vld [vmem:[#allocation17 + $0x50] sm:$0xff] }
 0x958   : > { %4537 = vmatpush3.msra.mxu0 %v1822_v26  ;;  %4591 = vmatpush3.msra.mxu1 %v2306_v19  ;;  %v2305_v26 = vld [vmem:[#allocation16 + $0x70] sm:$0xff]  ;;  %v2481_v19 = vld [vmem:[#allocation19 + $0x40] sm:$0xff] }
 0x959   : > { %4539 = vmatmul.mubr.msk.f32.vlgmr.msra.gmra.mxu0 %vm1394_vm6, %v1820_v21  ;;  %v2137_v62 = vsel %vm1300_vm4, %v6166_v58, %v4962_v55  ;;  %v2136_v2 = vsel %vm1300_vm4, %v6168_v59, %v4961_v56  ;;  %v2391_v21 = vld [vmem:[#allocation17 + $0x48] sm:$0xff]  ;;  %4592 = vmatprep.subr.mxu1 %v2305_v26 }
 0x95a   : > { %v2028_v27 = vpop.permute.xlu1 %2027  ;;  %4593 = vmatpush3.msra.mxu1 %v2305_v26  ;;  %v2479_v26 = vld [vmem:[#allocation19 + $0x30] sm:$0xff] }
 0x95b   : > { %4548 = vmatprep.subr.mxu0 %v2028_v27 }
 0x95c   : > { %v5025_v23 = vpop.eup %5024  ;;  %4549 = vmatpush3.msra.mxu0 %v2028_v27  ;;  %v2304_v27 = vld [vmem:[#allocation16 + $0x68] sm:$0xff] }
 0x95d   : > { %v2022_v25 = vmul.f32 %v5025_v23, %v5017_v10  ;;  %v2390_v23 = vld [vmem:[#allocation17 + $0x40] sm:$0xff]  ;;  %4594 = vmatprep.subr.mxu1 %v2304_v27 }
 0x95e   : > { %v2026_v22 = vpop.permute.xlu1 %2025  ;;  %4595 = vmatpush3.msra.mxu1 %v2304_v27  ;;  %v2477_v27 = vld [vmem:[#allocation19 + $0x20] sm:$0xff] }
 0x95f   : > { %4550 = vmatprep.subr.mxu0 %v2026_v22  ;;  %4552 = vmatprep.mubr.msk.f32.mxu0 %vm1394_vm6, %v2022_v25  ;;  %v2303_v25 = vld [vmem:[#allocation16 + $0x60] sm:$0xff] }
 0x960   : > { %v5027_v30 = vpop.eup %5026  ;;  %4551 = vmatpush3.msra.mxu0 %v2026_v22  ;;  %v2389_v22 = vld [vmem:[#allocation17 + $0x38] sm:$0xff]  ;;  %4596 = vmatprep.subr.mxu1 %v2303_v25 }
 0x961   : > { %v2024_v31 = vmul.f32 %v5027_v30, %v5019_v8  ;;  %4555 = vmatprep.subr.mxu0 %v2159_v24  ;;  %4597 = vmatpush3.msra.mxu1 %v2303_v25  ;;  %v2302_v30 = vld [vmem:[#allocation16 + $0x58] sm:$0xff]  ;;  %v2475_v25 = vld [vmem:[#allocation19 + $0x10] sm:$0xff] }
 0x962   : > { %4598 = vmatprep.subr.mxu1 %v2302_v30 }
 0x963   : > { %4553 = vmatmul.mubr.msk.f32.vlgmr.msra.gmra.mxu0 %vm1394_vm6, %v2024_v31  ;;  %v2388_v31 = vld [vmem:[#allocation17 + $0x30] sm:$0xff]  ;;  %4599 = vmatpush3.msra.mxu1 %v2302_v30  ;;  %v2473_v30 = vld [vmem:[#allocation19] sm:$0xff] }
 0x964   : > { %4556 = vmatpush3.msra.mxu0 %v2159_v24  ;;  %v2301_v24 = vld [vmem:[#allocation16 + $0x50] sm:$0xff] }
 0x965   : > { %4557 = vmatprep.subr.mxu0 %v2158_v32  ;;  %4600 = vmatprep.subr.mxu1 %v2301_v24 }
 0x966   : > { %4558 = vmatpush3.msra.mxu0 %v2158_v32  ;;  %v2387_v32 = vld [vmem:[#allocation17 + $0x28] sm:$0xff]  ;;  %4601 = vmatpush3.msra.mxu1 %v2301_v24 }
 0x967   : > { %4559 = vmatprep.subr.mxu0 %v2157_v33 }
 0x968   : > { %4560 = vmatpush3.msra.mxu0 %v2157_v33  ;;  %v2300_v33 = vld [vmem:[#allocation16 + $0x48] sm:$0xff] }
 0x969   : > { %4561 = vmatprep.subr.mxu0 %v2156_v34  ;;  %4602 = vmatprep.subr.mxu1 %v2300_v33 }
 0x96a   : > { %4562 = vmatpush3.msra.mxu0 %v2156_v34  ;;  %v2386_v34 = vld [vmem:[#allocation17 + $0x20] sm:$0xff]  ;;  %4603 = vmatpush3.msra.mxu1 %v2300_v33 }
 0x96b   : > { %4563 = vmatprep.subr.mxu0 %v2155_v35 }
 0x96c   : > { %4564 = vmatpush3.msra.mxu0 %v2155_v35  ;;  %v2299_v35 = vld [vmem:[#allocation16 + $0x40] sm:$0xff] }
 0x96d   : > { %4565 = vmatprep.subr.mxu0 %v2154_v36  ;;  %4604 = vmatprep.subr.mxu1 %v2299_v35 }
 0x96e   : > { %4566 = vmatpush3.msra.mxu0 %v2154_v36  ;;  %v2385_v36 = vld [vmem:[#allocation17 + $0x18] sm:$0xff]  ;;  %4605 = vmatpush3.msra.mxu1 %v2299_v35 }
 0x96f   : > { %4567 = vmatprep.subr.mxu0 %v2153_v37 }
 0x970   : > { %4568 = vmatpush3.msra.mxu0 %v2153_v37  ;;  %v2298_v37 = vld [vmem:[#allocation16 + $0x38] sm:$0xff] }
 0x971   : > { %4569 = vmatprep.subr.mxu0 %v2152_v38  ;;  %4606 = vmatprep.subr.mxu1 %v2298_v37 }
 0x972   : > { %4570 = vmatpush3.msra.mxu0 %v2152_v38  ;;  %v2384_v38 = vld [vmem:[#allocation17 + $0x10] sm:$0xff]  ;;  %4607 = vmatpush3.msra.mxu1 %v2298_v37 }
 0x973   : > { %4571 = vmatprep.subr.mxu0 %v2151_v39  ;;  %v6323_v37 = vld [vmem:[%s839_s2] sm:$0xff] }
 0x974   : > { %4572 = vmatpush3.msra.mxu0 %v2151_v39  ;;  %v2297_v39 = vld [vmem:[#allocation16 + $0x30] sm:$0xff]  ;;  %vm2653_vm15 = vcmp.eq.f32.partialorder %v6323_v37, 0.0 }
 0x975   : > { %4573 = vmatprep.subr.mxu0 %v2150_v40  ;;  %4608 = vmatprep.subr.mxu1 %v2297_v39 }
 0x976   : > { %4574 = vmatpush3.msra.mxu0 %v2150_v40  ;;  %v2383_v40 = vld [vmem:[#allocation17 + $0x8] sm:$0xff]  ;;  %4609 = vmatpush3.msra.mxu1 %v2297_v39 }
 0x977   : > { %4575 = vmatprep.subr.mxu0 %v2149_v41 }
 0x978   : > { %4576 = vmatpush3.msra.mxu0 %v2149_v41  ;;  %v2296_v41 = vld [vmem:[#allocation16 + $0x28] sm:$0xff] }
 0x979   : > { %4577 = vmatprep.subr.mxu0 %v2148_v42  ;;  %4610 = vmatprep.subr.mxu1 %v2296_v41 }
 0x97a   : > { %4578 = vmatpush3.msra.mxu0 %v2148_v42  ;;  %v2382_v42 = vld [vmem:[#allocation17] sm:$0xff]  ;;  %4611 = vmatpush3.msra.mxu1 %v2296_v41 }
 0x97b   : > { %4579 = vmatprep.subr.mxu0 %v2147_v43 }
 0x97c   : > { %4580 = vmatpush3.msra.mxu0 %v2147_v43  ;;  %v6271_v43 = vld [vmem:[%s830_s24] sm:$0xff] }
 0x97d   : > { %4581 = vmatprep.subr.mxu0 %v2146_v44 }
 0x97e   : > { %4582 = vmatpush3.msra.mxu0 %v2146_v44  ;;  %v2295_v44 = vld [vmem:[#allocation16 + $0x20] sm:$0xff] }
 0x97f   : > { %4583 = vmatprep.subr.mxu0 %v2145_v46  ;;  %4612 = vmatprep.subr.mxu1 %v2295_v44 }
 0x980   : > { %4584 = vmatpush3.msra.mxu0 %v2145_v46  ;;  %v2294_v46 = vld [vmem:[#allocation16 + $0x18] sm:$0xff]  ;;  %4613 = vmatpush3.msra.mxu1 %v2295_v44 }
 0x981   : > { %4585 = vmatprep.subr.mxu0 %v2144_v48  ;;  %4614 = vmatprep.subr.mxu1 %v2294_v46 }
 0x982   : > { %4586 = vmatpush3.msra.mxu0 %v2144_v48  ;;  %4615 = vmatpush3.msra.mxu1 %v2294_v46  ;;  %v2292_v48 = vld [vmem:[#allocation16 + $0x8] sm:$0xff] }
 0x983   : > { %4625 = vmatprep.subr.mxu0 %v2397_v14 }
 0xa19   : > { %v4540_v45 = vpop.f32.mrf.mxu0 }
 0xa1b   : > { %v1899_v47 = vpop.f32.mrf.mxu0 }
 0xa1c   : > { %v4963_v49 = vpack.i.bf16 %v4540_v45, %v1899_v47  ;;  %v6275_v45 = vld [vmem:[%s830_s24 + $0x8] sm:$0xff]  ;;  %v2293_v47 = vld [vmem:[#allocation16 + $0x10] sm:$0xff] }
 0xa1d   : > { %4616 = vmatprep.subr.mxu1 %v2293_v47 }
 0xa1e   : > { %4964 = vrot.lane.b32.xlu1 %v4963_v49, %s5565_s4  ;;  %4617 = vmatpush3.msra.mxu1 %v2293_v47  ;;  %v2291_v49 = vld [vmem:[#allocation16] sm:$0xff] }
 0xa1f   : > { %4618 = vmatprep.subr.mxu1 %v2292_v48 }
 0xa20   : > { %4619 = vmatpush3.msra.mxu1 %v2292_v48 }
 0xa21   : > { %4620 = vmatprep.subr.mxu1 %v2291_v49 }
 0xa22   : > { %4621 = vmatpush3.msra.mxu1 %v2291_v49 }
 0xa23   : > { %v4554_v50 = vpop.f32.mrf.mxu0 }
 0xa25   : > { %v2103_v51 = vpop.f32.mrf.mxu0 }
 0xa26   : > { %v4968_v52 = vpack.i.bf16 %v4554_v50, %v2103_v51  ;;  %v2488_v50 = vld [vmem:[#allocation19 + $0x78] sm:$0xff] }
 0xa27   : > { %4660 = vmatprep.subr.mxu1 %v2488_v50 }
 0xa28   : > { %4969 = vrot.lane.b32.xlu0 %v4968_v52, %s5564_s25 }
 0xa90   : > { %v4965_v54 = vpop.permute.xlu1 %4964 }
 0xa91   : > { %v4967_v57 = vunpack.i.h.bf16 %v4965_v54  ;;  %v4966_v60 = vunpack.i.l.bf16 %v4965_v54 }
 0xa93   : > { %v2139_v3 = vsel %vm2138_vm8, %v2136_v2, %v4966_v60  ;;  %v2140_v5 = vsel %vm2138_vm8, %v2137_v62, %v4967_v57 }
 0xa9a   : > { %v4970_v61 = vpop.permute.xlu0 %4969 }
 0xa9b   : > { %v4972_v63 = vunpack.i.h.bf16 %v4970_v61  ;;  %v4971_v29 = vunpack.i.l.bf16 %v4970_v61 }
 0xa9d   : > { %v2142_v6 = vsel %vm2141_vm9, %v2139_v3, %v4971_v29  ;;  %v2143_v28 = vsel %vm2141_vm9, %v2140_v5, %v4972_v63 }
 0xa9e   : > { %4587 = vmatprep.mubr.f32.mxu0 %v2142_v6 }
 0xa9f   : > { %4588 = vmatmul.mubr.f32.vlgmr.msra.gmra.mxu0 %v2143_v28  ;;  %v4109_v28 = vld [vmem:[%s6532_s10] ss:$0 sm:$0xff] }
 0xaa0   : > { %4626 = vmatpush3.msra.mxu0 %v2397_v14  ;;  %4657 = vmatprep.mubr.f32.mxu0 %v6271_v43 }
 0xaa1   : > { %4627 = vmatprep.subr.mxu0 %v2396_v15 }
 0xaa2   : > { %4628 = vmatpush3.msra.mxu0 %v2396_v15  ;;  %v2487_v15 = vld [vmem:[#allocation19 + $0x70] sm:$0xff] }
 0xaa3   : > { %4629 = vmatprep.subr.mxu0 %v2395_v16 }
 0xaa4   : > { %4630 = vmatpush3.msra.mxu0 %v2395_v16  ;;  %v2486_v16 = vld [vmem:[#allocation19 + $0x68] sm:$0xff] }
 0xaa5   : > { %4631 = vmatprep.subr.mxu0 %v2394_v17 }
 0xaa6   : > { %4632 = vmatpush3.msra.mxu0 %v2394_v17  ;;  %v2484_v17 = vld [vmem:[#allocation19 + $0x58] sm:$0xff] }
 0xaa7   : > { %4633 = vmatprep.subr.mxu0 %v2393_v18 }
 0xaa8   : > { %4634 = vmatpush3.msra.mxu0 %v2393_v18  ;;  %v2482_v18 = vld [vmem:[#allocation19 + $0x48] sm:$0xff] }
 0xaa9   : > { %4635 = vmatprep.subr.mxu0 %v2392_v20 }
 0xaaa   : > { %4636 = vmatpush3.msra.mxu0 %v2392_v20  ;;  %v2480_v20 = vld [vmem:[#allocation19 + $0x38] sm:$0xff] }
 0xaab   : > { %4637 = vmatprep.subr.mxu0 %v2391_v21 }
 0xaac   : > { %4638 = vmatpush3.msra.mxu0 %v2391_v21  ;;  %v2478_v21 = vld [vmem:[#allocation19 + $0x28] sm:$0xff] }
 0xaad   : > { %4639 = vmatprep.subr.mxu0 %v2390_v23 }
 0xaae   : > { %4640 = vmatpush3.msra.mxu0 %v2390_v23  ;;  %v2476_v23 = vld [vmem:[#allocation19 + $0x18] sm:$0xff] }
 0xaaf   : > { %4641 = vmatprep.subr.mxu0 %v2389_v22 }
 0xab0   : > { %4642 = vmatpush3.msra.mxu0 %v2389_v22  ;;  %v2474_v22 = vld [vmem:[#allocation19 + $0x8] sm:$0xff] }
 0xab1   : > { %4643 = vmatprep.subr.mxu0 %v2388_v31 }
 0xab2   : > { %4644 = vmatpush3.msra.mxu0 %v2388_v31 }
 0xab3   : > { %4645 = vmatprep.subr.mxu0 %v2387_v32 }
 0xab4   : > { %4646 = vmatpush3.msra.mxu0 %v2387_v32 }
 0xab5   : > { %4647 = vmatprep.subr.mxu0 %v2386_v34 }
 0xab6   : > { %4648 = vmatpush3.msra.mxu0 %v2386_v34 }
 0xab7   : > { %4649 = vmatprep.subr.mxu0 %v2385_v36 }
 0xab8   : > { %4650 = vmatpush3.msra.mxu0 %v2385_v36  ;;  %v6319_v36 = vld [vmem:[%s839_s2 + $0x8] sm:$0xff]  ;;  %s6643_s2 = sld [smem:[#allocation56_spill]] }
 0xab9   : > { %4651 = vmatprep.subr.mxu0 %v2384_v38  ;;  %vm2654_vm14 = vcmp.eq.f32.partialorder %v6319_v36, 0.0 }
 0xaba   : > { %4652 = vmatpush3.msra.mxu0 %v2384_v38 }
 0xabb   : > { %4653 = vmatprep.subr.mxu0 %v2383_v40 }
 0xabc   : > { %4654 = vmatpush3.msra.mxu0 %v2383_v40 }
 0xabd   : > { %4655 = vmatprep.subr.mxu0 %v2382_v42 }
 0xabe   : > { %4656 = vmatpush3.msra.mxu0 %v2382_v42 }
 0xabf   : > { %4658 = vmatmul.mubr.f32.vlgmr.msra.gmra.mxu0 %v6275_v45 }
 0xb5f   : > { %v4589_v7 = vpop.f32.mrf.mxu0 }
 0xb60   : > { %v6252_v9 = vadd.f32 %v4589_v7, %v6083_v1 }
 0xb61   : > { %v2226_v58 = vpop.f32.mrf.mxu0 }
 0xb62   : > { %v6255_v4 = vadd.f32 %v2226_v58, %v6080_v0  ;;  %2239 = vadd.xlane.f32.xlu0 %v6252_v9 }
 0xb64   : > { %2237 = vadd.xlane.f32.xlu1 %v6255_v4 }
 0xb7f   : > { %v6289_v31 = vpop.f32.mrf.mxu0 }
 0xb81   : > { %v6295_v24 = vpop.f32.mrf.mxu0 }
 0xbeb   : > { %v2240_v59 = vpop.xlane.xlu0 %2239 }
 0xbec   : > { %v2242_v11 = vmul.f32 0.0078125, %v2240_v59  ;;  %v4110_v59 = vld [vmem:[%s6533_s11] ss:$0 sm:$0xff] }
 0xbed   : > { %v2238_v10 = vpop.xlane.xlu1 %2237 }
 0xbee   : > { %v2241_v8 = vmul.f32 0.0078125, %v2238_v10  ;;  %v6263_v13 = vsub.f32 %v6252_v9, %v2242_v11 }
 0xbf0   : > { %v6260_v12 = vsub.f32 %v6255_v4, %v2241_v8  ;;  %v2246_v0 = vmul.f32 %v6263_v13, %v6263_v13  ;;  %v2275_v11 = vmul.f32 %v4109_v28, %v6263_v13  ;;  %v2483_v13 = vld [vmem:[#allocation19 + $0x50] sm:$0xff] }
 0xbf2   : > { %v2245_v1 = vmul.f32 %v6260_v12, %v6260_v12  ;;  %v2274_v7 = vmul.f32 %v4109_v28, %v6260_v12  ;;  %v2485_v12 = vld [vmem:[#allocation19 + $0x60] sm:$0xff] }
 0xbf4   : > { %2247 = vadd.xlane.f32.xlu0 %v2245_v1 }
 0xbf8   : > { %2249 = vadd.xlane.f32.xlu0 %v2246_v0 }
 0xc7d   : > { %v2248_v51 = vpop.xlane.xlu0 %2247 }
 0xc7e   : > { %v2251_v52 = vmul.f32 0.007874016, %v2248_v51 }
 0xc80   : > { %5028 = vrsqrt.f32 %v2251_v52  ;;  %vm2255_vm10 = vcmp.eq.f32.partialorder %v2251_v52, inf  ;;  %v2258_v57 = vand.u32 2147483648, %v2251_v52  ;;  %vm2257_vm11 = vcmp.eq.f32.partialorder %v2251_v52, 0.0 }
 0xc81   : > { %v2250_v53 = vpop.xlane.xlu0 %2249 }
 0xc82   : > { %v2252_v54 = vmul.f32 0.007874016, %v2250_v53 }
 0xc84   : > { %5030 = vrsqrt.f32 %v2252_v54  ;;  %vm2262_vm12 = vcmp.eq.f32.partialorder %v2252_v54, inf  ;;  %v2265_v2 = vand.u32 2147483648, %v2252_v54  ;;  %vm2264_vm13 = vcmp.eq.f32.partialorder %v2252_v54, 0.0 }
 0xc8d   : > { %v5029_v55 = vpop.eup %5028 }
 0xc8e   : > { %v2254_v56 = vmul.f32 %v5029_v55, %v2251_v52 }
 0xc90   : > { %v2256_v60 = vsel %vm2255_vm10, %v2251_v52, %v2254_v56 }
 0xc91   : > { %v5031_v61 = vpop.eup %5030  ;;  %v2259_v62 = vsel %vm2257_vm11, %v2258_v57, %v2256_v60 }
 0xc92   : > { %v2261_v63 = vmul.f32 %v5031_v61, %v2252_v54  ;;  %v2276_v29 = vadd.f32 1e-06, %v2259_v62 }
 0xc94   : > { %v2263_v3 = vsel %vm2262_vm12, %v2252_v54, %v2261_v63  ;;  %5032 = vrcp.f32 %v2276_v29 }
 0xc95   : > { %v2266_v5 = vsel %vm2264_vm13, %v2265_v2, %v2263_v3 }
 0xc96   : > { %v2277_v6 = vadd.f32 1e-06, %v2266_v5 }
 0xc98   : > { %5034 = vrcp.f32 %v2277_v6 }
 0xca1   : > { %v5033_v58 = vpop.eup %5032 }
 0xca2   : > { %v2279_v10 = vmul.f32 %v5033_v58, %v2274_v7 }
 0xca4   : > { %v2289_v8 = vadd.f32 %v4110_v59, %v2279_v10 }
 0xca5   : > { %v5035_v1 = vpop.eup %5034 }
 0xca6   : > { %v2281_v0 = vmul.f32 %v5035_v1, %v2275_v11  ;;  %4622 = vmatprep.mubr.f32.mxu1 %v2289_v8 }
 0xca8   : > { %v2290_v14 = vadd.f32 %v4110_v59, %v2281_v0 }
 0xcaa   : > { %4623 = vmatmul.mubr.f32.vlgmr.msra.gmra.mxu1 %v2290_v14 }
 0xcab   : > { %4661 = vmatpush3.msra.mxu1 %v2488_v50  ;;  %4692 = vmatprep.mubr.f32.mxu1 %v6271_v43 }
 0xcac   : > { %4662 = vmatprep.subr.mxu1 %v2487_v15 }
 0xcad   : > { %4663 = vmatpush3.msra.mxu1 %v2487_v15 }
 0xcae   : > { %4664 = vmatprep.subr.mxu1 %v2486_v16 }
 0xcaf   : > { %4665 = vmatpush3.msra.mxu1 %v2486_v16 }
 0xcb0   : > { %4666 = vmatprep.subr.mxu1 %v2485_v12 }
 0xcb1   : > { %4667 = vmatpush3.msra.mxu1 %v2485_v12 }
 0xcb2   : > { %4668 = vmatprep.subr.mxu1 %v2484_v17 }
 0xcb3   : > { %4669 = vmatpush3.msra.mxu1 %v2484_v17 }
 0xcb4   : > { %4670 = vmatprep.subr.mxu1 %v2483_v13 }
 0xcb5   : > { %4671 = vmatpush3.msra.mxu1 %v2483_v13 }
 0xcb6   : > { %4672 = vmatprep.subr.mxu1 %v2482_v18 }
 0xcb7   : > { %4673 = vmatpush3.msra.mxu1 %v2482_v18 }
 0xcb8   : > { %4674 = vmatprep.subr.mxu1 %v2481_v19 }
 0xcb9   : > { %4675 = vmatpush3.msra.mxu1 %v2481_v19 }
 0xcba   : > { %4676 = vmatprep.subr.mxu1 %v2480_v20 }
 0xcbb   : > { %4677 = vmatpush3.msra.mxu1 %v2480_v20 }
 0xcbc   : > { %4678 = vmatprep.subr.mxu1 %v2479_v26 }
 0xcbd   : > { %4679 = vmatpush3.msra.mxu1 %v2479_v26 }
 0xcbe   : > { %4680 = vmatprep.subr.mxu1 %v2478_v21 }
 0xcbf   : > { %4681 = vmatpush3.msra.mxu1 %v2478_v21 }
 0xcc0   : > { %4682 = vmatprep.subr.mxu1 %v2477_v27 }
 0xcc1   : > { %4683 = vmatpush3.msra.mxu1 %v2477_v27 }
 0xcc2   : > { %4684 = vmatprep.subr.mxu1 %v2476_v23 }
 0xcc3   : > { %4685 = vmatpush3.msra.mxu1 %v2476_v23 }
 0xcc4   : > { %4686 = vmatprep.subr.mxu1 %v2475_v25 }
 0xcc5   : > { %4687 = vmatpush3.msra.mxu1 %v2475_v25 }
 0xcc6   : > { %4688 = vmatprep.subr.mxu1 %v2474_v22 }
 0xcc7   : > { %4689 = vmatpush3.msra.mxu1 %v2474_v22 }
 0xcc8   : > { %4690 = vmatprep.subr.mxu1 %v2473_v30 }
 0xcc9   : > { %4691 = vmatpush3.msra.mxu1 %v2473_v30 }
 0xcca   : > { %4693 = vmatmul.mubr.f32.vlgmr.msra.gmra.mxu1 %v6275_v45  ;;  %4695 = vmatprep.subr.msk.mxu1 %vm1300_vm4, %v6289_v31 }
 0xccb   : > { %4696 = vmatpush3.xpose.msk.msra.mxu1 %vm1300_vm4, %v6289_v31 }
 0xccc   : > { %4697 = vmatprep.subr.msk.mxu1 %vm1300_vm4, %v6295_v24 }
 0xccf   : > { %4698 = vmatpush3.xpose.msk.msra.mxu1 %vm1300_vm4, %v6295_v24 }
 0xd6a   : > { %v6301_v32 = vpop.f32.mrf.mxu1 }
 0xd6c   : > { %v6303_v33 = vpop.f32.mrf.mxu1 }
 0xd6d   : > { %4699 = vmatprep.mubr.msk.f32.mxu1 %vm1300_vm4, %v6303_v33 }
 0xd6e   : > { %4700 = vmatmul.mubr.msk.f32.vlgmr.msra.gmra.mxu1 %vm1300_vm4, %v6301_v32 }
 0xd8a   : > { %v6309_v34 = vpop.f32.mrf.mxu1 }
 0xd8b   : > { %4702 = vmatprep.subr.mxu1 %v6309_v34 }
 0xd8c   : > { %v6312_v35 = vpop.f32.mrf.mxu1  ;;  %4703 = vmatpush3.msra.mxu1 %v6309_v34 }
 0xd8d   : > { %4704 = vmatprep.subr.mxu1 %v6312_v35 }
 0xd8e   : > { %4705 = vmatpush3.msra.mxu1 %v6312_v35 }
 0xe2e   : > { %v4701_v38 = vpop.f32.mrf.mxu1 }
 0xe2f   : > { %v2652_v39 = vmul.f32 0.17677669, %v4701_v38 }
 0xe30   : > { %v2642_v40 = vpop.f32.mrf.mxu1 }
 0xe31   : > { %v2651_v41 = vmul.f32 0.17677669, %v2642_v40  ;;  %v2656_v42 = vsel %vm2654_vm14, -1e+09, %v2652_v39 }
 0xe32   : > { %v2660_v43 = vsel %vm1394_vm6, %v2656_v42, -inf }
 0xe33   : > { %2661 = vmax.xlane.f32.xlu0 %v2660_v43  ;;  %v2655_v44 = vsel %vm2653_vm15, -1e+09, %v2651_v41 }
 0xe34   : > { %v2657_v45 = vsel %vm1394_vm6, %v2655_v44, -inf }
 0xe35   : > { %2658 = vmax.xlane.f32.xlu1 %v2657_v45 }
 0xe46   : > { %2766 = vrot.lane.b32.xlu1 %v6289_v31, %s5564_s25 }
 0xe4a   : > { %2760 = vrot.lane.b32.xlu1 %v6303_v33, %s5564_s25 }
 0xebc   : > { %v2662_v46 = vpop.xlane.xlu0 %2661 }
 0xebd   : > { %v2664_v47 = vsub.f32 %v2656_v42, %v2662_v46 }
 0xebe   : > { %v2659_v48 = vpop.xlane.xlu1 %2658 }
 0xebf   : > { %v2667_v49 = vmul.f32 1.442695, %v2664_v47  ;;  %v2663_v50 = vsub.f32 %v2655_v44, %v2659_v48 }
 0xec1   : > { %5036 = vpow2.f32 %v2667_v49  ;;  %v2665_v51 = vmul.f32 1.442695, %v2663_v50 }
 0xec2   : > { %v2767_v52 = vpop.permute.xlu1 %2766 }
 0xec3   : > { %5038 = vpow2.f32 %v2665_v51  ;;  %4709 = vmatprep.subr.msk.mxu1 %vm1300_vm4, %v2767_v52 }
 0xec6   : > { %v2761_v57 = vpop.permute.xlu1 %2760 }
 0xece   : > { %v5037_v53 = vpop.eup %5036 }
 0xecf   : > { %v2672_v54 = vsel %vm1394_vm6, %v5037_v53, 0.0 }
 0xed0   : > { %v5039_v55 = vpop.eup %5038  ;;  %2673 = vadd.xlane.f32.xlu0 %v2672_v54 }
 0xed1   : > { %v2669_v56 = vsel %vm1394_vm6, %v5039_v55, 0.0 }
 0xed2   : > { %2670 = vadd.xlane.f32.xlu1 %v2669_v56 }
 0xee3   : > { %2972 = vrot.lane.b32.xlu1 %v6289_v31, %s5565_s4 }
 0xee6   : > { %2764 = vrot.lane.b32.xlu0 %v6295_v24, %s5564_s25 }
 0xee7   : > { %2762 = vrot.lane.b32.xlu1 %v6301_v32, %s5564_s25 }
 0xeea   : > { %2970 = vrot.lane.b32.xlu0 %v6295_v24, %s5565_s4 }
 0xeeb   : > { %2966 = vrot.lane.b32.xlu1 %v6303_v33, %s5565_s4 }
 0xeee   : > { %2968 = vrot.lane.b32.xlu0 %v6301_v32, %s5565_s4 }
 0xf59   : > { %v2674_v60 = vpop.xlane.xlu0 %2673 }
 0xf5a   : > { %5040 = vrcp.f32 %v2674_v60 }
 0xf5b   : > { %v2671_v61 = vpop.xlane.xlu1 %2670 }
 0xf5c   : > { %5042 = vrcp.f32 %v2671_v61 }
 0xf5d   : > { %v2765_v5 = vpop.permute.xlu0 %2764 }
 0xf5f   : > { %v2973_v29 = vpop.permute.xlu1 %2972 }
 0xf61   : > { %v2971_v7 = vpop.permute.xlu0 %2970 }
 0xf63   : > { %v2763_v6 = vpop.permute.xlu1 %2762 }
 0xf65   : > { %v2969_v58 = vpop.permute.xlu0 %2968 }
 0xf67   : > { %v5041_v62 = vpop.eup %5040  ;;  %v2967_v28 = vpop.permute.xlu1 %2966 }
 0xf68   : > { %v2678_v3 = vmul.f32 %v5041_v62, %v5037_v53 }
 0xf69   : > { %v5043_v63 = vpop.eup %5042 }
 0xf6a   : > { %v2676_v2 = vmul.f32 %v5043_v63, %v5039_v55 }
 0xf6c   : > { %4706 = vmatprep.mubr.msk.f32.mxu1 %vm1394_vm6, %v2676_v2 }
 0xf6d   : > { %4707 = vmatmul.mubr.msk.f32.vlgmr.msra.gmra.mxu1 %vm1394_vm6, %v2678_v3 }
 0xf6e   : > { %4710 = vmatpush3.xpose.msk.msra.mxu1 %vm1300_vm4, %v2767_v52  ;;  %4713 = vmatprep.mubr.msk.f32.mxu1 %vm1300_vm4, %v2761_v57 }
 0xf6f   : > { %4711 = vmatprep.subr.msk.mxu1 %vm1300_vm4, %v2765_v5 }
 0xf72   : > { %4712 = vmatpush3.xpose.msk.msra.mxu1 %vm1300_vm4, %v2765_v5 }
 0xf73   : > { %4723 = vmatprep.subr.msk.mxu1 %vm1300_vm4, %v2973_v29 }
 0xf75   : > { %4714 = vmatmul.mubr.msk.f32.vlgmr.msra.gmra.mxu1 %vm1300_vm4, %v2763_v6 }
 0xf76   : > { %4724 = vmatpush3.xpose.msk.msra.mxu1 %vm1300_vm4, %v2973_v29  ;;  %4727 = vmatprep.mubr.msk.f32.mxu1 %vm1300_vm4, %v2967_v28 }
 0xf77   : > { %4725 = vmatprep.subr.msk.mxu1 %vm1300_vm4, %v2971_v7 }
 0xf7a   : > { %4726 = vmatpush3.xpose.msk.msra.mxu1 %vm1300_vm4, %v2971_v7 }
 0xf7d   : > { %4728 = vmatmul.mubr.msk.f32.vlgmr.msra.gmra.mxu1 %vm1300_vm4, %v2969_v58 }
0x102d   : > { %v6365_v59 = vpop.f32.mrf.mxu1 }
0x102f   : > { %v6367_v10 = vpop.f32.mrf.mxu1 }
0x1035   : > { %v4715_v11 = vpop.f32.mrf.mxu1 }
0x1036   : > { %v2852_v45 = vmul.f32 0.17677669, %v4715_v11 }
0x1037   : > { %v2842_v8 = vpop.f32.mrf.mxu1 }
0x1038   : > { %v2851_v18 = vmul.f32 0.17677669, %v2842_v8  ;;  %v2854_v46 = vsel %vm2654_vm14, -1e+09, %v2852_v45  ;;  %v3414_v45 = vld [vmem:[#allocation20 + $0x50] sm:$0xff] }
0x1039   : > { %v2858_v47 = vsel %vm1394_vm6, %v2854_v46, -inf }
0x103a   : > { %v2853_v19 = vsel %vm2653_vm15, -1e+09, %v2851_v18 }
0x103b   : > { %v2855_v20 = vsel %vm1394_vm6, %v2853_v19, -inf }
0x103d   : > { %v4729_v1 = vpop.f32.mrf.mxu1 }
0x103e   : > { %v3058_v0 = vmul.f32 0.17677669, %v4729_v1 }
0x103f   : > { %v3048_v14 = vpop.f32.mrf.mxu1 }
0x1040   : > { %v3057_v15 = vmul.f32 0.17677669, %v3048_v14  ;;  %v3060_v16 = vsel %vm2654_vm14, -1e+09, %v3058_v0 }
0x1041   : > { %v3064_v12 = vsel %vm1394_vm6, %v3060_v16, -inf }
0x1042   : > { %3065 = vmax.xlane.f32.xlu0 %v3064_v12  ;;  %v3059_v17 = vsel %vm2653_vm15, -1e+09, %v3057_v15 }
0x1043   : > { %v3061_v13 = vsel %vm1394_vm6, %v3059_v17, -inf }
0x1044   : > { %3062 = vmax.xlane.f32.xlu1 %v3061_v13 }
0x1055   : > { %3085 = vrot.lane.b32.xlu1 %v6309_v34, %s5565_s4 }
0x1059   : > { %3176 = vrot.lane.b32.xlu1 %v6289_v31, %s5566_s14 }
0x105d   : > { %3174 = vrot.lane.b32.xlu1 %v6295_v24, %s5566_s14 }
0x1061   : > { %3170 = vrot.lane.b32.xlu1 %v6303_v33, %s5566_s14 }
0x1085   : > { %2856 = vmax.xlane.f32.xlu1 %v2855_v20 }
0x10cb   : > { %v3066_v26 = vpop.xlane.xlu0 %3065 }
0x10cc   : > { %v3068_v21 = vsub.f32 %v3060_v16, %v3066_v26 }
0x10cd   : > { %v3063_v27 = vpop.xlane.xlu1 %3062 }
0x10ce   : > { %v3071_v23 = vmul.f32 1.442695, %v3068_v21  ;;  %v3067_v25 = vsub.f32 %v3059_v17, %v3063_v27 }
0x10d0   : > { %5044 = vpow2.f32 %v3071_v23  ;;  %v3069_v22 = vmul.f32 1.442695, %v3067_v25 }
0x10d1   : > { %v3086_v30 = vpop.permute.xlu1 %3085 }
0x10d2   : > { %5046 = vpow2.f32 %v3069_v22  ;;  %4730 = vmatprep.subr.mxu1 %v3086_v30 }
0x10d3   : > { %4731 = vmatpush3.msra.mxu1 %v3086_v30 }
0x10d5   : > { %v3177_v39 = vpop.permute.xlu1 %3176 }
0x10d9   : > { %v3175_v40 = vpop.permute.xlu1 %3174 }
0x10dd   : > { %v5045_v31 = vpop.eup %5044  ;;  %v3171_v41 = vpop.permute.xlu1 %3170 }
0x10de   : > { %v3076_v24 = vsel %vm1394_vm6, %v5045_v31, 0.0 }
0x10df   : > { %v5047_v33 = vpop.eup %5046  ;;  %3077 = vadd.xlane.f32.xlu0 %v3076_v24 }
0x10e0   : > { %v3073_v38 = vsel %vm1394_vm6, %v5047_v33, 0.0 }
0x10e3   : > { %3074 = vadd.xlane.f32.xlu0 %v3073_v38 }
0x10f9   : > { %3083 = vrot.lane.b32.xlu0 %v6312_v35, %s5565_s4 }
0x10fd   : > { %3172 = vrot.lane.b32.xlu0 %v6301_v32, %s5566_s14 }
0x110e   : > { %v2857_v42 = vpop.xlane.xlu1 %2856 }
0x110f   : > { %v2861_v43 = vsub.f32 %v2853_v19, %v2857_v42  ;;  %v3417_v42 = vld [vmem:[#allocation20 + $0x68] sm:$0xff] }
0x1111   : > { %v2863_v44 = vmul.f32 1.442695, %v2861_v43  ;;  %v3416_v43 = vld [vmem:[#allocation20 + $0x60] sm:$0xff] }
0x1113   : > { %5048 = vpow2.f32 %v2863_v44  ;;  %v3415_v44 = vld [vmem:[#allocation20 + $0x58] sm:$0xff] }
0x111c   : > { %2859 = vmax.xlane.f32.xlu0 %v2858_v47  ;;  %v3412_v47 = vld [vmem:[#allocation20 + $0x40] sm:$0xff] }
0x1120   : > { %v5049_v48 = vpop.eup %5048 }
0x1121   : > { %v2867_v49 = vsel %vm1394_vm6, %v5049_v48, 0.0 }
0x1122   : > { %2868 = vadd.xlane.f32.xlu1 %v2867_v49  ;;  %v3410_v49 = vld [vmem:[#allocation20 + $0x30] sm:$0xff] }
0x1133   : > { %2881 = vrot.lane.b32.xlu1 %v6309_v34, %s5564_s25 }
0x1137   : > { %3289 = vrot.lane.b32.xlu1 %v6309_v34, %s5566_s14 }
0x1168   : > { %v3078_v32 = vpop.xlane.xlu0 %3077 }
0x1169   : > { %5050 = vrcp.f32 %v3078_v32  ;;  %v3409_v32 = vld [vmem:[#allocation20 + $0x28] sm:$0xff] }
0x116c   : > { %v3075_v50 = vpop.xlane.xlu0 %3074 }
0x116d   : > { %5052 = vrcp.f32 %v3075_v50  ;;  %v3408_v50 = vld [vmem:[#allocation20 + $0x20] sm:$0xff] }
0x1170   : > { %v3084_v51 = vpop.permute.xlu0 %3083 }
0x1171   : > { %4732 = vmatprep.subr.mxu1 %v3084_v51 }
0x1172   : > { %4733 = vmatpush3.msra.mxu1 %v3084_v51  ;;  %v3407_v51 = vld [vmem:[#allocation20 + $0x18] sm:$0xff] }
0x1173   : > { %4737 = vmatprep.subr.msk.mxu1 %vm1300_vm4, %v3177_v39 }
0x1174   : > { %v3173_v34 = vpop.permute.xlu0 %3172 }
0x1176   : > { %v5051_v52 = vpop.eup %5050 }
0x1177   : > { %v3082_v55 = vmul.f32 %v5051_v52, %v5045_v31  ;;  %v3406_v52 = vld [vmem:[#allocation20 + $0x10] sm:$0xff] }
0x117a   : > { %v5053_v53 = vpop.eup %5052 }
0x117b   : > { %v3080_v54 = vmul.f32 %v5053_v53, %v5047_v33 }
0x117d   : > { %4734 = vmatprep.mubr.msk.f32.mxu1 %vm1394_vm6, %v3080_v54 }
0x117e   : > { %4735 = vmatmul.mubr.msk.f32.vlgmr.msra.gmra.mxu1 %vm1394_vm6, %v3082_v55  ;;  %v3405_v55 = vld [vmem:[#allocation20 + $0x8] sm:$0xff] }
0x117f   : > { %4738 = vmatpush3.xpose.msk.msra.mxu1 %vm1300_vm4, %v3177_v39  ;;  %4741 = vmatprep.mubr.msk.f32.mxu1 %vm1300_vm4, %v3171_v41  ;;  %v3418_v41 = vld [vmem:[#allocation20 + $0x70] sm:$0xff] }
0x1180   : > { %4739 = vmatprep.subr.msk.mxu1 %vm1300_vm4, %v3175_v40 }
0x1183   : > { %4740 = vmatpush3.xpose.msk.msra.mxu1 %vm1300_vm4, %v3175_v40  ;;  %v3419_v40 = vld [vmem:[#allocation20 + $0x78] sm:$0xff] }
0x1186   : > { %4742 = vmatmul.mubr.msk.f32.vlgmr.msra.gmra.mxu1 %vm1300_vm4, %v3173_v34  ;;  %v3404_v34 = vld [vmem:[#allocation20] sm:$0xff] }
0x11a5   : > { %v2860_v62 = vpop.xlane.xlu0 %2859 }
0x11a6   : > { %v2862_v63 = vsub.f32 %v2854_v46, %v2860_v62  ;;  %v3413_v46 = vld [vmem:[#allocation20 + $0x48] sm:$0xff] }
0x11a8   : > { %v2865_v2 = vmul.f32 1.442695, %v2862_v63 }
0x11ab   : > { %v2869_v56 = vpop.xlane.xlu1 %2868 }
0x11ac   : > { %5054 = vrcp.f32 %v2869_v56 }
0x11ad   : > { %5056 = vpow2.f32 %v2865_v2 }
0x11af   : > { %v2882_v57 = vpop.permute.xlu1 %2881 }
0x11b0   : > { %4716 = vmatprep.subr.mxu0 %v2882_v57 }
0x11b1   : > { %4717 = vmatpush3.msra.mxu0 %v2882_v57 }
0x11b3   : > { %v3290_v27 = vpop.permute.xlu1 %3289 }
0x11b9   : > { %v5055_v60 = vpop.eup %5054 }
0x11ba   : > { %v2874_v61 = vmul.f32 %v5055_v60, %v5049_v48  ;;  %v5057_v14 = vpop.eup %5056  ;;  %v3411_v48 = vld [vmem:[#allocation20 + $0x38] sm:$0xff] }
0x11bb   : > { %v2870_v15 = vsel %vm1394_vm6, %v5057_v14, 0.0 }
0x11bc   : > { %4720 = vmatprep.mubr.msk.f32.mxu0 %vm1394_vm6, %v2874_v61 }
0x123e   : > { %v4736_v29 = vpop.f32.mrf.mxu1 }
0x1240   : > { %v3161_v3 = vpop.f32.mrf.mxu1 }
0x1241   : > { %v4978_v5 = vpack.i.bf16 %v4736_v29, %v3161_v3 }
0x1246   : > { %v4743_v6 = vpop.f32.mrf.mxu1 }
0x1247   : > { %v3262_v7 = vmul.f32 0.17677669, %v4743_v6 }
0x1248   : > { %v3252_v28 = vpop.f32.mrf.mxu1 }
0x1249   : > { %v3261_v58 = vmul.f32 0.17677669, %v3252_v28  ;;  %v3264_v1 = vsel %vm2654_vm14, -1e+09, %v3262_v7 }
0x124a   : > { %v3268_v0 = vsel %vm1394_vm6, %v3264_v1, -inf }
0x124b   : > { %v3263_v11 = vsel %vm2653_vm15, -1e+09, %v3261_v58 }
0x124c   : > { %v3265_v8 = vsel %vm1394_vm6, %v3263_v11, -inf }
0x124d   : > { %3266 = vmax.xlane.f32.xlu0 %v3265_v8 }
0x1251   : > { %3269 = vmax.xlane.f32.xlu0 %v3268_v0 }
0x1255   : > { %2871 = vadd.xlane.f32.xlu0 %v2870_v15 }
0x12d6   : > { %v3267_v16 = vpop.xlane.xlu0 %3266 }
0x12d7   : > { %v3271_v12 = vsub.f32 %v3263_v11, %v3267_v16 }
0x12d9   : > { %v3273_v17 = vmul.f32 1.442695, %v3271_v12 }
0x12da   : > { %v3270_v13 = vpop.xlane.xlu0 %3269 }
0x12db   : > { %5058 = vpow2.f32 %v3273_v17  ;;  %v3272_v37 = vsub.f32 %v3264_v1, %v3270_v13 }
0x12dd   : > { %v3275_v18 = vmul.f32 1.442695, %v3272_v37 }
0x12de   : > { %v2872_v21 = vpop.xlane.xlu0 %2871 }
0x12df   : > { %5060 = vpow2.f32 %v3275_v18 }
0x12e0   : > { %5062 = vrcp.f32 %v2872_v21  ;;  %v3579_v21 = vld [vmem:[#allocation22 + $0xe0] sm:$0xff] }
0x12e8   : > { %v5059_v19 = vpop.eup %5058 }
0x12e9   : > { %v3277_v20 = vsel %vm1394_vm6, %v5059_v19, 0.0 }
0x12ea   : > { %3278 = vadd.xlane.f32.xlu1 %v3277_v20  ;;  %v3582_v20 = vld [vmem:[#allocation22 + $0xf8] sm:$0xff] }
0x12eb   : > { %3595 = vmatprep.subr.mxu1 %v3582_v20 }
0x12ec   : > { %v5061_v36 = vpop.eup %5060 }
0x12ed   : > { %v3280_v26 = vsel %vm1394_vm6, %v5061_v36, 0.0  ;;  %v5063_v22 = vpop.eup %5062 }
0x12ee   : > { %3281 = vadd.xlane.f32.xlu0 %v3280_v26  ;;  %v2876_v31 = vmul.f32 %v5063_v22, %v5057_v14  ;;  %v3580_v26 = vld [vmem:[#allocation22 + $0xe8] sm:$0xff]  ;;  %v3575_v22 = vld [vmem:[#allocation22 + $0xc0] sm:$0xff] }
0x12fb   : > { %3287 = vrot.lane.b32.xlu1 %v6312_v35, %s5566_s14 }
0x1304   : > { %2879 = vrot.lane.b32.xlu0 %v6312_v35, %s5564_s25 }
0x1308   : > { %4979 = vrot.lane.b32.xlu0 %v4978_v5, %s5565_s4  ;;  %s4147_s4 = sshll.u32 %s5707_s23, 8  ;;  %s5568_s23 = smov [#allocation25]  }
0x1309   : > { %s6478_s7 = scalar_lea.hbm %s6647_s26, %s4147_s4  ;;  %s5452_s18 = sshll.u32 %s5568_s23, 4  ;;  %s5453_s18 = int_to_ptr.vmem [resolvable:$false] %s5452_s18 }
0x130a   : > { %s5454_s5 = scalar_lea.vmem %s5453_s18, 512 }
0x1373   : > { %v3279_v23 = vpop.xlane.xlu1 %3278 }
0x1374   : > { %5064 = vrcp.f32 %v3279_v23  ;;  %v3577_v23 = vld [vmem:[#allocation22 + $0xd0] sm:$0xff] }
0x1377   : > { %v3282_v25 = vpop.xlane.xlu0 %3281  ;;  %v3288_v24 = vpop.permute.xlu1 %3287 }
0x1378   : > { %5066 = vrcp.f32 %v3282_v25  ;;  %v3576_v25 = vld [vmem:[#allocation22 + $0xc8] sm:$0xff] }
0x137b   : > { %v2880_v30 = vpop.permute.xlu0 %2879 }
0x137c   : > { %4718 = vmatprep.subr.mxu0 %v2880_v30 }
0x137d   : > { %4719 = vmatpush3.msra.mxu0 %v2880_v30  ;;  %v3574_v30 = vld [vmem:[#allocation22 + $0xb8] sm:$0xff] }
0x137e   : > { %4721 = vmatmul.mubr.msk.f32.vlgmr.msra.gmra.mxu0 %vm1394_vm6, %v2876_v31  ;;  %4744 = vmatprep.subr.mxu0 %v3290_v27  ;;  %v3573_v31 = vld [vmem:[#allocation22 + $0xb0] sm:$0xff] }
0x137f   : > { %4745 = vmatpush3.msra.mxu0 %v3290_v27  ;;  %v4980_v2 = vpop.permute.xlu0 %4979  ;;  %v3578_v27 = vld [vmem:[#allocation22 + $0xd8] sm:$0xff] }
0x1380   : > { %4746 = vmatprep.subr.mxu0 %v3288_v24  ;;  %v4982_v6 = vunpack.i.h.bf16 %v4980_v2  ;;  %v4981_v28 = vunpack.i.l.bf16 %v4980_v2  ;;  %v3688_v2 = vld [vmem:[#allocation23 + $0x60] sm:$0xff] }
0x1381   : > { %v5065_v35 = vpop.eup %5064  ;;  %4747 = vmatpush3.msra.mxu0 %v3288_v24  ;;  %v3572_v24 = vld [vmem:[#allocation22 + $0xa8] sm:$0xff] }
0x1382   : > { %v3284_v33 = vmul.f32 %v5065_v35, %v5059_v19  ;;  %4751 = vmatprep.subr.mxu0 %v3419_v40  ;;  %v3571_v35 = vld [vmem:[#allocation22 + $0xa0] sm:$0xff] }
0x1384   : > { %4748 = vmatprep.mubr.msk.f32.mxu0 %vm1394_vm6, %v3284_v33  ;;  %v3570_v33 = vld [vmem:[#allocation22 + $0x98] sm:$0xff] }
0x1385   : > { %v5067_v38 = vpop.eup %5066 }
0x1386   : > { %v3286_v39 = vmul.f32 %v5067_v38, %v5061_v36  ;;  %v3581_v36 = vld [vmem:[#allocation22 + $0xf0] sm:$0xff] }
0x1387   : > { %3596 = vmatpush1.msra.mxu1 %v3581_v36  ;;  %v3569_v38 = vld [vmem:[#allocation22 + $0x90] sm:$0xff] }
0x1388   : > { %4749 = vmatmul.mubr.msk.f32.vlgmr.msra.gmra.mxu0 %vm1394_vm6, %v3286_v39  ;;  %3597 = vmatprep.subr.mxu1 %v3580_v26  ;;  %v3568_v39 = vld [vmem:[#allocation22 + $0x88] sm:$0xff] }
0x1389   : > { %4752 = vmatpush3.msra.mxu0 %v3419_v40  ;;  %3598 = vmatpush1.msra.mxu1 %v3579_v21  ;;  %v3567_v40 = vld [vmem:[#allocation22 + $0x80] sm:$0xff] }
0x138a   : > { %4753 = vmatprep.subr.mxu0 %v3418_v41  ;;  %3599 = vmatprep.subr.mxu1 %v3578_v27 }
0x138b   : > { %4754 = vmatpush3.msra.mxu0 %v3418_v41  ;;  %3600 = vmatpush1.msra.mxu1 %v3577_v23  ;;  %v3566_v41 = vld [vmem:[#allocation22 + $0x78] sm:$0xff] }
0x138c   : > { %4755 = vmatprep.subr.mxu0 %v3417_v42  ;;  %3601 = vmatprep.subr.mxu1 %v3576_v25 }
0x138d   : > { %4756 = vmatpush3.msra.mxu0 %v3417_v42  ;;  %3602 = vmatpush1.msra.mxu1 %v3575_v22  ;;  %v3565_v42 = vld [vmem:[#allocation22 + $0x70] sm:$0xff] }
0x138e   : > { %4757 = vmatprep.subr.mxu0 %v3416_v43  ;;  %3603 = vmatprep.subr.mxu1 %v3574_v30 }
0x138f   : > { %4758 = vmatpush3.msra.mxu0 %v3416_v43  ;;  %3604 = vmatpush1.msra.mxu1 %v3573_v31  ;;  %v3564_v43 = vld [vmem:[#allocation22 + $0x68] sm:$0xff] }
0x1390   : > { %4759 = vmatprep.subr.mxu0 %v3415_v44  ;;  %3605 = vmatprep.subr.mxu1 %v3572_v24 }
0x1391   : > { %4760 = vmatpush3.msra.mxu0 %v3415_v44  ;;  %3606 = vmatpush1.msra.mxu1 %v3571_v35  ;;  %v3563_v44 = vld [vmem:[#allocation22 + $0x60] sm:$0xff] }
0x1392   : > { %4761 = vmatprep.subr.mxu0 %v3414_v45  ;;  %3607 = vmatprep.subr.mxu1 %v3570_v33 }
0x1393   : > { %4762 = vmatpush3.msra.mxu0 %v3414_v45  ;;  %3608 = vmatpush1.msra.mxu1 %v3569_v38  ;;  %v5567_v45 = vmov 0.0   ;;  %v4135_v38 = vld [vmem:[%s6642_s1] ss:$0 sm:$0xff] }
0x1394   : > { %4763 = vmatprep.subr.mxu0 %v3413_v46  ;;  %3609 = vmatprep.subr.mxu1 %v3568_v39 }
0x1395   : > { %4764 = vmatpush3.msra.mxu0 %v3413_v46  ;;  %3610 = vmatpush1.msra.mxu1 %v3567_v40  ;;  %v3562_v46 = vld [vmem:[#allocation22 + $0x58] sm:$0xff] }
0x1396   : > { %4765 = vmatprep.subr.mxu0 %v3412_v47  ;;  %3611 = vmatprep.subr.mxu1 %v3566_v41  ;;  %v4136_v41 = vld [vmem:[%s6643_s2] ss:$0 sm:$0xff] }
0x1397   : > { %4766 = vmatpush3.msra.mxu0 %v3412_v47  ;;  %3659 = vmatprep.mubr.f32.mxu1 %v5567_v45  ;;  %v3561_v47 = vld [vmem:[#allocation22 + $0x50] sm:$0xff] }
0x1398   : > { %4767 = vmatprep.subr.mxu0 %v3411_v48  ;;  %3612 = vmatpush1.msra.mxu1 %v3565_v42 }
0x1399   : > { %4768 = vmatpush3.msra.mxu0 %v3411_v48  ;;  %3613 = vmatprep.subr.mxu1 %v3564_v43  ;;  %v3560_v48 = vld [vmem:[#allocation22 + $0x48] sm:$0xff] }
0x139a   : > { %4769 = vmatprep.subr.mxu0 %v3410_v49  ;;  %3614 = vmatpush1.msra.mxu1 %v3563_v44 }
0x139b   : > { %4770 = vmatpush3.msra.mxu0 %v3410_v49  ;;  %3615 = vmatprep.subr.mxu1 %v3562_v46  ;;  %v3559_v49 = vld [vmem:[#allocation22 + $0x40] sm:$0xff] }
0x139c   : > { %4771 = vmatprep.subr.mxu0 %v3409_v32  ;;  %3616 = vmatpush1.msra.mxu1 %v3561_v47 }
0x139d   : > { %4772 = vmatpush3.msra.mxu0 %v3409_v32  ;;  %v3558_v32 = vld [vmem:[#allocation22 + $0x38] sm:$0xff]  ;;  %3617 = vmatprep.subr.mxu1 %v3560_v48 }
0x139e   : > { %4773 = vmatprep.subr.mxu0 %v3408_v50  ;;  %3618 = vmatpush1.msra.mxu1 %v3559_v49  ;;  %v3695_v49 = vld [vmem:[#allocation23 + $0x98] sm:$0xff] }
0x139f   : > { %4774 = vmatpush3.msra.mxu0 %v3408_v50  ;;  %v3557_v50 = vld [vmem:[#allocation22 + $0x30] sm:$0xff]  ;;  %3619 = vmatprep.subr.mxu1 %v3558_v32  ;;  %v3679_v32 = vld [vmem:[#allocation23 + $0x18] sm:$0xff] }
0x13a0   : > { %4775 = vmatprep.subr.mxu0 %v3407_v51  ;;  %3620 = vmatpush1.msra.mxu1 %v3557_v50  ;;  %v3678_v50 = vld [vmem:[#allocation23 + $0x10] sm:$0xff] }
0x13a1   : > { %4776 = vmatpush3.msra.mxu0 %v3407_v51  ;;  %v3556_v51 = vld [vmem:[#allocation22 + $0x28] sm:$0xff] }
0x13a2   : > { %4777 = vmatprep.subr.mxu0 %v3406_v52  ;;  %3621 = vmatprep.subr.mxu1 %v3556_v51  ;;  %v3693_v51 = vld [vmem:[#allocation23 + $0x88] sm:$0xff] }
0x13a3   : > { %4778 = vmatpush3.msra.mxu0 %v3406_v52  ;;  %v3555_v52 = vld [vmem:[#allocation22 + $0x20] sm:$0xff] }
0x13a4   : > { %4779 = vmatprep.subr.mxu0 %v3405_v55  ;;  %3622 = vmatpush1.msra.mxu1 %v3555_v52  ;;  %v3677_v52 = vld [vmem:[#allocation23 + $0x8] sm:$0xff] }
0x13a5   : > { %4780 = vmatpush3.msra.mxu0 %v3405_v55  ;;  %v3552_v55 = vld [vmem:[#allocation22 + $0x8] sm:$0xff] }
0x13a6   : > { %4781 = vmatprep.subr.mxu0 %v3404_v34 }
0x13a7   : > { %4782 = vmatpush3.msra.mxu0 %v3404_v34  ;;  %v3551_v34 = vld [vmem:[#allocation22] sm:$0xff] }
0x143e   : > { %v4722_v53 = vpop.f32.mrf.mxu0 }
0x1440   : > { %v2957_v54 = vpop.f32.mrf.mxu0 }
0x1441   : > { %v4973_v56 = vpack.i.bf16 %v4722_v53, %v2957_v54  ;;  %v3554_v53 = vld [vmem:[#allocation22 + $0x18] sm:$0xff]  ;;  %v3553_v54 = vld [vmem:[#allocation22 + $0x10] sm:$0xff] }
0x1442   : > { %3623 = vmatprep.subr.mxu1 %v3554_v53  ;;  %v3676_v53 = vld [vmem:[#allocation23] sm:$0xff] }
0x1443   : > { %4974 = vrot.lane.b32.xlu1 %v4973_v56, %s5566_s14  ;;  %3624 = vmatpush1.msra.mxu1 %v3553_v54  ;;  %v3707_v56 = vld [vmem:[#allocation23 + $0xf8] sm:$0xff]  ;;  %v3585_v54 = vlaneseq }
0x1444   : > { %3625 = vmatprep.subr.mxu1 %v3552_v55  ;;  %4356 = vmatprep.subr.mxu0 %v3707_v56 }
0x1445   : > { %3626 = vmatpush1.msra.mxu1 %v3551_v34  ;;  %v3583_v34 = vld [vmem:[%s6644_s22] sm:$0x3] }
0x1448   : > { %v4750_v57 = vpop.f32.mrf.mxu0 }
0x144a   : > { %v3365_v60 = vpop.f32.mrf.mxu0 }
0x144b   : > { %v4983_v61 = vpack.i.bf16 %v4750_v57, %v3365_v60  ;;  %v3691_v57 = vld [vmem:[#allocation23 + $0x78] sm:$0xff]  ;;  %v3706_v60 = vld [vmem:[#allocation23 + $0xf0] sm:$0xff] }
0x144d   : > { %4984 = vrot.lane.b32.xlu1 %v4983_v61, %s5564_s25  ;;  %v3690_v61 = vld [vmem:[#allocation23 + $0x70] sm:$0xff]  ;;  %s3808_s25 = sshll.u32 %s963_s15, 4  ;;  %s6473_s25 = int_to_ptr.vmem [resolvable:$true] %s3808_s25 }
0x144e   : > { %s5448_s9 = scalar_lea.vmem %s6473_s25, 256  ;;  %p5455_p6 = scmp.lt.s32.totalorder %s6473_s25, %s5453_s18 }
0x144f   : > { %p5449_p5 = scmp.ne.s32.totalorder %s6473_s25, %s5448_s9  ;;  %p5456_p0 = scmp.lt.s32.totalorder %s5454_s5, %s5448_s9 }
0x1451   : > { %p5450_p8 = pnand %p5449_p5, %p6648_p9  ;;  %p5457_p7 = por %p5456_p0, %p5455_p6 }
0x1453   : > { %p5451_p1 = pneg %p5450_p8 }
0x1455   : > { %p5458_p13 = pnand %p5457_p7, %p5451_p1 }
0x14b5   : > { %v4975_v62 = vpop.permute.xlu1 %4974 }
0x14b6   : > { %v4977_v63 = vunpack.i.h.bf16 %v4975_v62  ;;  %v4976_v29 = vunpack.i.l.bf16 %v4975_v62  ;;  %v3705_v62 = vld [vmem:[#allocation23 + $0xe8] sm:$0xff] }
0x14b8   : > { %v3399_v3 = vsel %vm1300_vm4, %v6365_v59, %v4977_v63  ;;  %v3398_v5 = vsel %vm1300_vm4, %v6367_v10, %v4976_v29  ;;  %v3689_v63 = vld [vmem:[#allocation23 + $0x68] sm:$0xff]  ;;  %v3704_v29 = vld [vmem:[#allocation23 + $0xe0] sm:$0xff] }
0x14b9   : > { %v3400_v8 = vsel %vm2138_vm8, %v3398_v5, %v4981_v28  ;;  %v3401_v1 = vsel %vm2138_vm8, %v3399_v3, %v4982_v6  ;;  %v3703_v3 = vld [vmem:[#allocation23 + $0xd8] sm:$0xff]  ;;  %v3702_v6 = vld [vmem:[#allocation23 + $0xd0] sm:$0xff] }
0x14ba   : > { %v3687_v5 = vld [vmem:[#allocation23 + $0x58] sm:$0xff]  ;;  %v3686_v28 = vld [vmem:[#allocation23 + $0x50] sm:$0xff] }
0x14bf   : > { %v4985_v7 = vpop.permute.xlu1 %4984 }
0x14c0   : > { %v4987_v58 = vunpack.i.h.bf16 %v4985_v7  ;;  %v4986_v11 = vunpack.i.l.bf16 %v4985_v7  ;;  %v3701_v7 = vld [vmem:[#allocation23 + $0xc8] sm:$0xff] }
0x14c2   : > { %v3402_v0 = vsel %vm2141_vm9, %v3400_v8, %v4986_v11  ;;  %v3403_v14 = vsel %vm2141_vm9, %v3401_v1, %v4987_v58  ;;  %v3685_v58 = vld [vmem:[#allocation23 + $0x48] sm:$0xff]  ;;  %v3700_v11 = vld [vmem:[#allocation23 + $0xc0] sm:$0xff]  ;;  %v3699_v1 = vld [vmem:[#allocation23 + $0xb8] sm:$0xff] }
0x14c3   : > { %4783 = vmatprep.mubr.f32.mxu0 %v3402_v0  ;;  %v3684_v8 = vld [vmem:[#allocation23 + $0x40] sm:$0xff]  ;;  %v3683_v0 = vld [vmem:[#allocation23 + $0x38] sm:$0xff] }
0x14c4   : > { %4784 = vmatmul.mubr.f32.vlgmr.msra.gmra.mxu0 %v3403_v14  ;;  %v3698_v14 = vld [vmem:[#allocation23 + $0xb0] sm:$0xff] }
0x14c5   : > { %4357 = vmatpush3.msra.mxu0 %v3691_v57 }
0x14c6   : > { %4358 = vmatprep.subr.mxu0 %v3706_v60 }
0x14c7   : > { %4359 = vmatpush3.msra.mxu0 %v3690_v61 }
0x14c8   : > { %4360 = vmatprep.subr.mxu0 %v3705_v62 }
0x14c9   : > { %4361 = vmatpush3.msra.mxu0 %v3689_v63 }
0x14ca   : > { %4362 = vmatprep.subr.mxu0 %v3704_v29 }
0x14cb   : > { %4363 = vmatpush3.msra.mxu0 %v3688_v2 }
0x14cc   : > { %4364 = vmatprep.subr.mxu0 %v3703_v3 }
0x14cd   : > { %4365 = vmatpush3.msra.mxu0 %v3687_v5 }
0x14ce   : > { %4366 = vmatprep.subr.mxu0 %v3702_v6 }
0x14cf   : > { %4367 = vmatpush3.msra.mxu0 %v3686_v28 }
0x14d0   : > { %4368 = vmatprep.subr.mxu0 %v3701_v7 }
0x14d1   : > { %4369 = vmatpush3.msra.mxu0 %v3685_v58 }
0x14d2   : > { %4370 = vmatprep.subr.mxu0 %v3700_v11 }
0x14d3   : > { %4371 = vmatpush3.msra.mxu0 %v3684_v8 }
0x14d4   : > { %4372 = vmatprep.subr.mxu0 %v3699_v1  ;;  %v4137_v1 = vld [vmem:[%s6645_s6] ss:$0 sm:$0xff] }
0x14d5   : > { %4373 = vmatpush3.msra.mxu0 %v3683_v0 }
0x14d6   : > { %4374 = vmatprep.subr.mxu0 %v3698_v14 }
0x1584   : > { %v4785_v15 = vpop.f32.mrf.mxu0 }
0x1585   : > { %v6437_v59 = vadd.f32 %v4785_v15, %v6252_v9  ;;  %v3682_v15 = vld [vmem:[#allocation23 + $0x30] sm:$0xff] }
0x1586   : > { %v3486_v10 = vpop.f32.mrf.mxu0  ;;  %4375 = vmatpush3.msra.mxu0 %v3682_v15 }
0x1587   : > { %v6440_v16 = vadd.f32 %v3486_v10, %v6255_v4  ;;  %3499 = vadd.xlane.f32.xlu1 %v6437_v59  ;;  %v3697_v10 = vld [vmem:[#allocation23 + $0xa8] sm:$0xff] }
0x1588   : > { %4376 = vmatprep.subr.mxu0 %v3697_v10 }
0x1589   : > { %3497 = vadd.xlane.f32.xlu0 %v6440_v16 }
0x1610   : > { %v3500_v12 = vpop.xlane.xlu1 %3499 }
0x1611   : > { %v3502_v13 = vmul.f32 0.0078125, %v3500_v12  ;;  %v3681_v12 = vld [vmem:[#allocation23 + $0x28] sm:$0xff] }
0x1612   : > { %v3498_v17 = vpop.xlane.xlu0 %3497  ;;  %4377 = vmatpush3.msra.mxu0 %v3681_v12 }
0x1613   : > { %v3501_v37 = vmul.f32 0.0078125, %v3498_v17  ;;  %v6448_v19 = vsub.f32 %v6437_v59, %v3502_v13  ;;  %v3696_v17 = vld [vmem:[#allocation23 + $0xa0] sm:$0xff] }
0x1614   : > { %v3680_v13 = vld [vmem:[#allocation23 + $0x20] sm:$0xff]  ;;  %4378 = vmatprep.subr.mxu0 %v3696_v17 }
0x1615   : > { %v6445_v18 = vsub.f32 %v6440_v16, %v3501_v37  ;;  %v3506_v4 = vmul.f32 %v6448_v19, %v6448_v19  ;;  %4379 = vmatpush3.msra.mxu0 %v3680_v13  ;;  %v3535_v43 = vmul.f32 %v4135_v38, %v6448_v19  ;;  %v3692_v19 = vld [vmem:[#allocation23 + $0x80] sm:$0xff] }
0x1616   : > { %4380 = vmatprep.subr.mxu0 %v3695_v49 }
0x1617   : > { %v3505_v9 = vmul.f32 %v6445_v18, %v6445_v18  ;;  %v3534_v39 = vmul.f32 %v4135_v38, %v6445_v18  ;;  %4381 = vmatpush3.msra.mxu0 %v3679_v32  ;;  %v3694_v18 = vld [vmem:[#allocation23 + $0x90] sm:$0xff] }
0x1618   : > { %4382 = vmatprep.subr.mxu0 %v3694_v18 }
0x1619   : > { %3507 = vadd.xlane.f32.xlu0 %v3505_v9  ;;  %4383 = vmatpush3.msra.mxu0 %v3678_v50 }
0x161a   : > { %4384 = vmatprep.subr.mxu0 %v3693_v51 }
0x161b   : > { %4385 = vmatpush3.msra.mxu0 %v3677_v52 }
0x161c   : > { %4386 = vmatprep.subr.mxu0 %v3692_v19 }
0x161d   : > { %3509 = vadd.xlane.f32.xlu0 %v3506_v4  ;;  %4387 = vmatpush3.msra.mxu0 %v3676_v53 }
0x16a2   : > { %v3508_v37 = vpop.xlane.xlu0 %3507 }
0x16a3   : > { %v3511_v9 = vmul.f32 0.007874016, %v3508_v37 }
0x16a5   : > { %5068 = vrsqrt.f32 %v3511_v9  ;;  %vm3515_vm0 = vcmp.eq.f32.partialorder %v3511_v9, inf  ;;  %v3518_v21 = vand.u32 2147483648, %v3511_v9  ;;  %vm3517_vm1 = vcmp.eq.f32.partialorder %v3511_v9, 0.0 }
0x16a6   : > { %v3510_v4 = vpop.xlane.xlu0 %3509 }
0x16a7   : > { %v3512_v20 = vmul.f32 0.007874016, %v3510_v4 }
0x16a9   : > { %5070 = vrsqrt.f32 %v3512_v20  ;;  %vm3522_vm2 = vcmp.eq.f32.partialorder %v3512_v20, inf  ;;  %v3525_v31 = vand.u32 2147483648, %v3512_v20  ;;  %vm3524_vm3 = vcmp.eq.f32.partialorder %v3512_v20, 0.0 }
0x16b2   : > { %v5069_v36 = vpop.eup %5068 }
0x16b3   : > { %v3514_v26 = vmul.f32 %v5069_v36, %v3511_v9 }
0x16b5   : > { %v3516_v27 = vsel %vm3515_vm0, %v3511_v9, %v3514_v26 }
0x16b6   : > { %v5071_v23 = vpop.eup %5070  ;;  %v3519_v25 = vsel %vm3517_vm1, %v3518_v21, %v3516_v27 }
0x16b7   : > { %v3536_v22 = vadd.f32 1e-06, %v3519_v25  ;;  %v3521_v30 = vmul.f32 %v5071_v23, %v3512_v20 }
0x16b9   : > { %5072 = vrcp.f32 %v3536_v22  ;;  %v3523_v24 = vsel %vm3522_vm2, %v3512_v20, %v3521_v30 }
0x16ba   : > { %v3526_v35 = vsel %vm3524_vm3, %v3525_v31, %v3523_v24 }
0x16bb   : > { %v3537_v33 = vadd.f32 1e-06, %v3526_v35 }
0x16bd   : > { %5074 = vrcp.f32 %v3537_v33 }
0x16c6   : > { %v5073_v40 = vpop.eup %5072 }
0x16c7   : > { %v3539_v42 = vmul.f32 %v5073_v40, %v3534_v39 }
0x16c9   : > { %v3549_v44 = vadd.f32 %v4136_v41, %v3539_v42 }
0x16ca   : > { %v5075_v46 = vpop.eup %5074 }
0x16cb   : > { %3660 = vmatmul.mubr.f32.vlgmr.msra.gmra.mxu1 %v3549_v44  ;;  %v3541_v47 = vmul.f32 %v5075_v46, %v3535_v43 }
0x16cc   : > { %3665 = vmatprep.mubr.f32.mxu1 %v5567_v45  ;;  %v3586_v45 = vshrl.u32 %v3585_v54, 7 }
0x16cd   : > { %v3550_v48 = vadd.f32 %v4136_v41, %v3541_v47 }
0x16ce   : > { %v3587_v55 = vsub.s32 0, %v3586_v45  ;;  %v3591_v56 = vsub.s32 1, %v3586_v45 }
0x16cf   : > { %3666 = vmatmul.mubr.f32.gmra.mxu1 %v3550_v48 }
0x16d0   : > { %v3588_v57 = vrot.slane %v3583_v34, %v3587_v55  ;;  %v3592_v60 = vrot.slane %v3583_v34, %v3591_v56 }
0x178b   : > { %v3661_v61 = vpop.f32.mrf.mxu1 }
0x178c   : > { %v3662_v62 = vadd.f32 %v3661_v61, %v3588_v57 }
0x178d   : > { %v3663_v63 = vpop.f32.mrf.mxu1 }
0x178e   : > { %v3664_v29 = vadd.f32 %v3663_v63, %v3592_v60  ;;  %v3672_v5 = vmax.f32 %v3662_v62, 0.0 }
0x178f   : > { %v3667_v2 = vpop.f32.mrf.mxu1 }
0x1790   : > { %v3673_v3 = vmax.f32 %v3664_v29, 0.0  ;;  %v3668_v6 = vadd.f32 %v3667_v2, %v3588_v57 }
0x1791   : > { %v3669_v28 = vpop.f32.mrf.mxu1 }
0x1792   : > { %v3670_v7 = vadd.f32 %v3669_v28, %v3592_v60  ;;  %3779 = vmatprep.mubr.f32.mxu0 %v3673_v3  ;;  %v3674_v11 = vmax.f32 %v3668_v6, 0.0 }
0x1793   : > { %3780 = vmatmul.mubr.f32.vlgmr.msra.gmra.mxu0 %v3672_v5 }
0x1794   : > { %v3675_v58 = vmax.f32 %v3670_v7, 0.0 }
0x1796   : > { %3784 = vmatprep.mubr.f32.mxu0 %v3675_v58 }
0x1797   : > { %3785 = vmatmul.mubr.f32.gmra.mxu0 %v3674_v11 }
0x1853   : > { %v4388_v8 = vpop.f32.mrf.mxu0 }
0x1855   : > { %v4389_v0 = vpop.f32.mrf.mxu0 }
0x1856   : > { %v4390_v14 = vadd.f32 %v4389_v0, %v4388_v8 }
0x1857   : > { %v4391_v15 = vpop.f32.mrf.mxu0 }
0x1858   : > { %v3782_v10 = vadd.f32 %v4390_v14, %v4137_v1 }
0x1859   : > { %v4392_v12 = vpop.f32.mrf.mxu0 }
0x185a   : > { %v3790_v17 = vadd.f32 %v3782_v10, %v6440_v16  ;;  %v4393_v13 = vadd.f32 %v4392_v12, %v4391_v15 }
0x185c   : > { %3792 = vst [vmem:[%s963_s15] sm:$0xff] %v3790_v17  ;;  %v3787_v37 = vadd.f32 %v4393_v13, %v4137_v1 }
0x185e   : > { %v3791_v9 = vadd.f32 %v3787_v37, %v6437_v59 }
0x1860   : > { %3793 = vst [vmem:[%s963_s15 + $0x8] sm:$0xff] %v3791_v9 }
0x1861   : > { %5461 = shalt.err (!%p5458_p13)
}
0x1862   : > { %s5462_s1 = scalar_lea.hbm %s6478_s7, 256  ;;  %s5466_s2 = scalar_lea.hbm %s6647_s26, 512 }
0x1863   : > { %p5463_p3 = scmp.ne.s32.totalorder %s6478_s7, %s5462_s1  ;;  %p5467_p12 = scmp.lt.s32.totalorder %s6478_s7, %s6647_s26 }
0x1864   : > { %p5468_p11 = scmp.lt.s32.totalorder %s5466_s2, %s5462_s1 }
0x1865   : > { %p5464_p10 = pnand %p5463_p3, %p6648_p9 }
0x1866   : > { %p5469_p4 = por %p5468_p11, %p5467_p12 }
0x1867   : > { %p5465_p2 = pneg %p5464_p10 }
0x1869   : > { %p5470_p5 = pnand %p5469_p4, %p5465_p2 }
0x186b   : > { %5473 = shalt.err (!%p5470_p5)
}
0x186c   : > { %s5569_s22 = smov 128   ;;  %s5570_s19 = smov 8  }
0x186d   : > { %4834 = dma.vmem_to_hbm [thread:$0]  (%p6648_p9), %s6473_s25, 256, %s6478_s7, %s3795_s16, %s5569_s22, %s5569_s22, %s5570_s19  }
0x186e PF: > { %s6649_s13 = sld [smem:[#allocation36_spill]]  ;;  %p6652_p1 = scmp.ge.s32.totalorder %s5544_s30, 2 }
0x186f   : > { %s6650_s6 = sld [smem:[#allocation40_spill]] }
0x1874   : > { %s3823_s15 = sand.u32 1, %s6649_s13  }
0x1875   : > { %p6651_p8 = scmp.ne.s32.totalorder %s6650_s6, 0  ;;  %s3824_s4 = scalar_lea.sflag [#allocation4], %s3823_s15 }
0x1877   : > { %p4881_p6 = pnand %p6652_p1, %p6651_p8 }
0x1879   : > { %p4882_p0 = pneg %p4881_p6 }
0x187b   : > { %5527 = dma.done.wait (%p4882_p0), %s3824_s4, 256  }
0x187c   : > { %5529 = vsyncadd (%p4882_p0), %s3824_s4, 4294967040  ;;  %s6653_s30 = sld [smem:[#allocation37_spill]]  ;;  %s6655_s3 = smov %s5536_s28 }
0x187d   : > { %s6654_s14 = sld [smem:[#allocation38_spill]]  ;;  %s6656_s28 = smov %s5540_s29 }
0x1882   : > { %p46_p7 = scmp.ge.s32.totalorder %s6653_s30, 4  }
0x1883   : > { %s6657_s29 = smov %s6654_s14 }
0x1884   :  { %48 = sbr.rel (!%p46_p7) target bundleno = 36 (0x24), region = 230 }
0x1889   :  { %3829 = vsyncpa [#allocation3], 1 }
0x188a   :  { %3831 = vsyncpa [#allocation3 + $0x1], 1 }
0x188b   :  { %3832 = vsyncpa [#allocation6], 1 }
0x188c   :  { %3834 = vsyncpa [#allocation6 + $0x1], 1 }
0x188d   :  { %3835 = vsyncpa [#allocation9], 1 }
0x188e   :  { %3837 = vsyncpa [#allocation9 + $0x1], 1 }
0x188f   :  { %3838 = vsyncpa [#allocation12], 1 }
0x1890   :  { %3839 = vsyncpa [#allocation15], 1 }
0x1891   :  { %3840 = vsyncpa [#allocation18], 1 }
0x1892   :  { %3841 = vsyncpa [#allocation21], 1 }
0x1893   :  { %3842 = vsyncpa [#allocation24], 1 }
0x1894   :  { %3843 = vsyncpa [#allocation4], 1 }
0x1895   :  { %3845 = vsyncpa [#allocation4 + $0x1], 1 }

</bundles_post_ra>
